<compile_context>
chip_gen: v5e
topology: v5e:2x2
jax: 0.10.0
libtpu: 0.0.40
codegen_flags: <defaults>
</compile_context>

<pallas_src>
import functools

import jax
import jax.numpy as jnp
from jax.experimental import pallas as pl
from jax.experimental.pallas import tpu as pltpu

_LANE = 128


def _round_up(x, m):
    return (x + m - 1) // m * m


def _pick_batch_block(batch, max_rows=8):
    """Rows per grid step: whole batch if small, else a multiple of 8 that divides it."""
    if batch <= max_rows:
        return batch
    cap = max_rows - max_rows % 8
    for bb in range(cap, 0, -8):
        if batch % bb == 0:
            return bb
    return batch


# ---------------------------------------------------------------------------
# Fused kernel: projection head (+ residual for queries), L2 normalize, MaxSim.
# One grid step per block of `bb` batch rows; all n_way candidates in one matmul.
# ---------------------------------------------------------------------------
def colbert_fused_kernel(qm_ref, dm_ref, q_ref, d_ref, w_ref, b_ref, o_ref,
                         *, n_way: int, doc_len: int):
    bb, q_len, hidden = q_ref.shape          # bf16 [bb, Lq, H]
    wld = d_ref.shape[1]                     # bf16 [bb, WLd, H], WLd = n_way * doc_len

    # --- projection head: one fused MXU pass over query + doc rows (bf16 in, f32 acc) ---
    xq = q_ref[...].reshape(bb * q_len, hidden)
    xd = d_ref[...].reshape(bb * wld, hidden)
    x = jnp.concatenate([xq, xd], axis=0)                       # [(bb*(Lq+WLd)), H] bf16
    y = jnp.dot(x, w_ref[...], preferred_element_type=jnp.float32) + b_ref[...]
    yq = y[: bb * q_len] + xq.astype(jnp.float32)               # query: linear(x) + x
    yd = y[bb * q_len:]                                         # doc:   linear(x)

    # --- L2 normalize (== F.normalize(eps=1e-12)); rsqrt goes to the EUP slot ---
    yq = yq * jax.lax.rsqrt(jnp.maximum(jnp.sum(yq * yq, axis=-1, keepdims=True), 1e-24))
    yd = yd * jax.lax.rsqrt(jnp.maximum(jnp.sum(yd * yd, axis=-1, keepdims=True), 1e-24))

    # --- MaxSim: batched similarity over all n_way candidates in one MXU call ---
    yq3 = yq.astype(jnp.bfloat16).reshape(bb, q_len, hidden)
    yd3 = yd.astype(jnp.bfloat16).reshape(bb, wld, hidden)
    sim = jax.lax.dot_general(
        yq3, yd3, dimension_numbers=(((2,), (2,)), ((0,), (0,))),
        preferred_element_type=jnp.float32)                     # [bb, Lq, WLd]

    # Masked / padded doc tokens contribute sim = 0 — exactly the reference's zeroed-embedding
    # behaviour (intentional: the per-token max is floored at 0 whenever a masked token exists).
    sim = sim * dm_ref[...]                                     # dm: [bb, 1, WLd]

    # Per (query token, candidate) max over doc tokens.  doc_len % 128 == 0, so each slice is
    # whole-vreg lanes and the XLU reduce is unmasked.
    per_q_max = jnp.concatenate(
        [jnp.max(sim[:, :, w * doc_len:(w + 1) * doc_len], axis=-1, keepdims=True)
         for w in range(n_way)],
        axis=-1)                                                # [bb, Lq, n_way]

    # Query mask + sum over query tokens as a tiny batched matvec.
    scores = jax.lax.dot_general(
        qm_ref[...], per_q_max,
        dimension_numbers=(((2,), (1,)), ((0,), (0,))),
        preferred_element_type=jnp.float32)                     # [bb, 1, n_way]
    o_ref[...] = scores.reshape(bb, n_way)


def colbert_scores(q_hidden, q_mask, d_hidden, d_mask, w_mat, b_vec, *,
                   max_rows_per_step=8):
    """q_hidden: [B, Lq, H], d_hidden: [B, n_way, Ld, H], masks binary floats.
    Returns MaxSim scores [B, n_way]."""
    B, Lq, H = q_hidden.shape
    _, n_way, Ld, _ = d_hidden.shape

    # Pad Ld to a lane multiple (mask = 0 on the padding) so per-candidate maxes are
    # whole-vreg reductions.  Padded tokens behave exactly like masked tokens (sim = 0).
    Ld_pad = _round_up(Ld, _LANE)
    if Ld_pad != Ld:
        d_hidden = jnp.pad(d_hidden, ((0, 0), (0, 0), (0, Ld_pad - Ld), (0, 0)))
        d_mask = jnp.pad(d_mask, ((0, 0), (0, 0), (0, Ld_pad - Ld)))
    WLd = n_way * Ld_pad

    # bf16 matmul operands prepared in the wrapper (no in-kernel casts of the big blocks).
    q_bf = q_hidden.astype(jnp.bfloat16)
    d_bf = d_hidden.reshape(B, WLd, H).astype(jnp.bfloat16)
    w_bf = w_mat.astype(jnp.bfloat16)
    bias = b_vec.reshape(1, H).astype(jnp.float32)
    qm = q_mask.astype(jnp.float32).reshape(B, 1, Lq)
    dm = d_mask.astype(jnp.float32).reshape(B, 1, WLd)

    bb = _pick_batch_block(B, max_rows_per_step)
    grid = (B // bb,)

    # VMEM budget: double-buffered inputs + resident weight + in-kernel intermediates + slack.
    in_bytes = bb * (Lq + WLd) * H * 2 + bb * (Lq + WLd + n_way) * 4
    interm_bytes = bb * (Lq + WLd) * H * 10 + bb * Lq * WLd * 4
    vmem_limit = int(min(max(2 * in_bytes + H * H * 2 + interm_bytes + (4 << 20), 32 << 20),
                         64 << 20))

    kernel = functools.partial(colbert_fused_kernel, n_way=n_way, doc_len=Ld_pad)
    out = pl.pallas_call(
        kernel,
        out_shape=jax.ShapeDtypeStruct((B, n_way), jnp.float32),
        grid=grid,
        in_specs=[
            pl.BlockSpec((bb, 1, Lq), lambda i: (i, 0, 0)),     # query mask (lane-dense)
            pl.BlockSpec((bb, 1, WLd), lambda i: (i, 0, 0)),    # doc mask   (lane-dense)
            pl.BlockSpec((bb, Lq, H), lambda i: (i, 0, 0)),     # query hidden states (bf16)
            pl.BlockSpec((bb, WLd, H), lambda i: (i, 0, 0)),    # all n_way doc states (bf16)
            pl.BlockSpec((H, H), lambda i: (0, 0)),             # projection weight (resident)
            pl.BlockSpec((1, H), lambda i: (0, 0)),             # projection bias
        ],
        out_specs=pl.BlockSpec((bb, n_way), lambda i: (i, 0)),
        compiler_params=pltpu.CompilerParams(
            dimension_semantics=("parallel",),
            vmem_limit_bytes=vmem_limit),
    )(qm, dm, q_bf, d_bf, w_bf, bias)
    return out                                                  # [B, n_way]


# ---------------------------------------------------------------------------
# Loss glue (soft-label cross-entropy + KLDiv distillation), distillation_type='soft'
# ---------------------------------------------------------------------------
def colbert_losses(student_logits, teacher_logits, labels, alpha=0.5, T=2.0):
    # nn.CrossEntropyLoss with probability targets: mean_b(-sum_c target * log_softmax)
    student_log_probs = jax.nn.log_softmax(student_logits, axis=-1)
    student_loss = jnp.mean(-jnp.sum(labels * student_log_probs, axis=-1))
    # KLDivLoss(reduction='batchmean')(log_softmax(s/T), softmax(t/T)) * T^2
    s_log = jax.nn.log_softmax(student_logits / T, axis=-1)
    t_prob = jax.nn.softmax(teacher_logits / T, axis=-1)
    kl = jnp.sum(t_prob * (jnp.log(t_prob) - s_log)) / student_logits.shape[0]
    distill_loss = kl * (T * T)
    loss = (1.0 - alpha) * student_loss + alpha * distill_loss
    return (loss, student_loss, jax.nn.softmax(student_logits, axis=-1),
            distill_loss, jax.nn.softmax(teacher_logits, axis=-1))


# ---------------------------------------------------------------------------
# Forward pass mirroring ColBert.forward (distillation_type='soft')
# ---------------------------------------------------------------------------
def colbert_forward(q_hidden, q_mask, d_hidden, d_mask, w_mat, b_vec,
                    teacher_logits, labels, alpha=0.5, T=2.0):
    student_logits = colbert_scores(q_hidden, q_mask, d_hidden, d_mask, w_mat, b_vec)
    return colbert_losses(student_logits, teacher_logits, labels, alpha=alpha, T=T)


# Pure-JAX reference (f32) of the projection + mask + normalize + MaxSim path.
def _reference_scores(q_hidden, q_mask, d_hidden, d_mask, w_mat, b_vec):
    def l2norm(x):
        n = jnp.sqrt(jnp.sum(x * x, axis=-1, keepdims=True))
        return x / jnp.maximum(n, 1e-12)
    qv = l2norm((q_hidden @ w_mat + b_vec + q_hidden) * q_mask[..., None])
    dv = l2norm((d_hidden @ w_mat + b_vec) * d_mask[..., None])
    sim = jnp.einsum("bqh,bwlh->bwql", qv, dv)
    return jnp.sum(jnp.max(sim, axis=-1), axis=-1)              # [B, n_way]


if __name__ == "__main__":
    key = jax.random.PRNGKey(0)
    B, n_way, Lq, Ld, H = 2, 4, 16, 32, 128

    k0, k1, k2, k3 = jax.random.split(key, 4)

    # TODO(synk): the HF transformer backbone (AutoModel) has no Pallas equivalent;
    # its last_hidden_state is synthesized deterministically here.
    q_hidden = jax.random.normal(k0, (B, Lq, H), dtype=jnp.float32)
    d_hidden = jax.random.normal(k1, (B, n_way, Ld, H), dtype=jnp.float32)
    q_mask = jnp.ones((B, Lq), jnp.float32).at[:, -2:].set(0.0)
    d_mask = jnp.ones((B, n_way, Ld), jnp.float32).at[:, :, -4:].set(0.0)

    # nn.Linear(H, H): xavier_uniform weight, zero bias.  Stored as [in, out].
    bound = (6.0 / (H + H)) ** 0.5
    W = jax.random.uniform(k2, (H, H), jnp.float32, minval=-bound, maxval=bound)
    b = jnp.zeros((H,), jnp.float32)

    # TODO(synk): teacher cross-encoder (AutoModelForSequenceClassification) is external;
    # its logits are synthesized deterministically here.
    teacher_logits = jax.random.normal(k3, (B, n_way), dtype=jnp.float32)
    labels = jax.nn.one_hot(jnp.array([0, 1]), n_way, dtype=jnp.float32)

    # Kernel scores + loose check vs f32 reference (kernel uses bf16 MXU operands/inputs).
    student_logits = colbert_scores(q_hidden, q_mask, d_hidden, d_mask, W, b)
    jax.block_until_ready(student_logits)
    ref_logits = _reference_scores(q_hidden, q_mask, d_hidden, d_mask, W, b)
    assert student_logits.shape == (B, n_way)
    assert bool(jnp.allclose(student_logits, ref_logits, rtol=5e-2, atol=3e-1))

    outs = colbert_forward(q_hidden, q_mask, d_hidden, d_mask, W, b, teacher_logits, labels)
    jax.block_until_ready(outs)
    loss, student_loss, student_probs, distill_loss, teacher_probs = outs
    assert student_probs.shape == (B, n_way) and teacher_probs.shape == (B, n_way)
    assert jnp.isfinite(loss) and jnp.isfinite(student_loss) and jnp.isfinite(distill_loss)
    print("KERNEL_OK")
</pallas_src>

<mosaic_0001>
module attributes {stable_mosaic.version = 11 : i64} {
  func.func @colbert_fused_kernel(%arg0: i32, %arg1: memref<2x1x16xf32, #tpu.memory_space<vmem>>, %arg2: memref<2x1x512xf32, #tpu.memory_space<vmem>>, %arg3: memref<2x16x128xbf16, #tpu.memory_space<vmem>>, %arg4: memref<2x512x128xbf16, #tpu.memory_space<vmem>>, %arg5: memref<128x128xbf16, #tpu.memory_space<vmem>>, %arg6: memref<1x128xf32, #tpu.memory_space<vmem>>, %arg7: memref<2x4xf32, #tpu.memory_space<vmem>>) attributes {dimension_semantics = [#tpu.dimension_semantics<parallel>], iteration_bounds = array<i64: 1>, scalar_prefetch = 0 : i64, scratch_operands = 0 : i64, tpu.core_type = #tpu.core_type<tc>, window_params = [{transform_indices = @transform_0, window_bounds = array<i64: 2, 1, 16>}, {transform_indices = @transform_1, window_bounds = array<i64: 2, 1, 512>}, {transform_indices = @transform_2, window_bounds = array<i64: 2, 16, 128>}, {transform_indices = @transform_3, window_bounds = array<i64: 2, 512, 128>}, {pipeline_mode = #tpu.pipeline_mode<synchronous>, transform_indices = @transform_4, window_bounds = array<i64: 128, 128>}, {pipeline_mode = #tpu.pipeline_mode<synchronous>, transform_indices = @transform_5, window_bounds = array<i64: 1, 128>}, {transform_indices = @transform_6, window_bounds = array<i64: 2, 4>}]} {
    %c0 = arith.constant 0 : index
    %c0_0 = arith.constant 0 : index
    %c0_1 = arith.constant 0 : index
    %0 = vector.load %arg3[%c0, %c0_0, %c0_1] : memref<2x16x128xbf16, #tpu.memory_space<vmem>>, vector<2x16x128xbf16>
    %1 = vector.shape_cast %0 : vector<2x16x128xbf16> to vector<32x128xbf16>
    %c0_2 = arith.constant 0 : index
    %c0_3 = arith.constant 0 : index
    %c0_4 = arith.constant 0 : index
    %2 = vector.load %arg4[%c0_2, %c0_3, %c0_4] : memref<2x512x128xbf16, #tpu.memory_space<vmem>>, vector<2x512x128xbf16>
    %3 = vector.shape_cast %2 : vector<2x512x128xbf16> to vector<1024x128xbf16>
    %4 = tpu.concatenate %1, %3 in 0 : vector<32x128xbf16>, vector<1024x128xbf16> -> vector<1056x128xbf16>
    %c0_5 = arith.constant 0 : index
    %c0_6 = arith.constant 0 : index
    %5 = vector.load %arg5[%c0_5, %c0_6] : memref<128x128xbf16, #tpu.memory_space<vmem>>, vector<128x128xbf16>
    %cst = arith.constant dense<0.000000e+00> : vector<1056x128xf32>
    %6 = tpu.matmul %4, %5, %cst {dimension_numbers = #tpu.dot_dimension_numbers<[1], [0], [0], [1], [0, 0, 1, 1], [], []>} : vector<1056x128xbf16>, vector<128x128xbf16>, vector<1056x128xf32> -> vector<1056x128xf32>
    %c0_7 = arith.constant 0 : index
    %c0_8 = arith.constant 0 : index
    %7 = vector.load %arg6[%c0_7, %c0_8] : memref<1x128xf32, #tpu.memory_space<vmem>>, vector<1x128xf32>
    %8 = vector.broadcast %7 : vector<1x128xf32> to vector<1056x128xf32>
    %9 = arith.addf %6, %8 : vector<1056x128xf32>
    %10 = vector.extract_strided_slice %9 {offsets = [0, 0], sizes = [32, 128], strides = [1, 1]} : vector<1056x128xf32> to vector<32x128xf32>
    %11 = arith.extf %1 : vector<32x128xbf16> to vector<32x128xf32>
    %12 = arith.addf %10, %11 : vector<32x128xf32>
    %13 = vector.extract_strided_slice %9 {offsets = [32, 0], sizes = [1024, 128], strides = [1, 1]} : vector<1056x128xf32> to vector<1024x128xf32>
    %14 = arith.mulf %12, %12 : vector<32x128xf32>
    %cst_9 = arith.constant dense<0.000000e+00> : vector<32xf32>
    %15 = vector.multi_reduction <add>, %14, %cst_9 [1] : vector<32x128xf32> to vector<32xf32>
    %16 = vector.shape_cast %15 : vector<32xf32> to vector<32x1xf32>
    %cst_10 = arith.constant 1.000000e-24 : f32
    %17 = vector.broadcast %cst_10 : f32 to vector<32x1xf32>
    %18 = arith.maximumf %16, %17 : vector<32x1xf32>
    %19 = math.rsqrt %18 : vector<32x1xf32>
    %20 = vector.broadcast %19 : vector<32x1xf32> to vector<32x128xf32>
    %21 = arith.mulf %12, %20 : vector<32x128xf32>
    %22 = arith.mulf %13, %13 : vector<1024x128xf32>
    %cst_11 = arith.constant dense<0.000000e+00> : vector<1024xf32>
    %23 = vector.multi_reduction <add>, %22, %cst_11 [1] : vector<1024x128xf32> to vector<1024xf32>
    %24 = vector.shape_cast %23 : vector<1024xf32> to vector<1024x1xf32>
    %cst_12 = arith.constant 1.000000e-24 : f32
    %25 = vector.broadcast %cst_12 : f32 to vector<1024x1xf32>
    %26 = arith.maximumf %24, %25 : vector<1024x1xf32>
    %27 = math.rsqrt %26 : vector<1024x1xf32>
    %28 = vector.broadcast %27 : vector<1024x1xf32> to vector<1024x128xf32>
    %29 = arith.mulf %13, %28 : vector<1024x128xf32>
    %30 = arith.truncf %21 : vector<32x128xf32> to vector<32x128xbf16>
    %31 = vector.shape_cast %30 : vector<32x128xbf16> to vector<2x16x128xbf16>
    %32 = arith.truncf %29 : vector<1024x128xf32> to vector<1024x128xbf16>
    %33 = vector.shape_cast %32 : vector<1024x128xbf16> to vector<2x512x128xbf16>
    %cst_13 = arith.constant dense<0.000000e+00> : vector<2x16x512xf32>
    %34 = tpu.matmul %31, %33, %cst_13 {dimension_numbers = #tpu.dot_dimension_numbers<[2], [2], [1], [1], [0, 0, 0, 1, 1, 1], [0], [0]>} : vector<2x16x128xbf16>, vector<2x512x128xbf16>, vector<2x16x512xf32> -> vector<2x16x512xf32>
    %c0_14 = arith.constant 0 : index
    %c0_15 = arith.constant 0 : index
    %c0_16 = arith.constant 0 : index
    %35 = vector.load %arg2[%c0_14, %c0_15, %c0_16] : memref<2x1x512xf32, #tpu.memory_space<vmem>>, vector<2x1x512xf32>
    %36 = vector.broadcast %35 : vector<2x1x512xf32> to vector<2x16x512xf32>
    %37 = arith.mulf %34, %36 : vector<2x16x512xf32>
    %38 = vector.extract_strided_slice %37 {offsets = [0, 0, 0], sizes = [2, 16, 128], strides = [1, 1, 1]} : vector<2x16x512xf32> to vector<2x16x128xf32>
    %cst_17 = arith.constant dense<0xFF800000> : vector<2x16xf32>
    %39 = vector.multi_reduction <maximumf>, %38, %cst_17 [2] : vector<2x16x128xf32> to vector<2x16xf32>
    %40 = vector.shape_cast %39 : vector<2x16xf32> to vector<2x16x1xf32>
    %41 = vector.extract_strided_slice %37 {offsets = [0, 0, 128], sizes = [2, 16, 128], strides = [1, 1, 1]} : vector<2x16x512xf32> to vector<2x16x128xf32>
    %cst_18 = arith.constant dense<0xFF800000> : vector<2x16xf32>
    %42 = vector.multi_reduction <maximumf>, %41, %cst_18 [2] : vector<2x16x128xf32> to vector<2x16xf32>
    %43 = vector.shape_cast %42 : vector<2x16xf32> to vector<2x16x1xf32>
    %44 = vector.extract_strided_slice %37 {offsets = [0, 0, 256], sizes = [2, 16, 128], strides = [1, 1, 1]} : vector<2x16x512xf32> to vector<2x16x128xf32>
    %cst_19 = arith.constant dense<0xFF800000> : vector<2x16xf32>
    %45 = vector.multi_reduction <maximumf>, %44, %cst_19 [2] : vector<2x16x128xf32> to vector<2x16xf32>
    %46 = vector.shape_cast %45 : vector<2x16xf32> to vector<2x16x1xf32>
    %47 = vector.extract_strided_slice %37 {offsets = [0, 0, 384], sizes = [2, 16, 128], strides = [1, 1, 1]} : vector<2x16x512xf32> to vector<2x16x128xf32>
    %cst_20 = arith.constant dense<0xFF800000> : vector<2x16xf32>
    %48 = vector.multi_reduction <maximumf>, %47, %cst_20 [2] : vector<2x16x128xf32> to vector<2x16xf32>
    %49 = vector.shape_cast %48 : vector<2x16xf32> to vector<2x16x1xf32>
    %50 = tpu.concatenate %40, %43, %46, %49 in 2 : vector<2x16x1xf32>, vector<2x16x1xf32>, vector<2x16x1xf32>, vector<2x16x1xf32> -> vector<2x16x4xf32>
    %c0_21 = arith.constant 0 : index
    %c0_22 = arith.constant 0 : index
    %c0_23 = arith.constant 0 : index
    %51 = vector.load %arg1[%c0_21, %c0_22, %c0_23] : memref<2x1x16xf32, #tpu.memory_space<vmem>>, vector<2x1x16xf32>
    %cst_24 = arith.constant dense<0.000000e+00> : vector<2x1x4xf32>
    %52 = tpu.matmul %51, %50, %cst_24 {dimension_numbers = #tpu.dot_dimension_numbers<[2], [1], [1], [2], [0, 0, 0, 1, 1, 2], [0], [0]>} : vector<2x1x16xf32>, vector<2x16x4xf32>, vector<2x1x4xf32> -> vector<2x1x4xf32>
    %53 = vector.shape_cast %52 : vector<2x1x4xf32> to vector<2x4xf32>
    %c0_25 = arith.constant 0 : index
    %c0_26 = arith.constant 0 : index
    %54 = vector.load %arg7[%c0_25, %c0_26] : memref<2x4xf32, #tpu.memory_space<vmem>>, vector<2x4xf32>
    tpu.vector_store %arg7[%c0_25, %c0_26], %53 {strides = array<i32>} : memref<2x4xf32, #tpu.memory_space<vmem>>, vector<2x4xf32>,
    return
  }
  func.func @transform_0(%arg0: i32) -> (i32, i32, i32) {
    %c0_i32 = arith.constant 0 : i32
    %c0_i32_0 = arith.constant 0 : i32
    %c0_i32_1 = arith.constant 0 : i32
    return %arg0, %c0_i32, %c0_i32_0 : i32, i32, i32
  }
  func.func @transform_1(%arg0: i32) -> (i32, i32, i32) {
    %c0_i32 = arith.constant 0 : i32
    %c0_i32_0 = arith.constant 0 : i32
    %c0_i32_1 = arith.constant 0 : i32
    return %arg0, %c0_i32, %c0_i32_0 : i32, i32, i32
  }
  func.func @transform_2(%arg0: i32) -> (i32, i32, i32) {
    %c0_i32 = arith.constant 0 : i32
    %c0_i32_0 = arith.constant 0 : i32
    %c0_i32_1 = arith.constant 0 : i32
    return %arg0, %c0_i32, %c0_i32_0 : i32, i32, i32
  }
  func.func @transform_3(%arg0: i32) -> (i32, i32, i32) {
    %c0_i32 = arith.constant 0 : i32
    %c0_i32_0 = arith.constant 0 : i32
    %c0_i32_1 = arith.constant 0 : i32
    return %arg0, %c0_i32, %c0_i32_0 : i32, i32, i32
  }
  func.func @transform_4(%arg0: i32) -> (i32, i32) {
    %c0_i32 = arith.constant 0 : i32
    %c0_i32_0 = arith.constant 0 : i32
    %c0_i32_1 = arith.constant 0 : i32
    return %c0_i32, %c0_i32_0 : i32, i32
  }
  func.func @transform_5(%arg0: i32) -> (i32, i32) {
    %c0_i32 = arith.constant 0 : i32
    %c0_i32_0 = arith.constant 0 : i32
    %c0_i32_1 = arith.constant 0 : i32
    return %c0_i32, %c0_i32_0 : i32, i32
  }
  func.func @transform_6(%arg0: i32) -> (i32, i32) {
    %c0_i32 = arith.constant 0 : i32
    %c0_i32_0 = arith.constant 0 : i32
    return %arg0, %c0_i32 : i32, i32
  }
}

</mosaic_0001>

<bundles_post_ra>
// kernel: tpu_custom_call.1
= control target key start
LH: loop header
LB: loop body
LE: loop exit
PB: predicated region body
PF: predicated region fallthrough
CT: control target
= control target key end

     0   :  { %11 = vsyncpa [#allocation3], 0  ;;  %s9425_s0 = inlined_call_operand.hbm [shape: f32[2,1,16], index: 0, kind: input, shape index: {}]   ;;  %s9426_s1 = inlined_call_operand.hbm [shape: f32[2,1,512], index: 1, kind: input, shape index: {}]   ;;  %s9427_s2 = inlined_call_operand.hbm [shape: bf16[2,16,128], index: 2, kind: input, shape index: {}]   ;;  %s9428_s3 = inlined_call_operand.hbm [shape: bf16[2,512,128], index: 3, kind: input, shape index: {}]   ;;  %s9429_s4 = inlined_call_operand.hbm [shape: bf16[128,128], index: 4, kind: input, shape index: {}]   ;;  %s9430_s5 = inlined_call_operand.vmem [shape: f32[1,128], index: 5, kind: input, shape index: {}]   ;;  %s9431_s6 = inlined_call_operand.hbm [shape: f32[2,4], index: 6, kind: output, shape index: {}]  }
   0x1   :  { %12 = vsyncpa [#allocation6], 0 }
   0x2   :  { %13 = vsyncpa [#allocation9], 0  ;;  %s32_s23 = sshll.u32 %s9426_s1, 4  ;;  %s33_s23 = int_to_ptr.hbm [resolvable:$true] %s32_s23 }
   0x3   :  { %14 = vsyncpa [#allocation4], 0  ;;  %s4650_s24 = smov [#allocation5]   ;;  %s58_s28 = sshll.u32 %s9428_s3, 4  ;;  %s59_s28 = int_to_ptr.hbm [resolvable:$true] %s58_s28 }
   0x4   :  { %s34_s25 = sshll.u32 %s4650_s24, 4  ;;  %s4651_s29 = smov 64   ;;  %s35_s25 = int_to_ptr.vmem [resolvable:$true] %s34_s25 }
   0x5   :  { %s4652_s30 = smov 4   ;;  %s4653_s7 = smov [#allocation8]  }
   0x6   :  { %40 = dma.hbm_to_vmem [thread:$0]  %s33_s23, 128, %s35_s25, [#allocation6], %s4651_s29, %s4651_s29, %s4652_s30  }
   0x7   :  { %s60_s8 = sshll.u32 %s4653_s7, 4  ;;  %s19_s10 = sshll.u32 %s9425_s0, 4  ;;  %s61_s8 = int_to_ptr.vmem [resolvable:$true] %s60_s8  ;;  %s20_s10 = int_to_ptr.hbm [resolvable:$true] %s19_s10 }
   0x8   :  { %66 = dma.hbm_to_vmem [thread:$0]  %s59_s28, 8192, %s61_s8, [#allocation9], %s4651_s29, %s4651_s29, %s4652_s30  }
   0x9   :  { %s4654_s3 = smov [#allocation2]   ;;  %s45_s14 = sshll.u32 %s9427_s2, 4  ;;  %s46_s14 = int_to_ptr.hbm [resolvable:$true] %s45_s14 }
   0xa   :  { %s21_s11 = sshll.u32 %s4654_s3, 4  ;;  %s4655_s15 = smov 16   ;;  %s22_s11 = int_to_ptr.vmem [resolvable:$true] %s21_s11 }
   0xb   :  { %s4656_s16 = smov 1   ;;  %s4657_s17 = smov [#allocation7]  }
   0xc   :  { %27 = dma.hbm_to_vmem [thread:$0]  %s20_s10, 32, %s22_s11, [#allocation3], %s4655_s15, %s4655_s15, %s4656_s16  }
   0xd   :  { %s47_s18 = sshll.u32 %s4657_s17, 4  ;;  %s71_s20 = sshll.u32 %s9429_s4, 4  ;;  %s48_s18 = int_to_ptr.vmem [resolvable:$true] %s47_s18  ;;  %s72_s20 = int_to_ptr.hbm [resolvable:$true] %s71_s20 }
   0xe   :  { %53 = dma.hbm_to_vmem [thread:$0]  %s46_s14, 256, %s48_s18, [#allocation6], %s4651_s29, %s4651_s29, %s4652_s30  }
   0xf   :  { %s4658_s21 = smov [#allocation10]  }
  0x10   :  { %s73_s22 = sshll.u32 %s4658_s21, 4  ;;  %s74_s22 = int_to_ptr.vmem [resolvable:$true] %s73_s22 }
  0x11   :  { %79 = dma.hbm_to_vmem [thread:$0]  %s72_s20, 1024, %s74_s22, [#allocation9], %s4651_s29, %s4651_s29, %s4652_s30  }
  0x12   :  { %4642 = dma.done.wait [#allocation3], 32  }
  0x13   :  { %4643 = vsyncadd [#allocation3], 4294967264 }
  0x14   :  { %4644 = dma.done.wait [#allocation6], 384  }
  0x15   :  { %4645 = vsyncadd [#allocation6], 4294966912 }
  0x16   :  { %4646 = dma.done.wait [#allocation9], 9216  }
  0x17   :  { %4647 = vsyncadd [#allocation9], 4294958080  ;;  %v4195_v0 = vld [vmem:[#allocation10 + $0x38] sm:$0xff]  ;;  %v4194_v1 = vld [vmem:[#allocation10 + $0x30] sm:$0xff]  ;;  %s3812_s30 = sshll.u32 %s9431_s6, 4  ;;  %s3813_s30 = int_to_ptr.hbm [resolvable:$true] %s3812_s30 }
  0x18   :  { %698 = vmatpush.bf16.msra.mxu0 %v4195_v0  ;;  %4196 = vmatpush.bf16.msra.mxu1 %v4195_v0  ;;  %v4193_v2 = vld [vmem:[#allocation10 + $0x28] sm:$0xff]  ;;  %v4192_v3 = vld [vmem:[#allocation10 + $0x20] sm:$0xff]  ;;  %v4191_v4 = vld [vmem:[#allocation10 + $0x18] sm:$0xff] }
  0x19   :  { %4197 = vmatpush.bf16.msra.mxu2 %v4195_v0  ;;  %4198 = vmatpush.bf16.msra.mxu3 %v4195_v0  ;;  %v4190_v5 = vld [vmem:[#allocation10 + $0x10] sm:$0xff]  ;;  %v4189_v6 = vld [vmem:[#allocation10 + $0x8] sm:$0xff]  ;;  %v4188_v7 = vld [vmem:[#allocation10] sm:$0xff] }
  0x1a   :  { %v4122_v8 = vld [vmem:[#allocation7] sm:$0xff]  ;;  %v4160_v10 = vld [vmem:[#allocation8 + $0x120] sm:$0xff]  ;;  %v4171_v11 = vld [vmem:[#allocation8 + $0x178] sm:$0xff] }
  0x1b   :  { %v4146_v9 = vld [vmem:[#allocation8 + $0xb0] sm:$0xff]  ;;  %v4123_v12 = vld [vmem:[#allocation7 + $0x8] sm:$0xff]  ;;  %v4161_v14 = vld [vmem:[#allocation8 + $0x128] sm:$0xff] }
  0x1c   :  { %699 = vmatpush.bf16.msra.mxu0 %v4194_v1  ;;  %4199 = vmatpush.bf16.msra.mxu1 %v4194_v1  ;;  %v4147_v13 = vld [vmem:[#allocation8 + $0xb8] sm:$0xff]  ;;  %v4172_v15 = vld [vmem:[#allocation8 + $0x180] sm:$0xff]  ;;  %v4162_v18 = vld [vmem:[#allocation8 + $0x130] sm:$0xff] }
  0x1d   :  { %4200 = vmatpush.bf16.msra.mxu2 %v4194_v1  ;;  %4201 = vmatpush.bf16.msra.mxu3 %v4194_v1  ;;  %v4124_v16 = vld [vmem:[#allocation8] sm:$0xff]  ;;  %v4173_v19 = vld [vmem:[#allocation8 + $0x188] sm:$0xff]  ;;  %v4163_v22 = vld [vmem:[#allocation8 + $0x138] sm:$0xff] }
  0x1e   :  { %v4148_v17 = vld [vmem:[#allocation8 + $0xc0] sm:$0xff]  ;;  %v4125_v20 = vld [vmem:[#allocation8 + $0x8] sm:$0xff]  ;;  %v4174_v23 = vld [vmem:[#allocation8 + $0x190] sm:$0xff] }
  0x1f   :  { %v4149_v21 = vld [vmem:[#allocation8 + $0xc8] sm:$0xff]  ;;  %v4126_v24 = vld [vmem:[#allocation8 + $0x10] sm:$0xff]  ;;  %v4175_v26 = vld [vmem:[#allocation8 + $0x198] sm:$0xff] }
  0x20   :  { %700 = vmatpush.bf16.msra.mxu0 %v4193_v2  ;;  %4202 = vmatpush.bf16.msra.mxu1 %v4193_v2  ;;  %v4150_v25 = vld [vmem:[#allocation8 + $0xd0] sm:$0xff]  ;;  %v4164_v27 = vld [vmem:[#allocation8 + $0x140] sm:$0xff]  ;;  %v4127_v28 = vld [vmem:[#allocation8 + $0x18] sm:$0xff] }
  0x21   :  { %4203 = vmatpush.bf16.msra.mxu2 %v4193_v2  ;;  %4204 = vmatpush.bf16.msra.mxu3 %v4193_v2  ;;  %v4151_v29 = vld [vmem:[#allocation8 + $0xd8] sm:$0xff]  ;;  %v4176_v30 = vld [vmem:[#allocation8 + $0x1a0] sm:$0xff]  ;;  %v4165_v31 = vld [vmem:[#allocation8 + $0x148] sm:$0xff] }
  0x22   :  { %v4128_v32 = vld [vmem:[#allocation8 + $0x20] sm:$0xff]  ;;  %v4177_v34 = vld [vmem:[#allocation8 + $0x1a8] sm:$0xff]  ;;  %v4166_v35 = vld [vmem:[#allocation8 + $0x150] sm:$0xff] }
  0x23   :  { %v4152_v33 = vld [vmem:[#allocation8 + $0xe0] sm:$0xff]  ;;  %v4129_v36 = vld [vmem:[#allocation8 + $0x28] sm:$0xff]  ;;  %v4178_v38 = vld [vmem:[#allocation8 + $0x1b0] sm:$0xff] }
  0x24   :  { %701 = vmatpush.bf16.msra.mxu0 %v4192_v3  ;;  %4205 = vmatpush.bf16.msra.mxu1 %v4192_v3  ;;  %v4153_v37 = vld [vmem:[#allocation8 + $0xe8] sm:$0xff]  ;;  %v4167_v39 = vld [vmem:[#allocation8 + $0x158] sm:$0xff]  ;;  %v102_v40 = vld [vmem:[#allocation7] sm:$0xff]  }
  0x25   :  { %4206 = vmatpush.bf16.msra.mxu2 %v4192_v3  ;;  %4207 = vmatpush.bf16.msra.mxu3 %v4192_v3  ;;  %v4725_v41 = vld [vmem:[%s9430_s5] ss:$0 sm:$0xff]  ;;  %v4130_v42 = vld [vmem:[#allocation8 + $0x30] sm:$0xff]  ;;  %v1037_v44 = vunpack.c.l.bf16 %v102_v40  ;;  %v4179_v47 = vld [vmem:[#allocation8 + $0x1b8] sm:$0xff]  ;;  %v1038_v63 = vunpack.c.h.bf16 %v102_v40 }
  0x26   :  { %v4154_v43 = vld [vmem:[#allocation8 + $0xf0] sm:$0xff]  ;;  %v4168_v48 = vld [vmem:[#allocation8 + $0x160] sm:$0xff]  ;;  %v4155_v3 = vld [vmem:[#allocation8 + $0xf8] sm:$0xff] }
  0x28   :  { %702 = vmatpush.bf16.msra.mxu0 %v4191_v4  ;;  %4208 = vmatpush.bf16.msra.mxu1 %v4191_v4 }
  0x29   :  { %4209 = vmatpush.bf16.msra.mxu2 %v4191_v4  ;;  %4210 = vmatpush.bf16.msra.mxu3 %v4191_v4  ;;  %v4131_v4 = vld [vmem:[#allocation8 + $0x38] sm:$0xff] }
  0x2c   :  { %703 = vmatpush.bf16.msra.mxu0 %v4190_v5  ;;  %4211 = vmatpush.bf16.msra.mxu1 %v4190_v5 }
  0x2d   :  { %4212 = vmatpush.bf16.msra.mxu2 %v4190_v5  ;;  %4213 = vmatpush.bf16.msra.mxu3 %v4190_v5 }
  0x30   :  { %704 = vmatpush.bf16.msra.mxu0 %v4189_v6  ;;  %4214 = vmatpush.bf16.msra.mxu1 %v4189_v6 }
  0x31   :  { %4215 = vmatpush.bf16.msra.mxu2 %v4189_v6  ;;  %4216 = vmatpush.bf16.msra.mxu3 %v4189_v6 }
  0x34   :  { %705 = vmatpush.bf16.msra.mxu0 %v4188_v7  ;;  %4217 = vmatpush.bf16.msra.mxu1 %v4188_v7 }
  0x35   :  { %4218 = vmatpush.bf16.msra.mxu2 %v4188_v7  ;;  %4219 = vmatpush.bf16.msra.mxu3 %v4188_v7 }
  0x37   :  { %706 = vmatmul.bf16.vlgmr.msra.gmra.mxu0 %v4122_v8  ;;  %826 = vmatmul.bf16.vlgmr.msra.gmra.mxu1 %v4146_v9  ;;  %v4180_v9 = vld [vmem:[#allocation8 + $0x1c0] sm:$0xff] }
  0x38   :  { %896 = vmatmul.bf16.vlgmr.msra.gmra.mxu2 %v4160_v10  ;;  %951 = vmatmul.bf16.vlgmr.msra.gmra.mxu3 %v4171_v11 }
  0x47   :  { %711 = vmatmul.bf16.gmra.mxu0 %v4123_v12  ;;  %831 = vmatmul.bf16.gmra.mxu1 %v4147_v13  ;;  %v4169_v12 = vld [vmem:[#allocation8 + $0x168] sm:$0xff] }
  0x48   :  { %901 = vmatmul.bf16.gmra.mxu2 %v4161_v14  ;;  %956 = vmatmul.bf16.gmra.mxu3 %v4172_v15 }
  0x57   :  { %716 = vmatmul.bf16.gmra.mxu0 %v4124_v16  ;;  %836 = vmatmul.bf16.gmra.mxu1 %v4148_v17 }
  0x58   :  { %906 = vmatmul.bf16.gmra.mxu2 %v4162_v18  ;;  %961 = vmatmul.bf16.gmra.mxu3 %v4173_v19 }
  0x67   :  { %721 = vmatmul.bf16.gmra.mxu0 %v4125_v20  ;;  %841 = vmatmul.bf16.gmra.mxu1 %v4149_v21 }
  0x68   :  { %911 = vmatmul.bf16.gmra.mxu2 %v4163_v22  ;;  %966 = vmatmul.bf16.gmra.mxu3 %v4174_v23 }
  0x77   :  { %726 = vmatmul.bf16.gmra.mxu0 %v4126_v24  ;;  %846 = vmatmul.bf16.gmra.mxu1 %v4150_v25 }
  0x78   :  { %971 = vmatmul.bf16.gmra.mxu3 %v4175_v26  ;;  %916 = vmatmul.bf16.gmra.mxu2 %v4164_v27  ;;  %v4156_v27 = vld [vmem:[#allocation8 + $0x100] sm:$0xff] }
  0x87   :  { %731 = vmatmul.bf16.gmra.mxu0 %v4127_v28  ;;  %851 = vmatmul.bf16.gmra.mxu1 %v4151_v29  ;;  %v4132_v28 = vld [vmem:[#allocation8 + $0x40] sm:$0xff] }
  0x88   :  { %976 = vmatmul.bf16.gmra.mxu3 %v4176_v30  ;;  %921 = vmatmul.bf16.gmra.mxu2 %v4165_v31 }
  0x97   :  { %736 = vmatmul.bf16.gmra.mxu0 %v4128_v32  ;;  %856 = vmatmul.bf16.gmra.mxu1 %v4152_v33  ;;  %v4181_v32 = vld [vmem:[#allocation8 + $0x1c8] sm:$0xff] }
  0x98   :  { %981 = vmatmul.bf16.gmra.mxu3 %v4177_v34  ;;  %926 = vmatmul.bf16.gmra.mxu2 %v4166_v35 }
  0xa7   :  { %741 = vmatmul.bf16.gmra.mxu0 %v4129_v36  ;;  %861 = vmatmul.bf16.gmra.mxu1 %v4153_v37  ;;  %v4170_v36 = vld [vmem:[#allocation8 + $0x170] sm:$0xff] }
  0xa8   :  { %986 = vmatmul.bf16.gmra.mxu3 %v4178_v38  ;;  %931 = vmatmul.bf16.gmra.mxu2 %v4167_v39 }
  0xb4   :  { %v707_v45 = vpop.f32.mrf.mxu0  ;;  %v827_v46 = vpop.f32.mrf.mxu1 }
  0xb5   :  { %v708_v49 = vadd.f32 %v4725_v41, %v707_v45  ;;  %v4729_v50 = vadd.f32 %v4725_v41, %v827_v46 }
  0xb7   :  { %746 = vmatmul.bf16.gmra.mxu0 %v4130_v42  ;;  %866 = vmatmul.bf16.gmra.mxu1 %v4154_v43  ;;  %v1149_v51 = vmul.f32 %v4729_v50, %v4729_v50  ;;  %v4733_v52 = vadd.f32 %v1037_v44, %v708_v49  ;;  %v4157_v49 = vld [vmem:[#allocation8 + $0x108] sm:$0xff] }
  0xb8   :  { %991 = vmatmul.bf16.gmra.mxu3 %v4179_v47  ;;  %936 = vmatmul.bf16.gmra.mxu2 %v4168_v48  ;;  %v4133_v48 = vld [vmem:[#allocation8 + $0x48] sm:$0xff] }
  0xb9   :  { %9833 = vst [vmem:[#allocation16_spill] sm:$0xff] %v4733_v52  ;;  %1321 = vadd.xlane.f32.xlu1 %v1149_v51  ;;  %v1045_v53 = vmul.f32 %v4733_v52, %v4733_v52  ;;  %v4138_v52 = vld [vmem:[#allocation8 + $0x70] sm:$0xff] }
  0xbb   :  { %v897_v54 = vpop.f32.mrf.mxu2  ;;  %v952_v55 = vpop.f32.mrf.mxu3  ;;  %1049 = vadd.xlane.f32.xlu0 %v1045_v53 }
  0xbc   :  { %v4738_v56 = vadd.f32 %v4725_v41, %v897_v54  ;;  %v4741_v57 = vadd.f32 %v4725_v41, %v952_v55  ;;  %v709_v58 = vpop.f32.mrf.mxu0  ;;  %v829_v59 = vpop.f32.mrf.mxu1  ;;  %v4182_v55 = vld [vmem:[#allocation8 + $0x1d0] sm:$0xff] }
  0xbd   :  { %v710_v62 = vadd.f32 %v4725_v41, %v709_v58  ;;  %v4749_v0 = vadd.f32 %v4725_v41, %v829_v59 }
  0xbe   :  { %9834 = vst [vmem:[#allocation17_spill] sm:$0xff] %v4738_v56  ;;  %v1177_v60 = vmul.f32 %v4738_v56, %v4738_v56  ;;  %v1199_v61 = vmul.f32 %v4741_v57, %v4741_v57 }
  0xbf   :  { %9835 = vst [vmem:[#allocation18_spill] sm:$0xff] %v4741_v57  ;;  %v4751_v5 = vadd.f32 %v1038_v63, %v710_v62  ;;  %v1150_v10 = vmul.f32 %v4749_v0, %v4749_v0 }
  0xc0   :  { %1377 = vadd.xlane.f32.xlu2 %v1177_v60 }
  0xc1   :  { %1421 = vadd.xlane.f32.xlu1 %v1199_v61  ;;  %9836 = vst [vmem:[#allocation19_spill] sm:$0xff] %v4751_v5  ;;  %v1046_v13 = vmul.f32 %v4751_v5, %v4751_v5 }
  0xc3   :  { %v899_v1 = vpop.f32.mrf.mxu2  ;;  %v954_v2 = vpop.f32.mrf.mxu3 }
  0xc4   :  { %v4754_v6 = vadd.f32 %v4725_v41, %v899_v1  ;;  %v4756_v7 = vpop.f32.mrf.mxu0  ;;  %v832_v8 = vpop.f32.mrf.mxu1  ;;  %v4765_v14 = vadd.f32 %v4725_v41, %v954_v2 }
  0xc5   :  { %v4768_v15 = vadd.f32 %v4725_v41, %v832_v8 }
  0xc6   :  { %9837 = vst [vmem:[#allocation20_spill] sm:$0xff] %v4754_v6  ;;  %v1178_v11 = vmul.f32 %v4754_v6, %v4754_v6  ;;  %v1200_v20 = vmul.f32 %v4765_v14, %v4765_v14 }
  0xc7   :  { %871 = vmatmul.bf16.gmra.mxu1 %v4155_v3  ;;  %751 = vmatmul.bf16.gmra.mxu0 %v4131_v4  ;;  %9838 = vst [vmem:[#allocation21_spill] sm:$0xff] %v4765_v14  ;;  %v1151_v22 = vmul.f32 %v4768_v15, %v4768_v15 }
  0xc8   :  { %996 = vmatmul.bf16.gmra.mxu3 %v4180_v9  ;;  %1323 = vadd.xlane.f32.xlu2 %v1150_v10 }
  0xc9   :  { %1379 = vadd.xlane.f32.xlu0 %v1178_v11  ;;  %1051 = vadd.xlane.f32.xlu1 %v1046_v13  ;;  %v4134_v11 = vld [vmem:[#allocation8 + $0x50] sm:$0xff] }
  0xca   :  { %941 = vmatmul.bf16.gmra.mxu2 %v4169_v12  ;;  %v4158_v12 = vld [vmem:[#allocation8 + $0x110] sm:$0xff] }
  0xcb   :  { %v902_v16 = vpop.f32.mrf.mxu2  ;;  %v4770_v17 = vpop.f32.mrf.mxu3 }
  0xcc   :  { %v4772_v18 = vpop.f32.mrf.mxu0  ;;  %v834_v19 = vpop.f32.mrf.mxu1  ;;  %v4784_v24 = vadd.f32 %v4725_v41, %v902_v16 }
  0xcd   :  { %v4777_v21 = vadd.f32 %v4725_v41, %v834_v19 }
  0xce   :  { %9839 = vst [vmem:[#allocation22_spill] sm:$0xff] %v4784_v24  ;;  %v1179_v33 = vmul.f32 %v4784_v24, %v4784_v24 }
  0xcf   :  { %v1152_v23 = vmul.f32 %v4777_v21, %v4777_v21 }
  0xd0   :  { %1423 = vadd.xlane.f32.xlu2 %v1200_v20  ;;  %v4183_v20 = vld [vmem:[#allocation8 + $0x1d8] sm:$0xff] }
  0xd1   :  { %1325 = vadd.xlane.f32.xlu0 %v1151_v22  ;;  %1327 = vadd.xlane.f32.xlu1 %v1152_v23 }
  0xd3   :  { %v904_v25 = vpop.f32.mrf.mxu2  ;;  %v4786_v26 = vpop.f32.mrf.mxu3 }
  0xd4   :  { %v4789_v29 = vadd.f32 %v4725_v41, %v904_v25  ;;  %v717_v30 = vpop.f32.mrf.mxu0  ;;  %v4791_v31 = vpop.f32.mrf.mxu1 }
  0xd5   :  { %v4796_v34 = vadd.f32 %v4725_v41, %v717_v30 }
  0xd6   :  { %9840 = vst [vmem:[#allocation23_spill] sm:$0xff] %v4789_v29  ;;  %v1180_v35 = vmul.f32 %v4789_v29, %v4789_v29 }
  0xd7   :  { %9841 = vst [vmem:[#allocation24_spill] sm:$0xff] %v4796_v34  ;;  %876 = vmatmul.bf16.gmra.mxu1 %v4156_v27  ;;  %756 = vmatmul.bf16.gmra.mxu0 %v4132_v28  ;;  %v1105_v37 = vmul.f32 %v4796_v34, %v4796_v34 }
  0xd8   :  { %1001 = vmatmul.bf16.gmra.mxu3 %v4181_v32  ;;  %1381 = vadd.xlane.f32.xlu2 %v1179_v33 }
  0xd9   :  { %1383 = vadd.xlane.f32.xlu0 %v1180_v35  ;;  %1233 = vadd.xlane.f32.xlu1 %v1105_v37 }
  0xda   :  { %946 = vmatmul.bf16.gmra.mxu2 %v4170_v36 }
  0xdb   :  { %v907_v38 = vpop.f32.mrf.mxu2  ;;  %v4802_v39 = vpop.f32.mrf.mxu3 }
  0xdc   :  { %v4805_v40 = vadd.f32 %v4725_v41, %v907_v38  ;;  %v719_v42 = vpop.f32.mrf.mxu0  ;;  %v4807_v43 = vpop.f32.mrf.mxu1  ;;  %v4135_v38 = vld [vmem:[#allocation8 + $0x58] sm:$0xff] }
  0xdd   :  { %v4812_v45 = vadd.f32 %v4725_v41, %v719_v42  ;;  %v4159_v42 = vld [vmem:[#allocation8 + $0x118] sm:$0xff] }
  0xde   :  { %9842 = vst [vmem:[#allocation25_spill] sm:$0xff] %v4805_v40  ;;  %v1181_v44 = vmul.f32 %v4805_v40, %v4805_v40 }
  0xdf   :  { %9843 = vst [vmem:[#allocation26_spill] sm:$0xff] %v4812_v45  ;;  %v1106_v58 = vmul.f32 %v4812_v45, %v4812_v45 }
  0xe0   :  { %1385 = vadd.xlane.f32.xlu2 %v1181_v44 }
  0xe3   :  { %v909_v46 = vpop.f32.mrf.mxu2  ;;  %v4814_v47 = vpop.f32.mrf.mxu3 }
  0xe4   :  { %v4817_v51 = vadd.f32 %v4725_v41, %v909_v46  ;;  %v722_v53 = vpop.f32.mrf.mxu0  ;;  %v4819_v54 = vpop.f32.mrf.mxu1 }
  0xe5   :  { %v4826_v60 = vadd.f32 %v4725_v41, %v722_v53 }
  0xe6   :  { %9844 = vst [vmem:[#allocation27_spill] sm:$0xff] %v4817_v51  ;;  %v1182_v59 = vmul.f32 %v4817_v51, %v4817_v51 }
  0xe7   :  { %761 = vmatmul.bf16.gmra.mxu0 %v4133_v48  ;;  %881 = vmatmul.bf16.gmra.mxu1 %v4157_v49  ;;  %9845 = vst [vmem:[#allocation28_spill] sm:$0xff] %v4826_v60  ;;  %v1107_v4 = vmul.f32 %v4826_v60, %v4826_v60  ;;  %v4184_v49 = vld [vmem:[#allocation8 + $0x1e0] sm:$0xff] }
  0xe8   :  { %1006 = vmatmul.bf16.gmra.mxu3 %v4182_v55  ;;  %1235 = vadd.xlane.f32.xlu2 %v1106_v58 }
  0xe9   :  { %1387 = vadd.xlane.f32.xlu0 %v1182_v59 }
  0xeb   :  { %v912_v61 = vpop.f32.mrf.mxu2  ;;  %v4828_v62 = vpop.f32.mrf.mxu3 }
  0xec   :  { %v4831_v63 = vadd.f32 %v4725_v41, %v912_v61  ;;  %v724_v1 = vpop.f32.mrf.mxu0  ;;  %v4833_v2 = vpop.f32.mrf.mxu1 }
  0xed   :  { %v4840_v8 = vadd.f32 %v4725_v41, %v724_v1 }
  0xee   :  { %9846 = vst [vmem:[#allocation29_spill] sm:$0xff] %v4831_v63  ;;  %v1183_v3 = vmul.f32 %v4831_v63, %v4831_v63 }
  0xef   :  { %9847 = vst [vmem:[#allocation30_spill] sm:$0xff] %v4840_v8  ;;  %v1108_v23 = vmul.f32 %v4840_v8, %v4840_v8 }
  0xf0   :  { %1389 = vadd.xlane.f32.xlu1 %v1183_v3 }
  0xf1   :  { %1237 = vadd.xlane.f32.xlu0 %v1107_v4 }
  0xf3   :  { %v914_v9 = vpop.f32.mrf.mxu2  ;;  %v4842_v10 = vpop.f32.mrf.mxu3 }
  0xf4   :  { %v4845_v13 = vadd.f32 %v4725_v41, %v914_v9  ;;  %v727_v16 = vpop.f32.mrf.mxu0  ;;  %v4847_v19 = vpop.f32.mrf.mxu1 }
  0xf5   :  { %v4854_v25 = vadd.f32 %v4725_v41, %v727_v16 }
  0xf6   :  { %9848 = vst [vmem:[#allocation31_spill] sm:$0xff] %v4845_v13  ;;  %v1184_v22 = vmul.f32 %v4845_v13, %v4845_v13 }
  0xf7   :  { %766 = vmatmul.bf16.gmra.mxu0 %v4134_v11  ;;  %886 = vmatmul.bf16.gmra.mxu1 %v4158_v12  ;;  %9849 = vst [vmem:[#allocation32_spill] sm:$0xff] %v4854_v25  ;;  %v1109_v35 = vmul.f32 %v4854_v25, %v4854_v25 }
  0xf8   :  { %1011 = vmatmul.bf16.gmra.mxu3 %v4183_v20  ;;  %1391 = vadd.xlane.f32.xlu2 %v1184_v22  ;;  %v4136_v20 = vld [vmem:[#allocation8 + $0x60] sm:$0xff] }
  0xf9   :  { %1239 = vadd.xlane.f32.xlu1 %v1108_v23 }
  0xfb   :  { %v4856_v27 = vpop.f32.mrf.mxu3  ;;  %v4858_v28 = vpop.f32.mrf.mxu2 }
  0xfc   :  { %v729_v30 = vpop.f32.mrf.mxu0  ;;  %v4860_v32 = vpop.f32.mrf.mxu1 }
  0xfd   :  { %v4863_v33 = vadd.f32 %v4725_v41, %v729_v30 }
  0xff   :  { %9850 = vst [vmem:[#allocation33_spill] sm:$0xff] %v4863_v33  ;;  %v1110_v36 = vmul.f32 %v4863_v33, %v4863_v33 }
 0x101   :  { %1241 = vadd.xlane.f32.xlu1 %v1109_v35  ;;  %1243 = vadd.xlane.f32.xlu2 %v1110_v36  ;;  %v4185_v35 = vld [vmem:[#allocation8 + $0x1e8] sm:$0xff] }
 0x103   :  { %v4869_v37 = vpop.f32.mrf.mxu3  ;;  %v4871_v44 = vpop.f32.mrf.mxu2 }
 0x104   :  { %v732_v46 = vpop.f32.mrf.mxu0  ;;  %v852_v48 = vpop.f32.mrf.mxu1 }
 0x105   :  { %v4874_v53 = vadd.f32 %v4725_v41, %v732_v46  ;;  %v4879_v58 = vadd.f32 %v4725_v41, %v852_v48 }
 0x107   :  { %9851 = vst [vmem:[#allocation34_spill] sm:$0xff] %v4874_v53  ;;  %771 = vmatmul.bf16.gmra.mxu0 %v4135_v38  ;;  %891 = vmatmul.bf16.gmra.mxu1 %v4159_v42  ;;  %v1111_v55 = vmul.f32 %v4874_v53, %v4874_v53  ;;  %v1159_v9 = vmul.f32 %v4879_v58, %v4879_v58 }
 0x108   :  { %1016 = vmatmul.bf16.gmra.mxu3 %v4184_v49  ;;  %9852 = vst [vmem:[#allocation35_spill] sm:$0xff] %v4879_v58 }
 0x109   :  { %1245 = vadd.xlane.f32.xlu0 %v1111_v55 }
 0x10b   :  { %v4881_v59 = vpop.f32.mrf.mxu3  ;;  %v4883_v61 = vpop.f32.mrf.mxu2 }
 0x10c   :  { %v734_v1 = vpop.f32.mrf.mxu0  ;;  %v854_v3 = vpop.f32.mrf.mxu1 }
 0x10d   :  { %v4886_v4 = vadd.f32 %v4725_v41, %v734_v1  ;;  %v4893_v12 = vadd.f32 %v4725_v41, %v854_v3 }
 0x10f   :  { %9853 = vst [vmem:[#allocation36_spill] sm:$0xff] %v4886_v4  ;;  %v1112_v11 = vmul.f32 %v4886_v4, %v4886_v4  ;;  %v1160_v42 = vmul.f32 %v4893_v12, %v4893_v12 }
 0x110   :  { %9854 = vst [vmem:[#allocation37_spill] sm:$0xff] %v4893_v12  ;;  %v4186_v12 = vld [vmem:[#allocation8 + $0x1f0] sm:$0xff] }
 0x111   :  { %1247 = vadd.xlane.f32.xlu1 %v1112_v11  ;;  %1341 = vadd.xlane.f32.xlu0 %v1159_v9 }
 0x113   :  { %v4895_v16 = vpop.f32.mrf.mxu3  ;;  %v4897_v22 = vpop.f32.mrf.mxu2 }
 0x114   :  { %v737_v23 = vpop.f32.mrf.mxu0  ;;  %v857_v30 = vpop.f32.mrf.mxu1 }
 0x115   :  { %v4900_v36 = vadd.f32 %v4725_v41, %v737_v23  ;;  %v4903_v38 = vadd.f32 %v4725_v41, %v857_v30 }
 0x117   :  { %9855 = vst [vmem:[#allocation38_spill] sm:$0xff] %v4900_v36  ;;  %776 = vmatmul.bf16.gmra.mxu0 %v4136_v20  ;;  %v1113_v46 = vmul.f32 %v4900_v36, %v4900_v36  ;;  %v1161_v48 = vmul.f32 %v4903_v38, %v4903_v38 }
 0x118   :  { %9856 = vst [vmem:[#allocation39_spill] sm:$0xff] %v4903_v38  ;;  %1021 = vmatmul.bf16.gmra.mxu3 %v4185_v35 }
 0x119   :  { %1249 = vadd.xlane.f32.xlu2 %v1113_v46  ;;  %1343 = vadd.xlane.f32.xlu1 %v1160_v42  ;;  %v4137_v46 = vld [vmem:[#allocation8 + $0x68] sm:$0xff] }
 0x11a   :  { %1345 = vadd.xlane.f32.xlu0 %v1161_v48 }
 0x11b   :  { %v982_v49 = vpop.f32.mrf.mxu3  ;;  %v4911_v55 = vpop.f32.mrf.mxu2 }
 0x11c   :  { %v4914_v1 = vadd.f32 %v4725_v41, %v982_v49  ;;  %v739_v3 = vpop.f32.mrf.mxu0  ;;  %v859_v9 = vpop.f32.mrf.mxu1 }
 0x11d   :  { %v4917_v11 = vadd.f32 %v4725_v41, %v739_v3  ;;  %v4920_v20 = vadd.f32 %v4725_v41, %v859_v9 }
 0x11e   :  { %9857 = vst [vmem:[#allocation40_spill] sm:$0xff] %v4914_v1  ;;  %v1211_v23 = vmul.f32 %v4914_v1, %v4914_v1 }
 0x11f   :  { %9858 = vst [vmem:[#allocation41_spill] sm:$0xff] %v4917_v11  ;;  %v1162_v30 = vmul.f32 %v4920_v20, %v4920_v20  ;;  %v1114_v35 = vmul.f32 %v4917_v11, %v4917_v11 }
 0x120   :  { %9859 = vst [vmem:[#allocation42_spill] sm:$0xff] %v4920_v20 }
 0x121   :  { %1445 = vadd.xlane.f32.xlu2 %v1211_v23  ;;  %1347 = vadd.xlane.f32.xlu1 %v1162_v30 }
 0x122   :  { %1251 = vadd.xlane.f32.xlu0 %v1114_v35 }
 0x123   :  { %v984_v42 = vpop.f32.mrf.mxu3  ;;  %v4928_v48 = vpop.f32.mrf.mxu2 }
 0x124   :  { %v4931_v49 = vadd.f32 %v4725_v41, %v984_v42  ;;  %v742_v3 = vpop.f32.mrf.mxu0  ;;  %v862_v9 = vpop.f32.mrf.mxu1 }
 0x125   :  { %v4934_v1 = vadd.f32 %v4725_v41, %v742_v3  ;;  %v4941_v30 = vadd.f32 %v4725_v41, %v862_v9 }
 0x126   :  { %9860 = vst [vmem:[#allocation43_spill] sm:$0xff] %v4931_v49  ;;  %v1212_v20 = vmul.f32 %v4931_v49, %v4931_v49 }
 0x127   :  { %9861 = vst [vmem:[#allocation44_spill] sm:$0xff] %v4934_v1  ;;  %781 = vmatmul.bf16.gmra.mxu0 %v4137_v46  ;;  %v1115_v23 = vmul.f32 %v4934_v1, %v4934_v1  ;;  %v1163_v9 = vmul.f32 %v4941_v30, %v4941_v30 }
 0x128   :  { %1026 = vmatmul.bf16.gmra.mxu3 %v4186_v12  ;;  %9862 = vst [vmem:[#allocation45_spill] sm:$0xff] %v4941_v30  ;;  %v4187_v30 = vld [vmem:[#allocation8 + $0x1f8] sm:$0xff] }
 0x129   :  { %1253 = vadd.xlane.f32.xlu1 %v1115_v23 }
 0x12a   :  { %1447 = vadd.xlane.f32.xlu0 %v1212_v20 }
 0x12b   :  { %v987_v35 = vpop.f32.mrf.mxu3  ;;  %v4949_v46 = vpop.f32.mrf.mxu2 }
 0x12c   :  { %v4944_v42 = vadd.f32 %v4725_v41, %v987_v35  ;;  %v864_v58 = vpop.f32.mrf.mxu1  ;;  %v1322_v3 = vpop.xlane.xlu1 %1321 }
 0x12d   :  { %v4947_v38 = vadd.f32 %v4725_v41, %v864_v58  ;;  %v744_v49 = vpop.f32.mrf.mxu0 }
 0x12e   :  { %9863 = vst [vmem:[#allocation46_spill] sm:$0xff] %v4944_v42  ;;  %v1213_v12 = vmul.f32 %v4944_v42, %v4944_v42  ;;  %v4958_v23 = vadd.f32 %v4725_v41, %v744_v49  ;;  %v4960_v58 = vpop.xlane.xlu0 %1049 }
 0x12f   :  { %9864 = vst [vmem:[#allocation47_spill] sm:$0xff] %v4947_v38  ;;  %v1164_v20 = vmul.f32 %v4947_v38, %v4947_v38 }
 0x130   :  { %1449 = vadd.xlane.f32.xlu2 %v1213_v12  ;;  %9865 = vst [vmem:[#allocation48_spill] sm:$0xff] %v4958_v23  ;;  %v1116_v12 = vmul.f32 %v4958_v23, %v4958_v23  ;;  %v4139_v23 = vld [vmem:[#allocation8 + $0x78] sm:$0xff] }
 0x131   :  { %1351 = vadd.xlane.f32.xlu1 %v1164_v20 }
 0x132   :  { %1349 = vadd.xlane.f32.xlu0 %v1163_v9 }
 0x133   :  { %v989_v35 = vpop.f32.mrf.mxu3  ;;  %v4969_v20 = vpop.xlane.xlu2 %1377 }
 0x134   :  { %v4963_v6 = vadd.f32 %v4725_v41, %v989_v35  ;;  %v867_v42 = vpop.f32.mrf.mxu1  ;;  %v4965_v56 = vpop.xlane.xlu1 %1421 }
 0x135   :  { %v747_v29 = vpop.f32.mrf.mxu0  ;;  %v4973_v9 = vpop.f32.mrf.mxu2  ;;  %v4995_v1 = vadd.f32 %v4725_v41, %v867_v42 }
 0x136   :  { %9866 = vst [vmem:[#allocation49_spill] sm:$0xff] %v4963_v6  ;;  %v1214_v49 = vmul.f32 %v4963_v6, %v4963_v6  ;;  %v4976_v38 = vadd.f32 %v4725_v41, %v747_v29 }
 0x137   :  { %786 = vmatmul.bf16.gmra.mxu0 %v4138_v52  ;;  %9867 = vst [vmem:[#allocation50_spill] sm:$0xff] %v4973_v9 }
 0x138   :  { %1031 = vmatmul.bf16.gmra.mxu3 %v4187_v30  ;;  %1255 = vadd.xlane.f32.xlu2 %v1116_v12  ;;  %9868 = vst [vmem:[#allocation51_spill] sm:$0xff] %v4976_v38  ;;  %v1117_v30 = vmul.f32 %v4976_v38, %v4976_v38  ;;  %v4990_v12 = vmax.f32 %v1322_v3, 1e-24 }
 0x139   :  { %9871 = vst [vmem:[#allocation54_spill] sm:$0xff] %v4995_v1 }
 0x13a   :  { %1451 = vadd.xlane.f32.xlu0 %v1214_v49  ;;  %4231 = vrsqrt.f32 %v4990_v12  ;;  %vm2063_vm5 = vweird.f32 %v4990_v12 }
 0x13b   :  { %v992_v35 = vpop.f32.mrf.mxu3  ;;  %v1324_v49 = vpop.xlane.xlu2 %1323 }
 0x13c   :  { %v4978_v24 = vpop.xlane.xlu0 %1379  ;;  %v869_v40 = vpop.f32.mrf.mxu1  ;;  %v4981_v51 = vadd.f32 %v4725_v41, %v992_v35  ;;  %v4999_v33 = vmax.f32 %v1324_v49, 1e-24 }
 0x13d   :  { %v749_v11 = vpop.f32.mrf.mxu0  ;;  %v4983_v52 = vpop.xlane.xlu1 %1051  ;;  %v5003_v25 = vadd.f32 %v4725_v41, %v869_v40 }
 0x13e   :  { %9869 = vst [vmem:[#allocation52_spill] sm:$0xff] %v4981_v51  ;;  %v4986_v6 = vadd.f32 %v4725_v41, %v749_v11  ;;  %v1215_v29 = vmul.f32 %v4981_v51, %v4981_v51  ;;  %v937_v36 = vpop.f32.mrf.mxu2  ;;  %vm2073_vm9 = vweird.f32 %v4999_v33 }
 0x13f   :  { %9872 = vst [vmem:[#allocation55_spill] sm:$0xff] %v5003_v25  ;;  %v5014_v40 = vadd.f32 %v4725_v41, %v937_v36 }
 0x140   :  { %9870 = vst [vmem:[#allocation53_spill] sm:$0xff] %v4986_v6  ;;  %1453 = vadd.xlane.f32.xlu2 %v1215_v29  ;;  %v1118_v35 = vmul.f32 %v4986_v6, %v4986_v6  ;;  %v1166_v6 = vmul.f32 %v5003_v25, %v5003_v25 }
 0x141   :  { %9874 = vst [vmem:[#allocation57_spill] sm:$0xff] %v5014_v40 }
 0x142   :  { %1257 = vadd.xlane.f32.xlu0 %v1117_v30  ;;  %1259 = vadd.xlane.f32.xlu1 %v1118_v35  ;;  %v1165_v30 = vmul.f32 %v4995_v1, %v4995_v1  ;;  %v5018_v1 = vpop.eup %4231 }
 0x143   :  { %v994_v11 = vpop.f32.mrf.mxu3  ;;  %v2058_v36 = vmul.f32 %v5018_v1, %v4990_v12  ;;  %vm2064_vm6 = vweird.f32 %v5018_v1 }
 0x144   :  { %v1326_v38 = vpop.xlane.xlu0 %1325  ;;  %v872_v3 = vpop.f32.mrf.mxu1  ;;  %v5041_v8 = vadd.f32 %v4725_v41, %v994_v11  ;;  %vm5076_vm8 = vmor %vm2063_vm5, %vm2064_vm6 }
 0x145   :  { %v1535_v51 = vmax.f32 %v1326_v38, 1e-24  ;;  %v752_v42 = vpop.f32.mrf.mxu0  ;;  %v1328_v29 = vpop.xlane.xlu1 %1327  ;;  %v5009_v49 = vadd.f32 %v4725_v41, %v872_v3 }
 0x146   :  { %v1536_v35 = vmax.f32 %v1328_v29, 1e-24  ;;  %9878 = vst [vmem:[#allocation61_spill] sm:$0xff] %v5041_v8  ;;  %v1216_v11 = vmul.f32 %v5041_v8, %v5041_v8 }
 0x147   :  { %4233 = vrsqrt.f32 %v1535_v51  ;;  %791 = vmatmul.bf16.gmra.mxu0 %v4139_v23  ;;  %9873 = vst [vmem:[#allocation56_spill] sm:$0xff] %v5009_v49  ;;  %v1167_v38 = vmul.f32 %v5009_v49, %v5009_v49  ;;  %v939_v23 = vpop.f32.mrf.mxu2  ;;  %v1193_v49 = vmul.f32 %v5014_v40, %v5014_v40  ;;  %vm2083_vm0 = vweird.f32 %v1535_v51 }
 0x148   :  { %4235 = vrsqrt.f32 %v4999_v33  ;;  %vm2093_vm3 = vweird.f32 %v1536_v35 }
 0x149   :  { %4237 = vrsqrt.f32 %v1536_v35  ;;  %1357 = vadd.xlane.f32.xlu2 %v1167_v38 }
 0x14a   :  { %1353 = vadd.xlane.f32.xlu0 %v1165_v30  ;;  %1355 = vadd.xlane.f32.xlu1 %v1166_v6  ;;  %v5029_v30 = vadd.f32 %v4725_v41, %v939_v23  ;;  %v2059_v6 = vmul.f32 %v5018_v1, %v2058_v36  ;;  %v4140_v23 = vld [vmem:[#allocation8 + $0x80] sm:$0xff] }
 0x14b   :  { %v5020_v34 = vpop.f32.mrf.mxu3 }
 0x14c   :  { %9875 = vst [vmem:[#allocation58_spill] sm:$0xff] %v5020_v34  ;;  %v5022_v3 = vpop.f32.mrf.mxu1  ;;  %v1194_v60 = vmul.f32 %v5029_v30, %v5029_v30 }
 0x14d   :  { %v4234_v45 = vpop.eup %4233  ;;  %v754_v25 = vpop.f32.mrf.mxu0  ;;  %9876 = vst [vmem:[#allocation59_spill] sm:$0xff] %v5029_v30 }
 0x14e   :  { %v5024_v13 = vpop.eup %4235  ;;  %v2078_v29 = vmul.f32 %v4234_v45, %v1535_v51  ;;  %vm2084_vm1 = vweird.f32 %v4234_v45 }
 0x14f   :  { %v2068_v38 = vmul.f32 %v5024_v13, %v4999_v33  ;;  %v4238_v14 = vpop.eup %4237  ;;  %vm5053_vm2 = vmor %vm2083_vm0, %vm2084_vm1  ;;  %vm2074_vm10 = vweird.f32 %v5024_v13  ;;  %v5098_v33 = vpop.xlane.xlu1 %1233 }
 0x150   :  { %v2079_v63 = vmul.f32 %v4234_v45, %v2078_v29  ;;  %v2088_v53 = vmul.f32 %v4238_v14, %v1536_v35  ;;  %v942_v29 = vpop.f32.mrf.mxu2  ;;  %vm2094_vm4 = vweird.f32 %v4238_v14  ;;  %vm2075_vm11 = vmor %vm2073_vm9, %vm2074_vm10 }
 0x151   :  { %v2069_v4 = vmul.f32 %v5024_v13, %v2068_v38  ;;  %vm2095_vm7 = vmor %vm2093_vm3, %vm2094_vm4 }
 0x152   :  { %v2080_v5 = vmul.f32 0.5, %v2079_v63  ;;  %1409 = vadd.xlane.f32.xlu0 %v1193_v49  ;;  %v2089_v57 = vmul.f32 %v4238_v14, %v2088_v53  ;;  %1411 = vadd.xlane.f32.xlu1 %v1194_v60  ;;  %v2060_v63 = vmul.f32 0.5, %v2059_v6  ;;  %v5049_v49 = vadd.f32 %v4725_v41, %v752_v42 }
 0x153   :  { %v5038_v34 = vpop.f32.mrf.mxu3 }
 0x154   :  { %9877 = vst [vmem:[#allocation60_spill] sm:$0xff] %v5038_v34  ;;  %v5043_v40 = vpop.f32.mrf.mxu1  ;;  %v2081_v9 = vsub.f32 1.5, %v2080_v5  ;;  %v2090_v30 = vmul.f32 0.5, %v2089_v57  ;;  %v5058_v5 = vadd.f32 %v4725_v41, %v942_v29  ;;  %v2061_v60 = vsub.f32 1.5, %v2060_v63 }
 0x155   :  { %9879 = vst [vmem:[#allocation62_spill] sm:$0xff] %v5043_v40  ;;  %v5046_v36 = vpop.f32.mrf.mxu0  ;;  %v2070_v40 = vmul.f32 0.5, %v2069_v4  ;;  %v1119_v57 = vmul.f32 %v5049_v49, %v5049_v49  ;;  %v5073_v29 = vadd.f32 %v4725_v41, %v754_v25 }
 0x156   :  { %9880 = vst [vmem:[#allocation63_spill] sm:$0xff] %v5049_v49  ;;  %v2091_v34 = vsub.f32 1.5, %v2090_v30  ;;  %v2082_v51 = vmul.f32 %v4234_v45, %v2081_v9  ;;  %v1195_v6 = vmul.f32 %v5058_v5, %v5058_v5 }
 0x157   :  { %796 = vmatmul.bf16.gmra.mxu0 %v4140_v23  ;;  %9883 = vst [vmem:[#allocation64_spill] sm:$0xff] %v5058_v5  ;;  %v2071_v9 = vsub.f32 1.5, %v2070_v40  ;;  %v1424_v5 = vpop.xlane.xlu2 %1423 }
 0x158   :  { %v2092_v4 = vmul.f32 %v4238_v14, %v2091_v34  ;;  %v2086_v30 = vsel %vm5053_vm2, %v4234_v45, %v2082_v51  ;;  %v944_v23 = vpop.f32.mrf.mxu2  ;;  %9884 = vst [vmem:[#allocation65_spill] sm:$0xff] %v5073_v29  ;;  %v2062_v34 = vmul.f32 %v5018_v1, %v2061_v60  ;;  %v5084_v45 = vpop.xlane.xlu0 %1383  ;;  %v1120_v51 = vmul.f32 %v5073_v29, %v5073_v29 }
 0x159   :  { %v2072_v40 = vmul.f32 %v5024_v13, %v2071_v9 }
 0x15a   :  { %1455 = vadd.xlane.f32.xlu0 %v1216_v11  ;;  %1261 = vadd.xlane.f32.xlu1 %v1119_v57  ;;  %v2096_v63 = vsel %vm2095_vm7, %v4238_v14, %v2092_v4  ;;  %v2943_v11 = vmul.f32 %v2086_v30, %v4768_v15  ;;  %v4141_v14 = vld [vmem:[#allocation8 + $0x88] sm:$0xff]  ;;  %v2066_v15 = vsel %vm5076_vm8, %v5018_v1, %v2062_v34 }
 0x15b   :  { %v5062_v53 = vpop.f32.mrf.mxu3  ;;  %v2944_v38 = vmul.f32 %v2096_v63, %v4777_v21  ;;  %v5096_v21 = vadd.f32 %v4725_v41, %v5022_v3  ;;  %v2076_v1 = vsel %vm2075_vm11, %v5024_v13, %v2072_v40  ;;  %v2941_v3 = vmul.f32 %v2066_v15, %v4729_v50 }
 0x15c   :  { %v5064_v42 = vpop.f32.mrf.mxu1  ;;  %v3075_v25 = vpack.c.bf16 %v2943_v11, %v2943_v11 }
 0x15d   :  { %v759_v35 = vpop.f32.mrf.mxu0  ;;  %v3076_v60 = vpack.c.bf16 %v2944_v38, %v2944_v38  ;;  %9887 = vst [vmem:[#allocation66_spill] sm:$0xff] %v5096_v21  ;;  %v1168_v12 = vmul.f32 %v5096_v21, %v5096_v21  ;;  %v3073_v13 = vpack.c.bf16 %v2941_v3, %v2941_v3 }
 0x15e   :  { %v3273_v63 = vunpack.c.l.b16 %v3075_v25  ;;  %v2942_v25 = vmul.f32 %v2076_v1, %v4749_v0  ;;  %v5130_v1 = vadd.f32 %v4725_v41, %v759_v35 }
 0x15f   :  { %v3274_v30 = vunpack.c.l.b16 %v3076_v60 }
 0x160   :  { %v947_v38 = vpop.f32.mrf.mxu2  ;;  %v5117_v60 = vpop.xlane.xlu0 %1387  ;;  %v3074_v50 = vpack.c.bf16 %v2942_v25, %v2942_v25  ;;  %9891 = vst [vmem:[#allocation70_spill] sm:$0xff] %v5130_v1  ;;  %v4142_v25 = vld [vmem:[#allocation8 + $0x90] sm:$0xff] }
 0x161   :  { %v3314_v34 = vpack.c.b16 %v3274_v30, %v3273_v63  ;;  %v3271_v63 = vunpack.c.l.b16 %v3073_v13 }
 0x162   :  { %1413 = vadd.xlane.f32.xlu0 %v1195_v6  ;;  %1263 = vadd.xlane.f32.xlu1 %v1120_v51  ;;  %v5103_v6 = vadd.f32 %v4725_v41, %v944_v23 }
 0x163   :  { %v5089_v57 = vpop.f32.mrf.mxu3  ;;  %3383 = vmatpush.bf16.xpose.msrb.mxu3 %v3314_v34  ;;  %v5125_v15 = vpop.xlane.xlu1 %1389 }
 0x164   :  { %v5100_v4 = vpop.f32.mrf.mxu1  ;;  %9888 = vst [vmem:[#allocation67_spill] sm:$0xff] %v5103_v6  ;;  %v1196_v23 = vmul.f32 %v5103_v6, %v5103_v6 }
 0x165   :  { %v762_v9 = vpop.f32.mrf.mxu0 }
 0x166   :  { %v5106_v11 = vadd.f32 %v4725_v41, %v762_v9  ;;  %v3272_v9 = vunpack.c.l.b16 %v3074_v50 }
 0x167   :  { %801 = vmatmul.bf16.gmra.mxu0 %v4141_v14  ;;  %v5123_v14 = vadd.f32 %v4725_v41, %v5046_v36 }
 0x168   :  { %9889 = vst [vmem:[#allocation68_spill] sm:$0xff] %v5106_v11  ;;  %v1123_v51 = vmul.f32 %v5106_v11, %v5106_v11  ;;  %v3313_v3 = vpack.c.b16 %v3272_v9, %v3271_v63  ;;  %v949_v36 = vpop.f32.mrf.mxu2  ;;  %v5141_v13 = vpop.xlane.xlu0 %1237  ;;  %v5176_v11 = vmax.f32 %v4960_v58, 1e-24 }
 0x169   :  { %9890 = vst [vmem:[#allocation69_spill] sm:$0xff] %v5123_v14  ;;  %v1121_v34 = vmul.f32 %v5123_v14, %v5123_v14  ;;  %v5144_v9 = vadd.f32 %v4725_v41, %v949_v36  ;;  %v5164_v14 = vmax.f32 %v4965_v56, 1e-24  ;;  %v5178_v56 = vpop.xlane.xlu2 %1381 }
 0x16a   :  { %1359 = vadd.xlane.f32.xlu0 %v1168_v12  ;;  %1269 = vadd.xlane.f32.xlu2 %v1123_v51  ;;  %v5135_v12 = vadd.f32 %v4725_v41, %v947_v38  ;;  %v1122_v51 = vmul.f32 %v5130_v1, %v5130_v1  ;;  %vm1067_vm15 = vweird.f32 %v5176_v11 }
 0x16b   :  { %v5119_v40 = vpop.f32.mrf.mxu3  ;;  %1415 = vadd.xlane.f32.xlu1 %v1196_v23  ;;  %3384 = vmatpush.bf16.xpose.msrb.mxu3 %v3313_v3  ;;  %9893 = vst [vmem:[#allocation72_spill] sm:$0xff] %v5144_v9  ;;  %v1198_v6 = vmul.f32 %v5144_v9, %v5144_v9  ;;  %4239 = vrsqrt.f32 %v5164_v14  ;;  %vm2563_vm12 = vweird.f32 %v5164_v14 }
 0x16c   :  { %v5127_v30 = vpop.f32.mrf.mxu1  ;;  %9892 = vst [vmem:[#allocation71_spill] sm:$0xff] %v5135_v12  ;;  %v1240_v63 = vpop.xlane.xlu1 %1239  ;;  %v1197_v3 = vmul.f32 %v5135_v12, %v5135_v12  ;;  %4241 = vrsqrt.f32 %v5176_v11 }
 0x16d   :  { %v764_v0 = vpop.f32.mrf.mxu0 }
 0x172   :  { %1265 = vadd.xlane.f32.xlu0 %v1121_v34 }
 0x173   :  { %v5139_v23 = vpop.f32.mrf.mxu3  ;;  %1267 = vadd.xlane.f32.xlu1 %v1122_v51 }
 0x174   :  { %v887_v35 = vpop.f32.mrf.mxu1 }
 0x175   :  { %v767_v50 = vpop.f32.mrf.mxu0  ;;  %v5156_v51 = vadd.f32 %v4725_v41, %v887_v35 }
 0x176   :  { %v5147_v38 = vadd.f32 %v4725_v41, %v767_v50  ;;  %v5161_v50 = vadd.f32 %v4725_v41, %v764_v0  ;;  %v104_v0 = vld [vmem:[#allocation7 + $0x8] sm:$0xf] }
 0x177   :  { %806 = vmatmul.bf16.gmra.mxu0 %v4142_v25  ;;  %9895 = vst [vmem:[#allocation74_spill] sm:$0xff] %v5156_v51  ;;  %v1173_v9 = vmul.f32 %v5156_v51, %v5156_v51 }
 0x178   :  { %9894 = vst [vmem:[#allocation73_spill] sm:$0xff] %v5147_v38  ;;  %v1125_v34 = vmul.f32 %v5147_v38, %v5147_v38  ;;  %v1124_v35 = vmul.f32 %v5161_v50, %v5161_v50 }
 0x179   :  { %9897 = vst [vmem:[#allocation76_spill] sm:$0xff] %v5161_v50 }
 0x17a   :  { %1417 = vadd.xlane.f32.xlu0 %v1197_v3  ;;  %1273 = vadd.xlane.f32.xlu2 %v1125_v34  ;;  %v5168_v3 = vpop.xlane.xlu1 %1241 }
 0x17b   :  { %v5158_v36 = vpop.f32.mrf.mxu3  ;;  %1419 = vadd.xlane.f32.xlu1 %v1198_v6  ;;  %v4143_v6 = vld [vmem:[#allocation8 + $0x98] sm:$0xff] }
 0x17c   :  { %9896 = vst [vmem:[#allocation75_spill] sm:$0xff] %v5158_v36  ;;  %v889_v1 = vpop.f32.mrf.mxu1  ;;  %v1246_v12 = vpop.xlane.xlu0 %1245 }
 0x17d   :  { %v769_v25 = vpop.f32.mrf.mxu0 }
 0x17e   :  { %v5181_v51 = vadd.f32 %v4725_v41, %v769_v25  ;;  %v5195_v25 = vpop.eup %4239 }
 0x17f   :  { %vm2564_vm13 = vweird.f32 %v5195_v25 }
 0x180   :  { %9899 = vst [vmem:[#allocation78_spill] sm:$0xff] %v5181_v51  ;;  %vm5432_vm14 = vmor %vm2563_vm12, %vm2564_vm13 }
 0x182   :  { %1271 = vadd.xlane.f32.xlu0 %v1124_v35  ;;  %1369 = vadd.xlane.f32.xlu2 %v1173_v9  ;;  %v713_v9 = vadd.f32 %v4725_v41, %v4756_v7  ;;  %v1039_v35 = vunpack.c.l.bf16 %v104_v0  ;;  %v1126_v7 = vmul.f32 %v5181_v51, %v5181_v51  ;;  %v5222_v51 = vadd.f32 %v4725_v41, %v4772_v18 }
 0x183   :  { %v5173_v34 = vpop.f32.mrf.mxu3 }
 0x184   :  { %9898 = vst [vmem:[#allocation77_spill] sm:$0xff] %v5173_v34  ;;  %v892_v38 = vpop.f32.mrf.mxu1  ;;  %v5186_v21 = vpop.xlane.xlu0 %1341  ;;  %v5208_v0 = vadd.f32 %v1039_v35, %v713_v9  ;;  %v5230_v9 = vmax.f32 %v1424_v5, 1e-24  ;;  %v5248_v5 = vadd.f32 %v4725_v41, %v4807_v43 }
 0x185   :  { %v772_v8 = vpop.f32.mrf.mxu0  ;;  %v5184_v50 = vadd.f32 %v4725_v41, %v892_v38  ;;  %v5199_v38 = vmax.f32 %v4969_v20, 1e-24  ;;  %v1248_v49 = vpop.xlane.xlu1 %1247  ;;  %v5218_v20 = vadd.f32 %v4725_v41, %v889_v1  ;;  %v5234_v1 = vadd.f32 %v4725_v41, %v4791_v31 }
 0x186   :  { %v5191_v29 = vadd.f32 %v4725_v41, %v772_v8  ;;  %v5206_v8 = vmax.f32 %v4978_v24, 1e-24  ;;  %9904 = vst [vmem:[#allocation83_spill] sm:$0xff] %v5208_v0  ;;  %v5226_v24 = vadd.f32 %v4725_v41, %v4786_v26  ;;  %v5244_v26 = vadd.f32 %v4725_v41, %v4802_v39 }
 0x187   :  { %9900 = vst [vmem:[#allocation79_spill] sm:$0xff] %v5184_v50  ;;  %811 = vmatmul.bf16.gmra.mxu0 %v4143_v6  ;;  %v1175_v58 = vmul.f32 %v5184_v50, %v5184_v50  ;;  %v5212_v6 = vadd.f32 %v4725_v41, %v4770_v17  ;;  %v5215_v50 = vmax.f32 %v4983_v52, 1e-24  ;;  %v2558_v17 = vmul.f32 %v5195_v25, %v5164_v14 }
 0x188   :  { %9901 = vst [vmem:[#allocation80_spill] sm:$0xff] %v5191_v29  ;;  %v1127_v34 = vmul.f32 %v5191_v29, %v5191_v29  ;;  %4243 = vrsqrt.f32 %v5199_v38  ;;  %v5251_v35 = vmax.f32 %v1248_v49, 1e-24  ;;  %v1174_v43 = vmul.f32 %v5218_v20, %v5218_v20  ;;  %v5268_v49 = vpop.xlane.xlu2 %1385 }
 0x189   :  { %9902 = vst [vmem:[#allocation81_spill] sm:$0xff] %v5199_v38  ;;  %4245 = vrsqrt.f32 %v5206_v8  ;;  %v5270_v29 = vmax.f32 %v1246_v12, 1e-24  ;;  %v5289_v12 = vadd.f32 %v4725_v41, %v4828_v62  ;;  %vm1077_vm3 = vweird.f32 %v5215_v50 }
 0x18a   :  { %9903 = vst [vmem:[#allocation82_spill] sm:$0xff] %v5206_v8  ;;  %1277 = vadd.xlane.f32.xlu1 %v1127_v34  ;;  %1275 = vadd.xlane.f32.xlu0 %v1126_v7  ;;  %v5237_v34 = vmax.f32 %v1240_v63, 1e-24  ;;  %v5255_v63 = vpop.eup %4241  ;;  %4247 = vrsqrt.f32 %v5215_v50  ;;  %v5259_v7 = vmax.f32 %v5141_v13, 1e-24  ;;  %v5276_v13 = vadd.f32 %v4725_v41, %v4814_v47 }
 0x18b   :  { %9905 = vst [vmem:[#allocation84_spill] sm:$0xff] %v5212_v6  ;;  %1373 = vadd.xlane.f32.xlu2 %v1175_v58  ;;  %v1017_v52 = vpop.f32.mrf.mxu3  ;;  %4249 = vrsqrt.f32 %v5230_v9  ;;  %vm1068_vm0 = vweird.f32 %v5255_v63  ;;  %vm1693_vm11 = vweird.f32 %v5251_v35 }
 0x18c   :  { %9906 = vst [vmem:[#allocation85_spill] sm:$0xff] %v5218_v20  ;;  %v5240_v18 = vadd.f32 %v4725_v41, %v1017_v52  ;;  %v2559_v52 = vmul.f32 %v5195_v25, %v2558_v17  ;;  %v894_v36 = vpop.f32.mrf.mxu1  ;;  %v5284_v17 = vadd.f32 %v4725_v41, %v4833_v2  ;;  %4251 = vrsqrt.f32 %v5237_v34  ;;  %vm5503_vm1 = vmor %vm1067_vm15, %vm1068_vm0 }
 0x18d   :  { %9907 = vst [vmem:[#allocation86_spill] sm:$0xff] %v5226_v24  ;;  %v774_v31 = vpop.f32.mrf.mxu0  ;;  %v5253_v58 = vpop.xlane.xlu0 %1345  ;;  %4253 = vrsqrt.f32 %v5251_v35  ;;  %v5300_v2 = vadd.f32 %v4725_v41, %v4842_v10  ;;  %v5304_v20 = vadd.f32 %v4725_v41, %v4847_v19  ;;  %v5320_v10 = vadd.f32 %v4725_v41, %v4860_v32  ;;  %v5336_v32 = vld [vmem:[%s9430_s5] ss:$0 sm:$0xff] }
 0x18e   :  { %9908 = vst [vmem:[#allocation87_spill] sm:$0xff] %v5234_v1  ;;  %v5262_v39 = vadd.f32 %v4725_v41, %v774_v31  ;;  %v1225_v1 = vmul.f32 %v5240_v18, %v5240_v18  ;;  %v5280_v31 = vadd.f32 %v4725_v41, %v4819_v54  ;;  %v5296_v54 = vpop.eup %4243  ;;  %4255 = vrsqrt.f32 %v5259_v7  ;;  %v5307_v62 = vpop.xlane.xlu1 %1343 }
 0x18f   :  { %9909 = vst [vmem:[#allocation88_spill] sm:$0xff] %v5240_v18  ;;  %v1062_v18 = vmul.f32 %v5255_v63, %v5176_v11  ;;  %v2560_v19 = vmul.f32 0.5, %v2559_v52  ;;  %4257 = vrsqrt.f32 %v5270_v29  ;;  %v5340_v52 = vadd.f32 %v5336_v32, %v4871_v44 }
 0x190   :  { %9910 = vst [vmem:[#allocation89_spill] sm:$0xff] %v5244_v26  ;;  %v1128_v47 = vmul.f32 %v5262_v39, %v5262_v39  ;;  %v5359_v44 = vmul.f32 %v5280_v31, %v5280_v31  ;;  %v5521_v11 = vmax.f32 %v5268_v49, 1e-24  ;;  %vm1653_vm8 = vweird.f32 %v5237_v34 }
 0x191   :  { %9911 = vst [vmem:[#allocation90_spill] sm:$0xff] %v5248_v5  ;;  %vm1643_vm12 = vweird.f32 %v5259_v7  ;;  %vm1683_vm15 = vweird.f32 %v5270_v29 }
 0x192   :  { %9912 = vst [vmem:[#allocation91_spill] sm:$0xff] %v5253_v58  ;;  %1473 = vadd.xlane.f32.xlu1 %v1225_v1  ;;  %1371 = vadd.xlane.f32.xlu0 %v1174_v43  ;;  %v4144_v1 = vld [vmem:[#allocation8 + $0xa0] sm:$0xff] }
 0x193   :  { %9913 = vst [vmem:[#allocation92_spill] sm:$0xff] %v5255_v63  ;;  %1279 = vadd.xlane.f32.xlu2 %v1128_v47  ;;  %v5344_v47 = vmul.f32 %v5284_v17, %v5284_v17 }
 0x194   :  { %9914 = vst [vmem:[#allocation93_spill] sm:$0xff] %v5262_v39  ;;  %v5312_v39 = vpop.eup %4245 }
 0x195   :  { %9915 = vst [vmem:[#allocation94_spill] sm:$0xff] %v5276_v13  ;;  %v5310_v13 = vadd.f32 %v4725_v41, %v894_v36  ;;  %v5323_v43 = vpop.eup %4247  ;;  %v5327_v36 = vadd.f32 %v4725_v41, %v4869_v37  ;;  %v5350_v37 = vadd.f32 %v5336_v32, %v4881_v59  ;;  %v5355_v58 = vpop.xlane.xlu0 %1251  ;;  %v5369_v59 = vadd.f32 %v5336_v32, %v4883_v61 }
 0x196   :  { %9916 = vst [vmem:[#allocation95_spill] sm:$0xff] %v5280_v31  ;;  %v5346_v26 = vpop.eup %4249  ;;  %v5380_v31 = vadd.f32 %v5336_v32, %v4897_v22  ;;  %v5388_v61 = vmul.f32 %v5304_v20, %v5304_v20  ;;  %v5398_v22 = vadd.f32 %v5336_v32, %v4928_v48  ;;  %vm1078_vm2 = vweird.f32 %v5323_v43 }
 0x197   :  { %9917 = vst [vmem:[#allocation96_spill] sm:$0xff] %v5284_v17  ;;  %v5361_v17 = vpop.eup %4251  ;;  %816 = vmatmul.bf16.gmra.mxu0 %v4144_v1  ;;  %v5406_v1 = vmul.f32 %v5327_v36, %v5327_v36  ;;  %vm2574_vm4 = vweird.f32 %v5346_v26 }
 0x198   :  { %9918 = vst [vmem:[#allocation97_spill] sm:$0xff] %v5289_v12  ;;  %v5316_v12 = vadd.f32 %v4725_v41, %v4856_v27  ;;  %v5331_v27 = vadd.f32 %v4725_v41, %v4858_v28  ;;  %v1063_v41 = vmul.f32 %v5255_v63, %v1062_v18  ;;  %v2338_v28 = vmul.f32 %v5296_v54, %v5199_v38 }
 0x199   :  { %9919 = vst [vmem:[#allocation98_spill] sm:$0xff] %v5296_v54  ;;  %v1176_v38 = vmul.f32 %v5310_v13, %v5310_v13  ;;  %v1648_v48 = vmul.f32 %v5361_v17, %v5237_v34  ;;  %vm1654_vm5 = vweird.f32 %v5361_v17 }
 0x19a   :  { %9920 = vst [vmem:[#allocation99_spill] sm:$0xff] %v5300_v2  ;;  %v1019_v2 = vpop.f32.mrf.mxu3  ;;  %vm5570_vm9 = vmor %vm1653_vm8, %vm1654_vm5 }
 0x19b   :  { %9921 = vst [vmem:[#allocation100_spill] sm:$0xff] %v5304_v20  ;;  %v5372_v18 = vadd.f32 %v5336_v32, %v1019_v2  ;;  %v1064_v20 = vmul.f32 0.5, %v1063_v41  ;;  %1375 = vadd.xlane.f32.xlu0 %v1176_v38  ;;  %v5423_v41 = vmul.f32 %v5350_v37, %v5350_v37  ;;  %v2568_v38 = vmul.f32 %v5346_v26, %v5230_v9  ;;  %vm5653_vm5 = vmor %vm1077_vm3, %vm1078_vm2 }
 0x19c   :  { %9922 = vst [vmem:[#allocation101_spill] sm:$0xff] %v5310_v13  ;;  %v5394_v13 = vadd.f32 %v5336_v32, %v4911_v55  ;;  %v5413_v55 = vpop.xlane.xlu2 %1235  ;;  %vm2573_vm2 = vweird.f32 %v5230_v9 }
 0x19d   :  { %9923 = vst [vmem:[#allocation102_spill] sm:$0xff] %v5312_v39  ;;  %v5456_v6 = vpop.xlane.xlu0 %1447  ;;  %vm5675_vm3 = vmor %vm2573_vm2, %vm2574_vm4 }
 0x19e   :  { %9924 = vst [vmem:[#allocation103_spill] sm:$0xff] %v5316_v12 }
 0x19f   :  { %9925 = vst [vmem:[#allocation104_spill] sm:$0xff] %v5320_v10 }
 0x1a0   :  { %9926 = vst [vmem:[#allocation105_spill] sm:$0xff] %v5327_v36  ;;  %v1226_v36 = vmul.f32 %v5372_v18, %v5372_v18 }
 0x1a1   :  { %9927 = vst [vmem:[#allocation106_spill] sm:$0xff] %v5331_v27  ;;  %v777_v27 = vpop.f32.mrf.mxu0 }
 0x1a2   :  { %9928 = vst [vmem:[#allocation107_spill] sm:$0xff] %v5340_v52  ;;  %v5365_v52 = vadd.f32 %v5336_v32, %v4895_v16  ;;  %v5384_v16 = vmul.f32 %v5320_v10, %v5320_v10  ;;  %1475 = vadd.xlane.f32.xlu2 %v1226_v36  ;;  %v1649_v36 = vmul.f32 %v5361_v17, %v1648_v48 }
 0x1a3   :  { %9929 = vst [vmem:[#allocation108_spill] sm:$0xff] %v5344_v47  ;;  %v5376_v47 = vpop.eup %4253 }
 0x1a4   :  { %9930 = vst [vmem:[#allocation109_spill] sm:$0xff] %v5350_v37  ;;  %v5390_v2 = vpop.eup %4255  ;;  %v5441_v37 = vadd.f32 %v5336_v32, %v777_v27  ;;  %vm1694_vm6 = vweird.f32 %v5376_v47 }
 0x1a5   :  { %9931 = vst [vmem:[#allocation110_spill] sm:$0xff] %v5355_v58  ;;  %v5408_v10 = vpop.eup %4257  ;;  %v5451_v58 = vadd.f32 %v5336_v32, %v4949_v46  ;;  %vm1644_vm7 = vweird.f32 %v5390_v2  ;;  %vm5591_vm13 = vmor %vm1693_vm11, %vm1694_vm6 }
 0x1a6   :  { %9932 = vst [vmem:[#allocation111_spill] sm:$0xff] %v5359_v44  ;;  %v2561_v44 = vsub.f32 1.5, %v2560_v19  ;;  %v5402_v19 = vmul.f32 %v5316_v12, %v5316_v12  ;;  %v1688_v12 = vmul.f32 %v5376_v47, %v5251_v35  ;;  %vm1684_vm10 = vweird.f32 %v5408_v10 }
 0x1a7   :  { %9933 = vst [vmem:[#allocation112_spill] sm:$0xff] %v5365_v52  ;;  %vm5622_vm0 = vmor %vm1683_vm15, %vm1684_vm10 }
 0x1a8   :  { %9934 = vst [vmem:[#allocation113_spill] sm:$0xff] %v5369_v59  ;;  %v2562_v14 = vmul.f32 %v5195_v25, %v2561_v44  ;;  %v1638_v59 = vmul.f32 %v5390_v2, %v5259_v7  ;;  %v1678_v44 = vmul.f32 %v5408_v10, %v5270_v29  ;;  %v1689_v27 = vmul.f32 %v5376_v47, %v1688_v12 }
 0x1a9   :  { %9935 = vst [vmem:[#allocation114_spill] sm:$0xff] %v5372_v18  ;;  %v5443_v18 = vpop.xlane.xlu1 %1347  ;;  %v779_v0 = vpop.f32.mrf.mxu0  ;;  %v1129_v12 = vmul.f32 %v5441_v37, %v5441_v37 }
 0x1aa   :  { %9936 = vst [vmem:[#allocation115_spill] sm:$0xff] %v5380_v31  ;;  %v2339_v31 = vmul.f32 %v5296_v54, %v2338_v28  ;;  %v2348_v28 = vmul.f32 %v5312_v39, %v5206_v8  ;;  %v5447_v8 = vmul.f32 %v5365_v52, %v5365_v52  ;;  %v2569_v52 = vmul.f32 %v5346_v26, %v2568_v38 }
 0x1ab   :  { %9937 = vst [vmem:[#allocation116_spill] sm:$0xff] %v5388_v61  ;;  %v1065_v61 = vsub.f32 1.5, %v1064_v20  ;;  %v2566_v20 = vsel %vm5432_vm14, %v5195_v25, %v2562_v14  ;;  %v5490_v38 = vmax.f32 %v5084_v45, 1e-24  ;;  %1281 = vadd.xlane.f32.xlu0 %v1129_v12  ;;  %v9958_v45 = vmov 0  ;;  %vm5599_vm14 = vmor %vm1643_vm12, %vm1644_vm7 }
 0x1ac   :  { %9938 = vst [vmem:[#allocation117_spill] sm:$0xff] %v5394_v13  ;;  %v1072_v13 = vmul.f32 %v5323_v43, %v5215_v50  ;;  %v2349_v46 = vmul.f32 %v5312_v39, %v2348_v28  ;;  %v9959_v45 = vsel %vm5503_vm1, 4294967295, %v9958_v45 }
 0x1ad   :  { %9939 = vst [vmem:[#allocation118_spill] sm:$0xff] %v5398_v22  ;;  %v5476_v48 = vmul.f32 %v5255_v63, %v1065_v61 }
 0x1ae   :  { %9940 = vst [vmem:[#allocation119_spill] sm:$0xff] %v5402_v19  ;;  %v9953_v19 = vld [vmem:[#allocation50_spill] sm:$0xff]  ;;  %v5492_v61 = vmul.f32 0.5, %v2349_v46 }
 0x1af   :  { %9941 = vst [vmem:[#allocation120_spill] sm:$0xff] %v5406_v1  ;;  %v1022_v1 = vpop.f32.mrf.mxu3  ;;  %v5480_v14 = vadd.f32 %v5336_v32, %v9953_v19  ;;  %v5497_v19 = vmax.f32 %v5125_v15, 1e-24 }
 0x1b0   :  { %9942 = vst [vmem:[#allocation121_spill] sm:$0xff] %v5423_v41  ;;  %v2340_v41 = vmul.f32 0.5, %v2339_v31  ;;  %v5454_v24 = vadd.f32 %v5336_v32, %v1022_v1  ;;  %v1073_v31 = vmul.f32 %v5323_v43, %v1072_v13  ;;  %v1639_v1 = vmul.f32 %v5390_v2, %v1638_v59  ;;  %v5482_v13 = vpop.xlane.xlu2 %1391 }
 0x1b1   :  { %9945 = vst [vmem:[#allocation122_spill] sm:$0xff] %v5441_v37  ;;  %v1690_v37 = vmul.f32 0.5, %v1689_v27  ;;  %v5511_v27 = vmax.f32 %v5098_v33, 1e-24  ;;  %v5529_v12 = vpop.xlane.xlu1 %1253  ;;  %vm2403_vm4 = vweird.f32 %v5497_v19 }
 0x1b2   :  { %9946 = vst [vmem:[#allocation123_spill] sm:$0xff] %v5443_v18  ;;  %v2341_v25 = vsub.f32 1.5, %v2340_v41  ;;  %v1227_v59 = vmul.f32 %v5454_v24, %v5454_v24  ;;  %v5494_v41 = vmul.f32 0.5, %v1073_v31  ;;  %v1640_v18 = vmul.f32 0.5, %v1639_v1  ;;  %v782_v31 = vpop.f32.mrf.mxu0  ;;  %v5526_v1 = vpop.xlane.xlu0 %1349 }
 0x1b3   :  { %9947 = vst [vmem:[#allocation124_spill] sm:$0xff] %v5447_v8  ;;  %v5470_v8 = vmax.f32 %v5178_v56, 1e-24  ;;  %v9955_v56 = vld [vmem:[#allocation18_spill] sm:$0xff]  ;;  %v5605_v7 = vadd.f32 %v5336_v32, %v782_v31  ;;  %vm1623_vm12 = vweird.f32 %v5511_v27 }
 0x1b4   :  { %9948 = vst [vmem:[#allocation125_spill] sm:$0xff] %v5451_v58  ;;  %v5487_v28 = vmul.f32 %v2566_v20, %v9955_v56  ;;  %1477 = vadd.xlane.f32.xlu1 %v1227_v59  ;;  %v5518_v46 = vmul.f32 %v5296_v54, %v2341_v25  ;;  %v1075_v56 = vsub.f32 1.5, %v5494_v41  ;;  %v9977_v54 = vld [vmem:[#allocation30_spill] sm:$0xff] }
 0x1b5   :  { %9949 = vst [vmem:[#allocation126_spill] sm:$0xff] %v5454_v24  ;;  %v4145_v24 = vld [vmem:[#allocation8 + $0xa8] sm:$0xff]  ;;  %4259 = vrsqrt.f32 %v5470_v8 }
 0x1b6   :  { %9950 = vst [vmem:[#allocation127_spill] sm:$0xff] %v5456_v6  ;;  %v1679_v6 = vmul.f32 %v5408_v10, %v1678_v44  ;;  %v1650_v44 = vmul.f32 0.5, %v1649_v36  ;;  %v5507_v36 = vmul.f32 0.5, %v2569_v52  ;;  %v5524_v52 = vadd.f32 %v5336_v32, %v779_v0  ;;  %821 = vmatmul.bf16.gmra.mxu0 %v4145_v24 }
 0x1b7   :  { %9951 = vst [vmem:[#allocation128_spill] sm:$0xff] %v5470_v8  ;;  %v1024_v58 = vpop.f32.mrf.mxu3  ;;  %4261 = vrsqrt.f32 %v5490_v38  ;;  %v1641_v0 = vsub.f32 1.5, %v1640_v18  ;;  %v1076_v63 = vmul.f32 %v5323_v43, %v1075_v56 }
 0x1b8   :  { %9952 = vst [vmem:[#allocation129_spill] sm:$0xff] %v5476_v48  ;;  %v1680_v15 = vmul.f32 0.5, %v1679_v6  ;;  %v1651_v33 = vsub.f32 1.5, %v1650_v44  ;;  %v1691_v6 = vsub.f32 1.5, %v1690_v37  ;;  %v5532_v59 = vadd.f32 %v5336_v32, %v1024_v58  ;;  %v5549_v18 = vpop.xlane.xlu2 %1243 }
 0x1b9   :  { %9954 = vst [vmem:[#allocation50_spill] sm:$0xff] %v5480_v14  ;;  %4263 = vrsqrt.f32 %v5497_v19  ;;  %v2571_v37 = vsub.f32 1.5, %v5507_v36  ;;  %v5546_v58 = vmax.f32 %v5117_v60, 1e-24  ;;  %v1130_v24 = vmul.f32 %v5524_v52, %v5524_v52 }
 0x1ba   :  { %9956 = vst [vmem:[#allocation18_spill] sm:$0xff] %v5487_v28  ;;  %4265 = vrsqrt.f32 %v5511_v27  ;;  %v1681_v44 = vsub.f32 1.5, %v1680_v15  ;;  %v1228_v36 = vmul.f32 %v5532_v59, %v5532_v59  ;;  %v1692_v15 = vmul.f32 %v5376_v47, %v1691_v6 }
 0x1bb   :  { %9957 = vst [vmem:[#allocation130_spill] sm:$0xff] %v5490_v38  ;;  %4267 = vrsqrt.f32 %v5521_v11  ;;  %v5553_v41 = vpop.eup %4259  ;;  %v1652_v25 = vmul.f32 %v5361_v17, %v1651_v33  ;;  %v5561_v60 = vmax.f32 %v5413_v55, 1e-24  ;;  %v1642_v49 = vmul.f32 %v5390_v2, %v1641_v0 }
 0x1bc   :  { %9960 = vst [vmem:[#allocation131_spill] sm:$0xff] %v9959_v45  ;;  %1283 = vadd.xlane.f32.xlu1 %v1130_v24  ;;  %1479 = vadd.xlane.f32.xlu2 %v1228_v36  ;;  %v1682_v34 = vmul.f32 %v5408_v10, %v1681_v44  ;;  %v2358_v6 = vmul.f32 %v5553_v41, %v5470_v8  ;;  %4269 = vrsqrt.f32 %v5546_v58  ;;  %v5587_v0 = vmax.f32 %v5482_v13, 1e-24  ;;  %v5607_v13 = vpop.xlane.xlu0 %1451  ;;  %v9976_v45 = vld [vmem:[#allocation36_spill] sm:$0xff] }
 0x1bd   :  { %9961 = vst [vmem:[#allocation132_spill] sm:$0xff] %v5518_v46  ;;  %v1696_v36 = vsel %vm5591_vm13, %v5376_v47, %v1692_v15  ;;  %v1656_v28 = vsel %vm5570_vm9, %v5361_v17, %v1652_v25  ;;  %4271 = vrsqrt.f32 %v5561_v60  ;;  %v1646_v56 = vsel %vm5599_vm14, %v5390_v2, %v1642_v49  ;;  %v9980_v2 = vld [vmem:[#allocation58_spill] sm:$0xff] }
 0x1be   :  { %9962 = vst [vmem:[#allocation133_spill] sm:$0xff] %v5524_v52  ;;  %v5566_v52 = vpop.eup %4261  ;;  %v1686_v25 = vsel %vm5622_vm0, %v5408_v10, %v1682_v34  ;;  %v2572_v15 = vmul.f32 %v5346_v26, %v2571_v37  ;;  %v2904_v46 = vmul.f32 %v1696_v36, %v9976_v45  ;;  %v5659_v49 = vadd.f32 %v5336_v32, %v9980_v2  ;;  %v9982_v34 = vld [vmem:[#allocation34_spill] sm:$0xff]  ;;  %v9983_v36 = vld [vmem:[#allocation28_spill] sm:$0xff] }
 0x1bf   :  { %9963 = vst [vmem:[#allocation134_spill] sm:$0xff] %v5532_v59  ;;  %v1027_v20 = vpop.f32.mrf.mxu3  ;;  %v5580_v33 = vpop.eup %4263  ;;  %v2368_v29 = vmul.f32 %v5566_v52, %v5490_v38  ;;  %v2900_v38 = vmul.f32 %v1656_v28, %v9977_v54  ;;  %v2359_v37 = vmul.f32 %v5553_v41, %v2358_v6  ;;  %4273 = vrsqrt.f32 %v5587_v0 }
 0x1c0   :  { %v5577_v55 = vadd.f32 %v5336_v32, %v1027_v20  ;;  %v784_v20 = vpop.f32.mrf.mxu0  ;;  %v5595_v44 = vpop.eup %4265  ;;  %9971 = vst [vmem:[#allocation136_spill] sm:$0xff] %v5605_v7  ;;  %v2398_v17 = vmul.f32 %v5580_v33, %v5497_v19  ;;  %v1131_v45 = vmul.f32 %v5605_v7, %v5605_v7  ;;  %v1080_v50 = vsel %vm5653_vm5, %v5323_v43, %v1076_v63 }
 0x1c1   :  { %9972 = vst [vmem:[#allocation137_spill] sm:$0xff] %v5607_v13  ;;  %v5615_v48 = vpop.eup %4267  ;;  %v5627_v35 = vadd.f32 %v5336_v32, %v784_v20  ;;  %v5634_v59 = vpop.xlane.xlu1 %1351  ;;  %v2903_v24 = vmul.f32 %v1686_v25, %v9982_v34  ;;  %v2899_v6 = vmul.f32 %v1646_v56, %v9983_v36  ;;  %v2369_v2 = vmul.f32 %v5566_v52, %v2368_v29 }
 0x1c2   :  { %9966 = vst [vmem:[#allocation135_spill] sm:$0xff] %v5577_v55  ;;  %v1229_v47 = vmul.f32 %v5577_v55, %v5577_v55  ;;  %v5643_v20 = vpop.xlane.xlu2 %1249  ;;  %v5665_v54 = vpop.eup %4269  ;;  %v2378_v63 = vmul.f32 %v5615_v48, %v5521_v11  ;;  %v2399_v9 = vmul.f32 %v5580_v33, %v2398_v17  ;;  %v2576_v25 = vsel %vm5675_vm3, %v5346_v26, %v2572_v15 }
 0x1c3   :  { %9975 = vst [vmem:[#allocation138_spill] sm:$0xff] %v5627_v35  ;;  %v1132_v55 = vmul.f32 %v5627_v35, %v5627_v35  ;;  %v3036_v29 = vpack.c.bf16 %v2904_v46, %v2904_v46  ;;  %v3032_v10 = vpack.c.bf16 %v2900_v38, %v2900_v38  ;;  %v5694_v34 = vpop.eup %4271  ;;  %v2360_v36 = vmul.f32 0.5, %v2359_v37 }
 0x1c4   :  { %9981 = vst [vmem:[#allocation36_spill] sm:$0xff] %v5659_v49  ;;  %1481 = vadd.xlane.f32.xlu1 %v1229_v47  ;;  %1285 = vadd.xlane.f32.xlu2 %v1131_v45  ;;  %v1618_v17 = vmul.f32 %v5595_v44, %v5511_v27  ;;  %v2388_v45 = vmul.f32 %v5665_v54, %v5546_v58  ;;  %v5707_v26 = vmax.f32 %v5549_v18, 1e-24  ;;  %v2370_v37 = vmul.f32 0.5, %v2369_v2  ;;  %v5714_v49 = vpop.xlane.xlu0 %1257 }
 0x1c5   :  { %1287 = vadd.xlane.f32.xlu0 %v1132_v55  ;;  %v9987_v55 = vsub.f32 1.5, %v5492_v61  ;;  %v5701_v61 = vmax.f32 %v5168_v3, 1e-24  ;;  %v3035_v46 = vpack.c.bf16 %v2903_v24, %v2903_v24  ;;  %v3031_v38 = vpack.c.bf16 %v2899_v6, %v2899_v6  ;;  %v5709_v15 = vpop.eup %4273 }
 0x1c6   :  { %v2379_v31 = vmul.f32 %v5615_v48, %v2378_v63  ;;  %v2400_v35 = vmul.f32 0.5, %v2399_v9  ;;  %v1628_v18 = vmul.f32 %v5694_v34, %v5561_v60  ;;  %v5723_v24 = vunpack.c.l.b16 %v3036_v29 }
 0x1c7   :  { %v1029_v28 = vpop.f32.mrf.mxu3  ;;  %v5689_v47 = vmul.f32 %v5312_v39, %v9987_v55  ;;  %v5725_v6 = vunpack.c.l.b16 %v3032_v10  ;;  %v2361_v2 = vsub.f32 1.5, %v2360_v36  ;;  %v1619_v63 = vmul.f32 %v5595_v44, %v1618_v17 }
 0x1c8   :  { %v5684_v43 = vadd.f32 %v5336_v32, %v1029_v28  ;;  %v787_v56 = vpop.f32.mrf.mxu0  ;;  %v9989_v28 = vld [vmem:[#allocation19_spill] sm:$0xff]  ;;  %v2389_v9 = vmul.f32 %v5665_v54, %v2388_v45  ;;  %4275 = vrsqrt.f32 %v5701_v61  ;;  %v5737_v29 = vunpack.c.l.b16 %v3031_v38 }
 0x1c9   :  { %9988 = vst [vmem:[#allocation58_spill] sm:$0xff] %v5689_v47  ;;  %v5704_v55 = vmul.f32 %v1080_v50, %v9989_v28  ;;  %v5712_v7 = vpop.xlane.xlu1 %1259  ;;  %v9991_v50 = vld [vmem:[#allocation21_spill] sm:$0xff]  ;;  %4277 = vrsqrt.f32 %v5707_v26  ;;  %v5735_v47 = vunpack.c.l.b16 %v3035_v46  ;;  %v2371_v10 = vsub.f32 1.5, %v2370_v37 }
 0x1ca   :  { %9986 = vst [vmem:[#allocation30_spill] sm:$0xff] %v5684_v43  ;;  %v1230_v3 = vmul.f32 %v5684_v43, %v5684_v43  ;;  %v5719_v28 = vmul.f32 %v2576_v25, %v9991_v50  ;;  %v2408_v43 = vmul.f32 %v5709_v15, %v5587_v0  ;;  %v5733_v25 = vpop.xlane.xlu2 %1445  ;;  %v2380_v36 = vmul.f32 0.5, %v2379_v31 }
 0x1cb   :  { %9990 = vst [vmem:[#allocation34_spill] sm:$0xff] %v5704_v55  ;;  %v2401_v39 = vsub.f32 1.5, %v2400_v35  ;;  %v1629_v45 = vmul.f32 %v5694_v34, %v1628_v18  ;;  %v2390_v38 = vmul.f32 0.5, %v2389_v9  ;;  %vm2404_vm6 = vweird.f32 %v5580_v33  ;;  %v9999_v18 = vld [vmem:[#allocation60_spill] sm:$0xff]  ;;  %v105_v9 = vld [vmem:[#allocation7 + $0xc] sm:$0xf] }
 0x1cc   :  { %9992 = vst [vmem:[#allocation28_spill] sm:$0xff] %v5719_v28  ;;  %1483 = vadd.xlane.f32.xlu2 %v1230_v3  ;;  %v5750_v35 = vadd.f32 %v5336_v32, %v787_v56  ;;  %v5756_v3 = vmul.f32 0.5, %v1619_v63  ;;  %v2409_v46 = vmul.f32 %v5709_v15, %v2408_v43  ;;  %v5777_v43 = vmul.f32 %v5553_v41, %v2361_v2  ;;  %vm5793_vm7 = vmor %vm2403_vm4, %vm2404_vm6  ;;  %v10055_v55 = vld [vmem:[#allocation97_spill] sm:$0xff]  ;;  %v10057_v28 = vld [vmem:[#allocation87_spill] sm:$0xff] }
 0x1cd   :  { %9993 = vst [vmem:[#allocation19_spill] sm:$0xff] %v5723_v24  ;;  %v2402_v63 = vmul.f32 %v5580_v33, %v2401_v39  ;;  %v5783_v56 = vmul.f32 0.5, %v1629_v45  ;;  %v5798_v2 = vmul.f32 %v5566_v52, %v2371_v10  ;;  %vm1634_vm8 = vweird.f32 %v5694_v34 }
 0x1ce   :  { %9994 = vst [vmem:[#allocation21_spill] sm:$0xff] %v5725_v6  ;;  %v5763_v8 = vpop.eup %4275  ;;  %v10001_v6 = vld [vmem:[#allocation62_spill] sm:$0xff]  ;;  %v1133_v45 = vmul.f32 %v5750_v35, %v5750_v35  ;;  %vm2413_vm9 = vweird.f32 %v5587_v0  ;;  %vm1624_vm10 = vweird.f32 %v5595_v44  ;;  %vm1633_vm11 = vweird.f32 %v5561_v60 }
 0x1cf   :  { %v1032_v50 = vpop.f32.mrf.mxu3  ;;  %9995 = vst [vmem:[#allocation139_spill] sm:$0xff] %v5735_v47  ;;  %v1658_v19 = vmul.f32 %v5763_v8, %v5701_v61  ;;  %vm2414_vm13 = vweird.f32 %v5709_v15  ;;  %vm1663_vm15 = vweird.f32 %v5701_v61  ;;  %vm1673_vm0 = vweird.f32 %v5707_v26  ;;  %vm5955_vm5 = vmor %vm1633_vm11, %vm1634_vm8 }
 0x1d0   :  { %9996 = vst [vmem:[#allocation140_spill] sm:$0xff] %v5737_v29  ;;  %v5740_v17 = vadd.f32 %v5336_v32, %v1032_v50  ;;  %v789_v13 = vpop.f32.mrf.mxu0  ;;  %v5760_v50 = vadd.f32 %v5336_v32, %v9999_v18  ;;  %v2381_v29 = vsub.f32 1.5, %v2380_v36  ;;  %v5774_v18 = vpop.eup %4277  ;;  %v2391_v36 = vsub.f32 1.5, %v2390_v38  ;;  %vm5905_vm14 = vmor %vm2413_vm9, %vm2414_vm13 }
 0x1d1   :  { %9998 = vst [vmem:[#allocation142_spill] sm:$0xff] %v5750_v35  ;;  %v5772_v31 = vpop.xlane.xlu1 %1355  ;;  %v5817_v38 = vadd.f32 %v5336_v32, %v5089_v57  ;;  %v5832_v57 = vadd.f32 %v5336_v32, %v5119_v40  ;;  %v10017_v40 = vld [vmem:[#allocation29_spill] sm:$0xff]  ;;  %v1659_v35 = vmul.f32 %v5763_v8, %v1658_v19  ;;  %v5877_v19 = vmax.f32 %v5307_v62, 1e-24  ;;  %vm5968_vm2 = vmor %vm1623_vm12, %vm1624_vm10 }
 0x1d2   :  { %9997 = vst [vmem:[#allocation141_spill] sm:$0xff] %v5740_v17  ;;  %v1231_v37 = vmul.f32 %v5740_v17, %v5740_v17  ;;  %v5769_v17 = vadd.f32 %v5336_v32, %v10001_v6  ;;  %v5787_v6 = vadd.f32 %v5336_v32, %v5064_v42  ;;  %v5813_v10 = vmul.f32 %v5615_v48, %v2381_v29 }
 0x1d3   :  { %10000 = vst [vmem:[#allocation60_spill] sm:$0xff] %v5760_v50  ;;  %v5781_v50 = vadd.f32 %v5336_v32, %v5062_v53  ;;  %v5800_v53 = vpop.xlane.xlu0 %1353  ;;  %v5828_v29 = vadd.f32 %v5336_v32, %v5100_v4  ;;  %vm1664_vm3 = vweird.f32 %v5763_v8  ;;  %vm1674_vm4 = vweird.f32 %v5774_v18 }
 0x1d4   :  { %10002 = vst [vmem:[#allocation62_spill] sm:$0xff] %v5769_v17  ;;  %1485 = vadd.xlane.f32.xlu1 %v1231_v37  ;;  %v1040_v37 = vunpack.c.l.bf16 %v105_v9  ;;  %v5810_v17 = vpop.xlane.xlu2 %1449  ;;  %v2406_v9 = vsel %vm5793_vm7, %v5580_v33, %v2402_v63  ;;  %1289 = vadd.xlane.f32.xlu2 %v1133_v45  ;;  %v5837_v33 = vmul.f32 %v5665_v54, %v2391_v36  ;;  %vm6024_vm6 = vmor %vm1663_vm15, %vm1664_vm3 }
 0x1d5   :  { %10003 = vst [vmem:[#allocation143_spill] sm:$0xff] %v5772_v31  ;;  %v5844_v63 = vadd.f32 %v5336_v32, %v789_v13  ;;  %v5851_v45 = vmul.f32 %v2406_v9, %v10017_v40  ;;  %vm6049_vm7 = vmor %vm1673_vm0, %vm1674_vm4  ;;  %v1171_v24 = vmul.f32 %v5828_v29, %v5828_v29 }
 0x1d6   :  { %10004 = vst [vmem:[#allocation144_spill] sm:$0xff] %v5777_v43  ;;  %v5847_v4 = vadd.f32 %v1040_v37, %v5222_v51  ;;  %v5865_v51 = vmul.f32 %v5398_v22, %v5398_v22  ;;  %v5874_v37 = vadd.f32 %v5336_v32, %v5139_v23  ;;  %v10027_v22 = vld [vmem:[#allocation83_spill] sm:$0xff]  ;;  %v10029_v23 = vld [vmem:[#allocation86_spill] sm:$0xff] }
 0x1d7   :  { %10005 = vst [vmem:[#allocation145_spill] sm:$0xff] %v5781_v50  ;;  %v2410_v50 = vmul.f32 0.5, %v2409_v46  ;;  %v1668_v46 = vmul.f32 %v5774_v18, %v5707_v26  ;;  %v1034_v9 = vpop.f32.mrf.mxu3  ;;  %v1134_v40 = vmul.f32 %v5844_v63, %v5844_v63 }
 0x1d8   :  { %10006 = vst [vmem:[#allocation146_spill] sm:$0xff] %v5787_v6  ;;  %v5808_v6 = vmax.f32 %v5186_v21, 1e-24  ;;  %v1631_v21 = vsub.f32 1.5, %v5783_v56  ;;  %v792_v39 = vpop.f32.mrf.mxu0  ;;  %v5841_v56 = vadd.f32 %v5336_v32, %v5127_v30 }
 0x1d9   :  { %10009 = vst [vmem:[#allocation147_spill] sm:$0xff] %v5798_v2  ;;  %v2411_v42 = vsub.f32 1.5, %v2410_v50  ;;  %v1669_v30 = vmul.f32 %v5774_v18, %v1668_v46  ;;  %v5858_v13 = vadd.f32 %v5336_v32, %v792_v39  ;;  %v5860_v36 = vpop.xlane.xlu1 %1411  ;;  %v5869_v50 = vmul.f32 %v5248_v5, %v5248_v5  ;;  %v10025_v46 = vld [vmem:[#allocation84_spill] sm:$0xff] }
 0x1da   :  { %10010 = vst [vmem:[#allocation148_spill] sm:$0xff] %v5808_v6  ;;  %4279 = vrsqrt.f32 %v5808_v6  ;;  %v5884_v39 = vmax.f32 %v5643_v20, 1e-24  ;;  %v5890_v5 = vmul.f32 %v10027_v22, %v10027_v22  ;;  %v5901_v20 = vmul.f32 %v5847_v4, %v5847_v4 }
 0x1db   :  { %10011 = vst [vmem:[#allocation149_spill] sm:$0xff] %v5817_v38  ;;  %v5894_v38 = vmul.f32 %v10029_v23, %v10029_v23  ;;  %v1670_v22 = vmul.f32 0.5, %v1669_v30  ;;  %4281 = vrsqrt.f32 %v5877_v19  ;;  %v5924_v30 = vmax.f32 %v5714_v49, 1e-24 }
 0x1dc   :  { %10012 = vst [vmem:[#allocation150_spill] sm:$0xff] %v5828_v29  ;;  %1339 = vadd.xlane.f32.xlu1 %v5384_v16  ;;  %v5881_v16 = vmul.f32 %v10025_v46, %v10025_v46  ;;  %v2412_v46 = vmul.f32 %v5709_v15, %v2411_v42  ;;  %1291 = vadd.xlane.f32.xlu2 %v1134_v40  ;;  %v1256_v0 = vpop.xlane.xlu2 %1255  ;;  %v10039_v40 = vld [vmem:[#allocation89_spill] sm:$0xff]  ;;  %4283 = vrsqrt.f32 %v5884_v39  ;;  %v10041_v49 = vsub.f32 1.5, %v5756_v3 }
 0x1dd   :  { %10013 = vst [vmem:[#allocation151_spill] sm:$0xff] %v5832_v57  ;;  %v5917_v42 = vadd.f32 %v5336_v32, %v1034_v9  ;;  %v5934_v9 = vmax.f32 %v5712_v7, 1e-24 }
 0x1de   :  { %10014 = vst [vmem:[#allocation152_spill] sm:$0xff] %v5841_v56 }
 0x1df   :  { %10015 = vst [vmem:[#allocation153_spill] sm:$0xff] %v5844_v63  ;;  %vm1753_vm3 = vweird.f32 %v5934_v9 }
 0x1e0   :  { %10016 = vst [vmem:[#allocation154_spill] sm:$0xff] %v5847_v4  ;;  %v5919_v62 = vpop.eup %4279  ;;  %v1632_v4 = vmul.f32 %v5694_v34, %v1631_v21  ;;  %v2416_v21 = vsel %vm5905_vm14, %v5709_v15, %v2412_v46  ;;  %v1232_v46 = vmul.f32 %v5917_v42, %v5917_v42 }
 0x1e1   :  { %10018 = vst [vmem:[#allocation29_spill] sm:$0xff] %v5851_v45  ;;  %v2158_v15 = vmul.f32 %v5919_v62, %v5808_v6  ;;  %v1262_v63 = vpop.xlane.xlu1 %1261  ;;  %v10072_v45 = vld [vmem:[#allocation33_spill] sm:$0xff] }
 0x1e2   :  { %10019 = vst [vmem:[#allocation155_spill] sm:$0xff] %v5858_v13 }
 0x1e3   :  { %10020 = vst [vmem:[#allocation156_spill] sm:$0xff] %v5860_v36  ;;  %v2159_v3 = vmul.f32 %v5919_v62, %v2158_v15 }
 0x1e4   :  { %10021 = vst [vmem:[#allocation157_spill] sm:$0xff] %v5865_v51  ;;  %1487 = vadd.xlane.f32.xlu2 %v1232_v46 }
 0x1e5   :  { %10022 = vst [vmem:[#allocation158_spill] sm:$0xff] %v5869_v50  ;;  %v10043_v50 = vld [vmem:[#allocation125_spill] sm:$0xff]  ;;  %v2160_v26 = vmul.f32 0.5, %v2159_v3 }
 0x1e6   :  { %10023 = vst [vmem:[#allocation159_spill] sm:$0xff] %v5874_v37  ;;  %v1622_v37 = vmul.f32 %v5595_v44, %v10041_v49  ;;  %v5949_v7 = vmul.f32 %v10043_v50, %v10043_v50  ;;  %v10050_v49 = vld [vmem:[#allocation31_spill] sm:$0xff] }
 0x1e7   :  { %10024 = vst [vmem:[#allocation160_spill] sm:$0xff] %v5877_v19 }
 0x1e8   :  { %10026 = vst [vmem:[#allocation161_spill] sm:$0xff] %v5881_v16  ;;  %v1660_v16 = vmul.f32 0.5, %v1659_v35  ;;  %v1135_v35 = vmul.f32 %v5858_v13, %v5858_v13  ;;  %v1192_v13 = vmul.f32 %v5480_v14, %v5480_v14  ;;  %v5983_v14 = vmul.f32 %v2416_v21, %v10050_v49 }
 0x1e9   :  { %10028 = vst [vmem:[#allocation162_spill] sm:$0xff] %v5890_v5  ;;  %v10034_v5 = vld [vmem:[#allocation91_spill] sm:$0xff]  ;;  %v1626_v27 = vsel %vm5968_vm2, %v5595_v44, %v1622_v37  ;;  %v10052_v37 = vld [vmem:[#allocation26_spill] sm:$0xff]  ;;  %v6005_v49 = vmax.f32 %v5733_v25, 1e-24  ;;  %vm1703_vm2 = vweird.f32 %v5884_v39 }
 0x1ea   :  { %10030 = vst [vmem:[#allocation163_spill] sm:$0xff] %v5894_v38  ;;  %v5910_v23 = vmax.f32 %v10034_v5, 1e-24  ;;  %v5912_v38 = vpop.xlane.xlu0 %1409  ;;  %v794_v5 = vpop.f32.mrf.mxu0  ;;  %1293 = vadd.xlane.f32.xlu0 %v1135_v35  ;;  %v1671_v35 = vsub.f32 1.5, %v1670_v22  ;;  %1407 = vadd.xlane.f32.xlu1 %v1192_v13  ;;  %v1636_v13 = vsel %vm5955_vm5, %v5694_v34, %v1632_v4  ;;  %v10067_v25 = vld [vmem:[#allocation123_spill] sm:$0xff]  ;;  %vm1743_vm5 = vweird.f32 %v5924_v30 }
 0x1eb   :  { %10031 = vst [vmem:[#allocation164_spill] sm:$0xff] %v5901_v20  ;;  %v5929_v20 = vmul.f32 %v10039_v40, %v10039_v40  ;;  %v1661_v40 = vsub.f32 1.5, %v1660_v16  ;;  %v10048_v16 = vld [vmem:[#allocation75_spill] sm:$0xff]  ;;  %v2898_v60 = vmul.f32 %v1636_v13, %v10052_v37  ;;  %v6079_v6 = vmax.f32 %v10067_v25, 1e-24  ;;  %v10070_v25 = vld [vmem:[#allocation32_spill] sm:$0xff] }
 0x1ec   :  { %10035 = vst [vmem:[#allocation91_spill] sm:$0xff] %v5910_v23  ;;  %4285 = vrsqrt.f32 %v5910_v23  ;;  %v5974_v22 = vadd.f32 %v5336_v32, %v10048_v16  ;;  %v5990_v16 = vpop.eup %4281  ;;  %v1672_v44 = vmul.f32 %v5774_v18, %v1671_v35  ;;  %v6031_v35 = vmax.f32 %v5529_v12, 1e-24  ;;  %v10069_v12 = vld [vmem:[#allocation121_spill] sm:$0xff] }
 0x1ed   :  { %10036 = vst [vmem:[#allocation165_spill] sm:$0xff] %v5912_v38  ;;  %4287 = vrsqrt.f32 %v5924_v30  ;;  %v1662_v4 = vmul.f32 %v5763_v8, %v1661_v40  ;;  %v5997_v21 = vpop.eup %4283  ;;  %v6012_v40 = vmul.f32 %v10055_v55, %v10055_v55  ;;  %1441 = vadd.xlane.f32.xlu2 %v10069_v12  ;;  %v2161_v12 = vsub.f32 1.5, %v2160_v26  ;;  %v10080_v38 = vld [vmem:[#allocation127_spill] sm:$0xff] }
 0x1ee   :  { %10037 = vst [vmem:[#allocation166_spill] sm:$0xff] %v5917_v42  ;;  %4289 = vrsqrt.f32 %v5934_v9  ;;  %v10054_v42 = vld [vmem:[#allocation24_spill] sm:$0xff]  ;;  %v1223_v13 = vmul.f32 %v5974_v22, %v5974_v22  ;;  %v6149_v2 = vmax.f32 %v10080_v38, 1e-24  ;;  %vm1704_vm14 = vweird.f32 %v5997_v21 }
 0x1ef   :  { %10038 = vst [vmem:[#allocation167_spill] sm:$0xff] %v5919_v62  ;;  %v1666_v55 = vsel %vm6024_vm6, %v5763_v8, %v1662_v4  ;;  %vm1723_vm6 = vweird.f32 %v6031_v35 }
 0x1f0   :  { %10040 = vst [vmem:[#allocation168_spill] sm:$0xff] %v5929_v20  ;;  %v5945_v20 = vadd.f32 %v5336_v32, %v794_v5  ;;  %v5977_v5 = vmax.f32 %v1262_v63, 1e-24  ;;  %v6000_v63 = vmax.f32 %v1256_v0, 1e-24  ;;  %v6016_v0 = vmul.f32 %v10057_v28, %v10057_v28  ;;  %v6059_v28 = vpop.xlane.xlu2 %1453 }
 0x1f1   :  { %10049 = vst [vmem:[#allocation75_spill] sm:$0xff] %v5974_v22 }
 0x1f2   :  { %10042 = vst [vmem:[#allocation169_spill] sm:$0xff] %v5945_v20  ;;  %4291 = vrsqrt.f32 %v5977_v5  ;;  %v1136_v34 = vmul.f32 %v5945_v20, %v5945_v20  ;;  %v6007_v50 = vpop.f32.mrf.mxu0  ;;  %v2897_v20 = vmul.f32 %v1626_v27, %v10054_v42  ;;  %v6018_v15 = vpop.eup %4285  ;;  %v2168_v42 = vmul.f32 %v5990_v16, %v5877_v19  ;;  %v10061_v27 = vld [vmem:[#allocation94_spill] sm:$0xff]  ;;  %1469 = vadd.xlane.f32.xlu1 %v1223_v13 }
 0x1f3   :  { %10051 = vst [vmem:[#allocation31_spill] sm:$0xff] %v5983_v14  ;;  %v6033_v46 = vpop.xlane.xlu0 %1455  ;;  %v6039_v37 = vmul.f32 %v10061_v27, %v10061_v27  ;;  %v6041_v61 = vpop.eup %4287  ;;  %v1698_v27 = vmul.f32 %v5997_v21, %v5884_v39  ;;  %4293 = vrsqrt.f32 %v6000_v63  ;;  %v2178_v51 = vmul.f32 %v6018_v15, %v5910_v23 }
 0x1f4   :  { %10053 = vst [vmem:[#allocation26_spill] sm:$0xff] %v6005_v49  ;;  %1295 = vadd.xlane.f32.xlu0 %v1136_v34  ;;  %v10065_v34 = vld [vmem:[#allocation77_spill] sm:$0xff]  ;;  %4295 = vrsqrt.f32 %v6005_v49  ;;  %v3029_v4 = vpack.c.bf16 %v2897_v20, %v2897_v20  ;;  %v2169_v3 = vmul.f32 %v5990_v16, %v2168_v42  ;;  %v10068_v20 = vld [vmem:[#allocation110_spill] sm:$0xff]  ;;  %v6096_v23 = vmul.f32 %v1666_v55, %v10070_v25 }
 0x1f5   :  { %10056 = vst [vmem:[#allocation24_spill] sm:$0xff] %v6012_v40  ;;  %v6055_v22 = vadd.f32 %v5336_v32, %v10065_v34  ;;  %v1676_v34 = vsel %vm6049_vm7, %v5774_v18, %v1672_v44  ;;  %v3030_v40 = vpack.c.bf16 %v2898_v60, %v2898_v60  ;;  %4297 = vrsqrt.f32 %v6031_v35  ;;  %1365 = vadd.xlane.f32.xlu2 %v1171_v24 }
 0x1f6   :  { %10058 = vst [vmem:[#allocation170_spill] sm:$0xff] %v6016_v0  ;;  %v1264_v0 = vpop.xlane.xlu1 %1263  ;;  %v1699_v44 = vmul.f32 %v5997_v21, %v1698_v27  ;;  %v6091_v42 = vmax.f32 %v10068_v20, 1e-24  ;;  %v2179_v27 = vmul.f32 %v6018_v15, %v2178_v51  ;;  %v6106_v14 = vmul.f32 %v1676_v34, %v10072_v45 }
 0x1f7   :  { %10062 = vst [vmem:[#allocation171_spill] sm:$0xff] %v6039_v37  ;;  %v6064_v37 = vpop.eup %4289  ;;  %v6075_v8 = vmax.f32 %v1264_v0, 1e-24  ;;  %v1738_v0 = vmul.f32 %v6041_v61, %v5924_v30  ;;  %v6098_v57 = vunpack.c.l.b16 %v3030_v40  ;;  %v6108_v20 = vunpack.c.l.b16 %v3029_v4  ;;  %v10074_v40 = vld [vmem:[#allocation116_spill] sm:$0xff]  ;;  %v10094_v30 = vld [vmem:[#allocation65_spill] sm:$0xff] }
 0x1f8   :  { %10066 = vst [vmem:[#allocation77_spill] sm:$0xff] %v6055_v22  ;;  %v6070_v19 = vpop.eup %4291  ;;  %v1748_v60 = vmul.f32 %v6064_v37, %v5934_v9  ;;  %v2170_v36 = vmul.f32 0.5, %v2169_v3  ;;  %v6116_v25 = vmul.f32 0.5, %v1699_v44  ;;  %v6120_v34 = vpop.xlane.xlu2 %1357  ;;  %v6132_v44 = vmul.f32 %v5841_v56, %v5841_v56 }
 0x1f9   :  { %v1758_v18 = vmul.f32 %v6070_v19, %v5977_v5  ;;  %4299 = vrsqrt.f32 %v6075_v8  ;;  %10071 = vst [vmem:[#allocation123_spill] sm:$0xff] %v6098_v57  ;;  %v1739_v45 = vmul.f32 %v6041_v61, %v1738_v0  ;;  %v10078_v0 = vld [vmem:[#allocation99_spill] sm:$0xff]  ;;  %vm1764_vm8 = vweird.f32 %v6070_v19 }
 0x1fa   :  { %v6101_v47 = vpop.f32.mrf.mxu0  ;;  %10073 = vst [vmem:[#allocation110_spill] sm:$0xff] %v6108_v20  ;;  %4301 = vrsqrt.f32 %v6079_v6  ;;  %v1749_v29 = vmul.f32 %v6064_v37, %v1748_v60  ;;  %v6142_v20 = vmul.f32 0.5, %v2179_v27  ;;  %v2171_v56 = vsub.f32 1.5, %v2170_v36 }
 0x1fb   :  { %v1759_v13 = vmul.f32 %v6070_v19, %v1758_v18  ;;  %v6110_v18 = vpop.eup %4293  ;;  %4303 = vrsqrt.f32 %v6091_v42  ;;  %v6127_v3 = vpop.xlane.xlu0 %1413  ;;  %10081 = vst [vmem:[#allocation116_spill] sm:$0xff] %v6149_v2  ;;  %v6153_v60 = vadd.f32 %v5336_v32, %v6007_v50  ;;  %v6158_v27 = vmul.f32 %v5919_v62, %v2161_v12 }
 0x1fc   :  { %1337 = vadd.xlane.f32.xlu0 %v10074_v40  ;;  %v6114_v51 = vpop.eup %4295  ;;  %10076 = vst [vmem:[#allocation32_spill] sm:$0xff] %v6127_v3  ;;  %v6138_v40 = vmul.f32 %v10078_v0, %v10078_v0  ;;  %v1728_v57 = vmul.f32 %v6110_v18, %v6000_v63  ;;  %v1740_v43 = vmul.f32 0.5, %v1739_v45  ;;  %v2181_v12 = vsub.f32 1.5, %v6142_v20 }
 0x1fd   :  { %v1760_v55 = vmul.f32 0.5, %v1759_v13  ;;  %10075 = vst [vmem:[#allocation121_spill] sm:$0xff] %v6114_v51  ;;  %v6124_v26 = vpop.eup %4297  ;;  %v10077_v13 = vld [vmem:[#allocation108_spill] sm:$0xff]  ;;  %v2678_v38 = vmul.f32 %v6114_v51, %v6005_v49  ;;  %v6177_v49 = vmul.f32 %v5990_v16, %v2171_v56  ;;  %4305 = vrsqrt.f32 %v6149_v2 }
 0x1fe   :  { %1335 = vadd.xlane.f32.xlu1 %v10077_v13  ;;  %10079 = vst [vmem:[#allocation33_spill] sm:$0xff] %v6138_v40  ;;  %v1718_v36 = vmul.f32 %v6124_v26, %v6031_v35  ;;  %v1224_v13 = vmul.f32 %v6055_v22, %v6055_v22  ;;  %v1729_v40 = vmul.f32 %v6110_v18, %v1728_v57  ;;  %v6184_v57 = vmax.f32 %v5810_v17, 1e-24 }
 0x1ff   :  { %v6140_v4 = vpop.eup %4299  ;;  %v1761_v3 = vsub.f32 1.5, %v1760_v55  ;;  %10082 = vst [vmem:[#allocation108_spill] sm:$0xff] %v6153_v60  ;;  %v1750_v55 = vmul.f32 0.5, %v1749_v29  ;;  %v1137_v20 = vmul.f32 %v6153_v60, %v6153_v60  ;;  %v1741_v62 = vsub.f32 1.5, %v1740_v43 }
 0x200   :  { %v1768_v0 = vmul.f32 %v6140_v4, %v6075_v8  ;;  %10083 = vst [vmem:[#allocation127_spill] sm:$0xff] %v6158_v27  ;;  %v6161_v31 = vpop.eup %4301  ;;  %vm1763_vm9 = vweird.f32 %v5977_v5  ;;  %v2679_v56 = vmul.f32 %v6114_v51, %v2678_v38  ;;  %vm1774_vm11 = vweird.f32 %v6140_v4  ;;  %1471 = vadd.xlane.f32.xlu2 %v1224_v13 }
 0x201   :  { %v1762_v45 = vmul.f32 %v6070_v19, %v1761_v3  ;;  %v6174_v27 = vpop.eup %4303  ;;  %10084 = vst [vmem:[#allocation172_spill] sm:$0xff] %v6177_v49  ;;  %v1751_v22 = vsub.f32 1.5, %v1750_v55  ;;  %v6187_v3 = vpop.xlane.xlu2 %1269  ;;  %v1719_v49 = vmul.f32 %v6124_v26, %v1718_v36  ;;  %vm6193_vm10 = vmor %vm1763_vm9, %vm1764_vm8  ;;  %v2188_v17 = vmul.f32 %v6161_v31, %v6079_v6 }
 0x202   :  { %v1769_v50 = vmul.f32 %v6140_v4, %v1768_v0  ;;  %v802_v29 = vpop.f32.mrf.mxu0  ;;  %v10085_v0 = vld [vmem:[#allocation124_spill] sm:$0xff]  ;;  %v1708_v43 = vmul.f32 %v6174_v27, %v6091_v42  ;;  %v1730_v5 = vmul.f32 0.5, %v1729_v40  ;;  %vm1744_vm12 = vweird.f32 %v6041_v61 }
 0x203   :  { %10086 = vst [vmem:[#allocation124_spill] sm:$0xff] %v6184_v57  ;;  %v1766_v55 = vsel %vm6193_vm10, %v6070_v19, %v1762_v45  ;;  %vm1773_vm13 = vweird.f32 %v6075_v8  ;;  %v6207_v38 = vpop.xlane.xlu0 %1359  ;;  %v6210_v36 = vadd.f32 %v5336_v32, %v802_v29  ;;  %4307 = vrsqrt.f32 %v6184_v57  ;;  %v6218_v45 = vpop.eup %4305  ;;  %v10091_v29 = vld [vmem:[#allocation63_spill] sm:$0xff]  ;;  %vm6228_vm4 = vmor %vm1743_vm5, %vm1744_vm12 }
 0x204   :  { %v1770_v24 = vmul.f32 0.5, %v1769_v50  ;;  %1443 = vadd.xlane.f32.xlu0 %v10085_v0  ;;  %vm1754_vm15 = vweird.f32 %v6064_v37  ;;  %vm1775_vm0 = vmor %vm1773_vm13, %vm1774_vm11  ;;  %v1742_v19 = vmul.f32 %v6041_v61, %v1741_v62  ;;  %v1752_v40 = vmul.f32 %v6064_v37, %v1751_v22  ;;  %10090 = vst [vmem:[#allocation174_spill] sm:$0xff] %v6218_v45 }
 0x205   :  { %10089 = vst [vmem:[#allocation173_spill] sm:$0xff] %v6210_v36  ;;  %v1720_v8 = vmul.f32 0.5, %v1719_v49  ;;  %v1709_v50 = vmul.f32 %v6174_v27, %v1708_v43  ;;  %v2189_v13 = vmul.f32 %v6161_v31, %v2188_v17  ;;  %v6241_v43 = vmax.f32 %v5634_v59, 1e-24  ;;  %vm6245_vm7 = vmor %vm1753_vm3, %vm1754_vm15  ;;  %v6258_v17 = vpop.xlane.xlu1 %1415 }
 0x206   :  { %v1771_v0 = vsub.f32 1.5, %v1770_v24  ;;  %1297 = vadd.xlane.f32.xlu1 %v1137_v20  ;;  %v2911_v20 = vmul.f32 %v1766_v55, %v10091_v29  ;;  %vm2393_vm8 = vweird.f32 %v5546_v58  ;;  %vm2394_vm9 = vweird.f32 %v5665_v54  ;;  %v10134_v58 = vld [vmem:[#allocation81_spill] sm:$0xff] }
 0x207   :  { %v2688_v59 = vmul.f32 %v6218_v45, %v6149_v2  ;;  %vm2383_vm10 = vweird.f32 %v5521_v11  ;;  %vm2384_vm11 = vweird.f32 %v5615_v48  ;;  %vm1714_vm12 = vweird.f32 %v6174_v27  ;;  %v10146_v2 = vld [vmem:[#allocation120_spill] sm:$0xff] }
 0x208   :  { %v1772_v24 = vmul.f32 %v6140_v4, %v1771_v0  ;;  %v1731_v0 = vsub.f32 1.5, %v1730_v5  ;;  %v1139_v5 = vmul.f32 %v6210_v36, %v6210_v36  ;;  %vm1734_vm13 = vweird.f32 %v6110_v18 }
 0x209   :  { %v6260_v55 = vpop.xlane.xlu2 %1273  ;;  %v6275_v36 = vpop.eup %4307  ;;  %4309 = vrsqrt.f32 %v6241_v43  ;;  %vm1713_vm15 = vweird.f32 %v6091_v42  ;;  %vm1733_vm5 = vweird.f32 %v6000_v63 }
 0x20a   :  { %v1776_v32 = vsel %vm1775_vm0, %v6140_v4, %v1772_v24  ;;  %v6232_v22 = vpop.f32.mrf.mxu0  ;;  %v6236_v4 = vmul.f32 %v6018_v15, %v2181_v12  ;;  %v6254_v12 = vmul.f32 0.5, %v2679_v56  ;;  %v1756_v24 = vsel %vm6245_vm7, %v6064_v37, %v1752_v40  ;;  %10099 = vst [vmem:[#allocation65_spill] sm:$0xff] %v6275_v36  ;;  %vm6293_vm3 = vmor %vm1733_vm5, %vm1734_vm13 }
 0x20b   :  { %v2912_v49 = vmul.f32 %v1776_v32, %v10094_v30  ;;  %v1721_v56 = vsub.f32 1.5, %v1720_v8  ;;  %v3043_v32 = vpack.c.bf16 %v2911_v20, %v2911_v20  ;;  %v10098_v30 = vpack.c.bf16 %v6096_v23, %v6096_v23  ;;  %v10100_v8 = vld [vmem:[#allocation51_spill] sm:$0xff]  ;;  %v10101_v23 = vld [vmem:[#allocation53_spill] sm:$0xff]  ;;  %v6300_v9 = vpop.xlane.xlu0 %1265 }
 0x20c   :  { %10095 = vst [vmem:[#allocation63_spill] sm:$0xff] %v6236_v4  ;;  %1405 = vadd.xlane.f32.xlu0 %v5949_v7  ;;  %v1746_v7 = vsel %vm6228_vm4, %v6041_v61, %v1742_v19  ;;  %v1710_v61 = vmul.f32 0.5, %v1709_v50  ;;  %v6279_v37 = vmax.f32 %v5526_v1, 1e-24  ;;  %v1732_v19 = vmul.f32 %v6110_v18, %v1731_v0  ;;  %vm6314_vm4 = vmor %vm1703_vm2, %vm1704_vm14 }
 0x20d   :  { %v3044_v29 = vpack.c.bf16 %v2912_v49, %v2912_v49  ;;  %v6273_v60 = vunpack.c.l.b16 %v10098_v30  ;;  %v2190_v40 = vmul.f32 0.5, %v2189_v13  ;;  %v2909_v20 = vmul.f32 %v1746_v7, %v10100_v8  ;;  %v10109_v8 = vld [vmem:[#allocation128_spill] sm:$0xff] }
 0x20e   :  { %1301 = vadd.xlane.f32.xlu1 %v1139_v5  ;;  %v2910_v62 = vmul.f32 %v1756_v24, %v10101_v23  ;;  %vm1724_vm0 = vweird.f32 %v6124_v26  ;;  %v2689_v50 = vmul.f32 %v6218_v45, %v2688_v59  ;;  %v10102_v1 = vsub.f32 1.5, %v6116_v25  ;;  %v10105_v5 = vld [vmem:[#allocation119_spill] sm:$0xff] }
 0x20f   :  { %v6298_v13 = vmax.f32 %v6059_v28, 1e-24  ;;  %1437 = vadd.xlane.f32.xlu2 %v10105_v5  ;;  %v3241_v7 = vunpack.c.l.b16 %v3043_v32  ;;  %v3242_v24 = vunpack.c.l.b16 %v3044_v29  ;;  %v1722_v59 = vmul.f32 %v6124_v26, %v1721_v56  ;;  %v6321_v56 = vld [vmem:[%s9430_s5] ss:$0 sm:$0xff]  ;;  %vm6335_vm2 = vmor %vm1723_vm6, %vm1724_vm0  ;;  %s4659_s5 = smov [#allocation11]  }
 0x210   :  { %v1702_v49 = vmul.f32 %v5997_v21, %v10102_v1  ;;  %v1711_v63 = vsub.f32 1.5, %v1710_v61  ;;  %v2698_v25 = vmul.f32 %v6275_v36, %v6184_v57  ;;  %4311 = vrsqrt.f32 %v6279_v37  ;;  %vm6370_vm6 = vmor %vm2393_vm8, %vm2394_vm9  ;;  %s3810_s27 = sshll.u32 %s4659_s5, 4  ;;  %s3811_s27 = int_to_ptr.vmem [resolvable:$true] %s3810_s27 }
 0x211   :  { %v1736_v28 = vsel %vm6293_vm3, %v6110_v18, %v1732_v19  ;;  %v6325_v29 = vadd.f32 %v6321_v56, %v6101_v47  ;;  %v3298_v61 = vpack.c.b16 %v3242_v24, %v3241_v7  ;;  %v3041_v18 = vpack.c.bf16 %v2909_v20, %v2909_v20  ;;  %v10112_v47 = vld [vmem:[#allocation137_spill] sm:$0xff]  ;;  %v6345_v20 = vpop.eup %4309  ;;  %v6360_v24 = vpop.xlane.xlu1 %1267  ;;  %vm6384_vm0 = vmor %vm2383_vm10, %vm2384_vm11 }
 0x212   :  { %v807_v30 = vpop.f32.mrf.mxu0  ;;  %v3042_v19 = vpack.c.bf16 %v2910_v62, %v2910_v62  ;;  %vm2363_vm7 = vweird.f32 %v10109_v8  ;;  %vm2364_vm14 = vweird.f32 %v5553_v41  ;;  %v2681_v39 = vsub.f32 1.5, %v6254_v12  ;;  %v10115_v62 = vld [vmem:[#allocation130_spill] sm:$0xff]  ;;  %vm6407_vm8 = vmor %vm1713_vm15, %vm1714_vm12 }
 0x213   :  { %10108 = vst [vmem:[#allocation51_spill] sm:$0xff] %v6325_v29  ;;  %v2191_v23 = vsub.f32 1.5, %v2190_v40  ;;  %v6340_v0 = vmax.f32 %v10112_v47, 1e-24  ;;  %vm2373_vm13 = vweird.f32 %v10115_v62  ;;  %vm2374_vm5 = vweird.f32 %v5566_v52  ;;  %3355 = vmatpush.bf16.xpose.msrb.mxu1 %v3298_v61  ;;  %vm6464_vm11 = vmor %vm2363_vm7, %vm2364_vm14 }
 0x214   :  { %1367 = vadd.xlane.f32.xlu0 %v6132_v44  ;;  %v6343_v44 = vadd.f32 %v6321_v56, %v807_v30  ;;  %v2690_v12 = vmul.f32 0.5, %v2689_v50  ;;  %4313 = vrsqrt.f32 %v6298_v13  ;;  %v1726_v35 = vsel %vm6335_vm2, %v6124_v26, %v1722_v59  ;;  %v6362_v30 = vpop.xlane.xlu2 %1369  ;;  %v10116_v50 = vld [vmem:[#allocation48_spill] sm:$0xff]  ;;  %vm6478_vm12 = vmor %vm2373_vm13, %vm2374_vm5 }
 0x215   :  { %10113 = vst [vmem:[#allocation53_spill] sm:$0xff] %v6340_v0  ;;  %v1706_v40 = vsel %vm6314_vm4, %v5997_v21, %v1702_v49  ;;  %v2699_v5 = vmul.f32 %v6275_v36, %v2698_v25  ;;  %v6358_v7 = vmax.f32 %v6120_v34, 1e-24  ;;  %v2908_v47 = vmul.f32 %v1736_v28, %v10116_v50  ;;  %v10121_v28 = vld [vmem:[#allocation44_spill] sm:$0xff] }
 0x216   :  { %10114 = vst [vmem:[#allocation119_spill] sm:$0xff] %v6343_v44  ;;  %v1712_v61 = vmul.f32 %v6174_v27, %v1711_v63  ;;  %v1138_v21 = vmul.f32 %v6325_v29, %v6325_v29  ;;  %v1141_v34 = vmul.f32 %v6343_v44, %v6343_v44  ;;  %v3239_v49 = vunpack.c.l.b16 %v3041_v18  ;;  %v6378_v25 = vpop.eup %4311 }
 0x217   :  { %v3240_v59 = vunpack.c.l.b16 %v3042_v19  ;;  %v2208_v63 = vmul.f32 %v6345_v20, %v6241_v43  ;;  %4315 = vrsqrt.f32 %v6340_v0  ;;  %v2907_v32 = vmul.f32 %v1726_v35, %v10121_v28 }
 0x218   :  { %v10122_v18 = vpack.c.bf16 %v6106_v14, %v6106_v14  ;;  %v6398_v1 = vmul.f32 %v6114_v51, %v2681_v39  ;;  %v6401_v11 = vmul.f32 %v6161_v31, %v2191_v23  ;;  %v2691_v35 = vsub.f32 1.5, %v2690_v12  ;;  %1299 = vadd.xlane.f32.xlu2 %v1138_v21  ;;  %1305 = vadd.xlane.f32.xlu1 %v1141_v34  ;;  %v10127_v14 = vld [vmem:[#allocation38_spill] sm:$0xff]  ;;  %v10131_v21 = vld [vmem:[#allocation41_spill] sm:$0xff] }
 0x219   :  { %v6412_v28 = vmul.f32 %v1706_v40, %v10127_v14  ;;  %v3040_v29 = vpack.c.bf16 %v2908_v47, %v2908_v47  ;;  %v1716_v23 = vsel %vm6407_vm8, %v6174_v27, %v1712_v61  ;;  %v2396_v42 = vsel %vm6370_vm6, %v5665_v54, %v5837_v33  ;;  %v10129_v47 = vld [vmem:[#allocation111_spill] sm:$0xff]  ;;  %v10138_v14 = vld [vmem:[#allocation25_spill] sm:$0xff] }
 0x21a   :  { %v6395_v19 = vunpack.c.l.b16 %v10122_v18  ;;  %10123 = vst [vmem:[#allocation128_spill] sm:$0xff] %v6398_v1  ;;  %v2700_v18 = vmul.f32 0.5, %v2699_v5  ;;  %v809_v39 = vpop.f32.mrf.mxu0  ;;  %v6421_v44 = vpop.eup %4313  ;;  %4317 = vrsqrt.f32 %v6358_v7  ;;  %v6425_v12 = vmax.f32 %v6207_v38, 1e-24 }
 0x21b   :  { %10124 = vst [vmem:[#allocation137_spill] sm:$0xff] %v6401_v11  ;;  %v6429_v40 = vadd.f32 %v6321_v56, %v6232_v22  ;;  %v6431_v5 = vpop.xlane.xlu0 %1417  ;;  %v3297_v27 = vpack.c.b16 %v3240_v59, %v3239_v49  ;;  %v2209_v61 = vmul.f32 %v6345_v20, %v2208_v63  ;;  %v2198_v54 = vmul.f32 %v6378_v25, %v6279_v37  ;;  %v10132_v49 = vld [vmem:[#allocation27_spill] sm:$0xff]  ;;  %v10172_v11 = vld [vmem:[#allocation32_spill] sm:$0xff] }
 0x21c   :  { %1333 = vadd.xlane.f32.xlu0 %v10129_v47  ;;  %v3039_v33 = vpack.c.bf16 %v2907_v32, %v2907_v32  ;;  %v2386_v38 = vsel %vm6384_vm0, %v5615_v48, %v5813_v10  ;;  %v6442_v26 = vmul.f32 %v6218_v45, %v2691_v35  ;;  %v6445_v22 = vmax.f32 %v6033_v46, 1e-24  ;;  %v10135_v46 = vld [vmem:[#allocation98_spill] sm:$0xff] }
 0x21d   :  { %10128 = vst [vmem:[#allocation130_spill] sm:$0xff] %v6429_v40  ;;  %3356 = vmatpush.bf16.xpose.msrb.mxu1 %v3297_v27  ;;  %v2906_v34 = vmul.f32 %v1716_v23, %v10131_v21  ;;  %v2974_v59 = vmul.f32 %v2396_v42, %v10132_v49  ;;  %v6449_v63 = vpop.eup %4315  ;;  %v2718_v32 = vmul.f32 %v6421_v44, %v6298_v13  ;;  %v6454_v50 = vmax.f32 %v5800_v53, 1e-24  ;;  %v6483_v27 = vpop.xlane.xlu1 %1419 }
 0x21e   :  { %10130 = vst [vmem:[#allocation48_spill] sm:$0xff] %v6442_v26  ;;  %v3238_v48 = vunpack.c.l.b16 %v3040_v29  ;;  %v3037_v10 = vpack.c.bf16 %v6412_v28, %v6412_v28  ;;  %vm2343_vm9 = vweird.f32 %v10134_v58  ;;  %vm2344_vm10 = vweird.f32 %v10135_v46  ;;  %v6485_v21 = vpop.xlane.xlu2 %1373 }
 0x21f   :  { %10133 = vst [vmem:[#allocation44_spill] sm:$0xff] %v6449_v63  ;;  %4319 = vrsqrt.f32 %v6425_v12  ;;  %v1140_v53 = vmul.f32 %v6429_v40, %v6429_v40  ;;  %v2973_v28 = vmul.f32 %v2386_v38, %v10138_v14  ;;  %v2701_v23 = vsub.f32 1.5, %v2700_v18  ;;  %v10142_v38 = vld [vmem:[#allocation82_spill] sm:$0xff]  ;;  %v10144_v40 = vld [vmem:[#allocation143_spill] sm:$0xff]  ;;  %vm6563_vm7 = vmor %vm2343_vm9, %vm2344_vm10 }
 0x220   :  { %v2210_v42 = vmul.f32 0.5, %v2209_v61  ;;  %v2199_v47 = vmul.f32 %v6378_v25, %v2198_v54  ;;  %10141 = vst [vmem:[#allocation38_spill] sm:$0xff] %v6485_v21  ;;  %v3237_v49 = vunpack.c.l.b16 %v3039_v33  ;;  %v6487_v29 = vpop.eup %4317  ;;  %vm2353_vm15 = vweird.f32 %v10142_v38  ;;  %v10143_v14 = vld [vmem:[#allocation102_spill] sm:$0xff] }
 0x221   :  { %vm2354_vm3 = vweird.f32 %v10143_v14  ;;  %v2708_v62 = vmul.f32 %v6449_v63, %v6340_v0  ;;  %4321 = vrsqrt.f32 %v6445_v22  ;;  %1303 = vadd.xlane.f32.xlu2 %v1140_v53  ;;  %v3038_v18 = vpack.c.bf16 %v2906_v34, %v2906_v34  ;;  %v10147_v0 = vld [vmem:[#allocation144_spill] sm:$0xff] }
 0x222   :  { %v3106_v61 = vpack.c.bf16 %v2974_v59, %v2974_v59  ;;  %v2719_v54 = vmul.f32 %v6421_v44, %v2718_v32  ;;  %v6496_v26 = vmax.f32 %v10144_v40, 1e-24  ;;  %4323 = vrsqrt.f32 %v6454_v50  ;;  %v812_v1 = vpop.f32.mrf.mxu0  ;;  %v10148_v59 = vld [vmem:[#allocation147_spill] sm:$0xff]  ;;  %vm6581_vm2 = vmor %vm2353_vm15, %vm2354_vm3 }
 0x223   :  { %v3296_v33 = vpack.c.b16 %v3238_v48, %v3237_v49  ;;  %v6500_v45 = vadd.f32 %v6321_v56, %v809_v39  ;;  %v3105_v51 = vpack.c.bf16 %v2973_v28, %v2973_v28  ;;  %v2366_v34 = vsel %vm6464_vm11, %v5553_v41, %v10147_v0  ;;  %v10151_v0 = vld [vmem:[#allocation165_spill] sm:$0xff]  ;;  %v10155_v49 = vld [vmem:[#allocation23_spill] sm:$0xff] }
 0x224   :  { %1439 = vadd.xlane.f32.xlu0 %v10146_v2  ;;  %v2376_v40 = vsel %vm6478_vm12, %v5566_v52, %v10148_v59  ;;  %v6512_v32 = vmul.f32 %v6275_v36, %v2701_v23  ;;  %v2211_v48 = vsub.f32 1.5, %v2210_v42  ;;  %v2238_v39 = vmul.f32 %v6487_v29, %v6358_v7  ;;  %v6527_v52 = vpop.xlane.xlu0 %1271  ;;  %v10154_v42 = vld [vmem:[#allocation22_spill] sm:$0xff]  ;;  %v10156_v36 = vld [vmem:[#allocation156_spill] sm:$0xff] }
 0x225   :  { %10145 = vst [vmem:[#allocation111_spill] sm:$0xff] %v6500_v45  ;;  %v6517_v2 = vadd.f32 %v6321_v56, %v812_v1  ;;  %v6519_v53 = vpop.eup %4319  ;;  %v6521_v28 = vmul.f32 0.5, %v2199_v47  ;;  %v2709_v41 = vmul.f32 %v6449_v63, %v2708_v62  ;;  %v6525_v35 = vmax.f32 %v10151_v0, 1e-24  ;;  %3357 = vmatpush.bf16.xpose.msrb.mxu1 %v3296_v33 }
 0x226   :  { %10149 = vst [vmem:[#allocation41_spill] sm:$0xff] %v6512_v32  ;;  %v6529_v8 = vunpack.c.l.b16 %v3106_v61  ;;  %4325 = vrsqrt.f32 %v6496_v26  ;;  %v3236_v23 = vunpack.c.l.b16 %v3038_v18  ;;  %v2971_v1 = vmul.f32 %v2366_v34, %v10154_v42 }
 0x227   :  { %10150 = vst [vmem:[#allocation27_spill] sm:$0xff] %v6517_v2  ;;  %v2972_v59 = vmul.f32 %v2376_v40, %v10155_v49  ;;  %v6534_v32 = vpop.eup %4321  ;;  %v2720_v47 = vmul.f32 0.5, %v2719_v54  ;;  %v6537_v62 = vmax.f32 %v10156_v36, 1e-24  ;;  %v1142_v0 = vmul.f32 %v6500_v45, %v6500_v45  ;;  %v6551_v40 = vpop.xlane.xlu1 %1277 }
 0x228   :  { %10152 = vst [vmem:[#allocation81_spill] sm:$0xff] %v6525_v35  ;;  %v6541_v57 = vunpack.c.l.b16 %v3105_v51  ;;  %v6543_v61 = vpop.eup %4323  ;;  %v6546_v33 = vmul.f32 %v6345_v20, %v2211_v48  ;;  %v2239_v18 = vmul.f32 %v6487_v29, %v2238_v39  ;;  %v2248_v34 = vmul.f32 %v6519_v53, %v6425_v12  ;;  %v6571_v49 = vpop.xlane.xlu2 %1279  ;;  %v10176_v48 = vld [vmem:[#allocation29_spill] sm:$0xff] }
 0x229   :  { %10153 = vst [vmem:[#allocation98_spill] sm:$0xff] %v6529_v8  ;;  %v1143_v36 = vmul.f32 %v6517_v2, %v6517_v2  ;;  %vm2723_vm4 = vweird.f32 %v6298_v13  ;;  %4327 = vrsqrt.f32 %v6525_v35  ;;  %1307 = vadd.xlane.f32.xlu2 %v1142_v0  ;;  %v3235_v51 = vunpack.c.l.b16 %v3037_v10 }
 0x22a   :  { %10157 = vst [vmem:[#allocation25_spill] sm:$0xff] %v6537_v62  ;;  %v6567_v39 = vmul.f32 0.5, %v2709_v41  ;;  %v2728_v42 = vmul.f32 %v6534_v32, %v6445_v22  ;;  %v814_v10 = vpop.f32.mrf.mxu0  ;;  %v3103_v0 = vpack.c.bf16 %v2971_v1, %v2971_v1  ;;  %v3104_v45 = vpack.c.bf16 %v2972_v59, %v2972_v59 }
 0x22b   :  { %10158 = vst [vmem:[#allocation82_spill] sm:$0xff] %v6541_v57  ;;  %1309 = vadd.xlane.f32.xlu1 %v1143_v36  ;;  %v2721_v54 = vsub.f32 1.5, %v2720_v47  ;;  %vm2724_vm14 = vweird.f32 %v6421_v44  ;;  %4329 = vrsqrt.f32 %v6537_v62  ;;  %v3295_v58 = vpack.c.b16 %v3236_v23, %v3235_v51  ;;  %v10166_v23 = vld [vmem:[#allocation31_spill] sm:$0xff] }
 0x22c   :  { %10159 = vst [vmem:[#allocation102_spill] sm:$0xff] %v6546_v33  ;;  %v6575_v2 = vpop.eup %4325  ;;  %v2240_v36 = vmul.f32 0.5, %v2239_v18  ;;  %v2218_v1 = vmul.f32 %v6543_v61, %v6454_v50  ;;  %v2249_v59 = vmul.f32 %v6519_v53, %v2248_v34  ;;  %v6589_v47 = vadd.f32 %v6321_v56, %v814_v10  ;;  %vm6630_vm13 = vmor %vm2723_vm4, %vm2724_vm14 }
 0x22d   :  { %10162 = vst [vmem:[#allocation143_spill] sm:$0xff] %v6571_v49  ;;  %3358 = vmatpush.bf16.xpose.msrb.mxu1 %v3295_v58  ;;  %v10167_v51 = vpack.c.bf16 %v10166_v23, %v10166_v23  ;;  %v6596_v38 = vunpack.c.l.b16 %v3103_v0  ;;  %v6598_v8 = vunpack.c.l.b16 %v3104_v45  ;;  %v10171_v49 = vld [vmem:[#allocation132_spill] sm:$0xff]  ;;  %v2201_v34 = vsub.f32 1.5, %v6521_v28 }
 0x22e   :  { %10165 = vst [vmem:[#allocation120_spill] sm:$0xff] %v6589_v47  ;;  %v2346_v18 = vsel %vm6563_vm7, %v10135_v46, %v10171_v49  ;;  %v2711_v10 = vsub.f32 1.5, %v6567_v39  ;;  %v2729_v58 = vmul.f32 %v6534_v32, %v2728_v42  ;;  %v6608_v33 = vmax.f32 %v10172_v11, 1e-24  ;;  %v10179_v39 = vld [vmem:[#allocation58_spill] sm:$0xff] }
 0x22f   :  { %v6594_v57 = vunpack.c.l.b16 %v10167_v51  ;;  %10169 = vst [vmem:[#allocation147_spill] sm:$0xff] %v6596_v38  ;;  %v6610_v23 = vpop.eup %4327  ;;  %v2722_v0 = vmul.f32 %v6421_v44, %v2721_v54  ;;  %v2228_v45 = vmul.f32 %v6575_v2, %v6496_v26  ;;  %v6615_v51 = vpop.xlane.xlu0 %1275  ;;  %v10177_v46 = vpack.c.bf16 %v10176_v48, %v10176_v48  ;;  %v10182_v48 = vld [vmem:[#allocation17_spill] sm:$0xff]  ;;  %v10187_v54 = vld [vmem:[#allocation19_spill] sm:$0xff] }
 0x230   :  { %10170 = vst [vmem:[#allocation165_spill] sm:$0xff] %v6598_v8  ;;  %v2356_v11 = vsel %vm6581_vm2, %v10143_v14, %v10179_v39  ;;  %vm2243_vm5 = vweird.f32 %v6358_v7  ;;  %v2219_v42 = vmul.f32 %v6543_v61, %v2218_v1  ;;  %v1144_v49 = vmul.f32 %v6589_v47, %v6589_v47  ;;  %v6648_v1 = vpop.xlane.xlu1 %1473 }
 0x231   :  { %10168 = vst [vmem:[#allocation144_spill] sm:$0xff] %v6594_v57  ;;  %v6620_v28 = vunpack.c.l.b16 %v10177_v46  ;;  %v2969_v46 = vmul.f32 %v2346_v18, %v10182_v48  ;;  %v2241_v14 = vsub.f32 1.5, %v2240_v36  ;;  %v2250_v41 = vmul.f32 0.5, %v2249_v59  ;;  %v10184_v48 = vld [vmem:[#allocation20_spill] sm:$0xff] }
 0x232   :  { %10173 = vst [vmem:[#allocation22_spill] sm:$0xff] %v6608_v33  ;;  %v2498_v21 = vmul.f32 %v6610_v23, %v6525_v35  ;;  %v2730_v4 = vmul.f32 0.5, %v2729_v58  ;;  %4331 = vrsqrt.f32 %v6608_v33  ;;  %1311 = vadd.xlane.f32.xlu2 %v1144_v49  ;;  %v817_v18 = vpop.f32.mrf.mxu0  ;;  %v2970_v47 = vmul.f32 %v2356_v11, %v10184_v48  ;;  %v6663_v49 = vpop.xlane.xlu2 %1475 }
 0x233   :  { %10174 = vst [vmem:[#allocation23_spill] sm:$0xff] %v6610_v23  ;;  %v2726_v36 = vsel %vm6630_vm13, %v6421_v44, %v2722_v0  ;;  %vm2244_vm6 = vweird.f32 %v6487_v29  ;;  %v2229_v59 = vmul.f32 %v6575_v2, %v2228_v45  ;;  %v6657_v39 = vadd.f32 %v6321_v56, %v817_v18  ;;  %v10188_v45 = vld [vmem:[#allocation139_spill] sm:$0xff] }
 0x234   :  { %10175 = vst [vmem:[#allocation156_spill] sm:$0xff] %v6615_v51  ;;  %v6639_v51 = vpop.eup %4329  ;;  %v6659_v58 = vmul.f32 0.5, %v2219_v42  ;;  %v3101_v35 = vpack.c.bf16 %v2969_v46, %v2969_v46  ;;  %v3102_v11 = vpack.c.bf16 %v2970_v47, %v2970_v47  ;;  %v2242_v48 = vmul.f32 %v6487_v29, %v2241_v14  ;;  %vm6679_vm0 = vmor %vm2243_vm5, %vm2244_vm6  ;;  %v10192_v14 = vld [vmem:[#allocation151_spill] sm:$0xff] }
 0x235   :  { %10178 = vst [vmem:[#allocation31_spill] sm:$0xff] %v6620_v28  ;;  %v2508_v13 = vmul.f32 %v6639_v51, %v6537_v62  ;;  %v6667_v44 = vmax.f32 %v6187_v3, 1e-24  ;;  %v2251_v0 = vsub.f32 1.5, %v2250_v41  ;;  %v10189_v38 = vpack.c.b16 %v10187_v54, %v10188_v45  ;;  %v10194_v54 = vld [vmem:[#allocation52_spill] sm:$0xff] }
 0x236   :  { %10183 = vst [vmem:[#allocation132_spill] sm:$0xff] %v6639_v51  ;;  %v1145_v42 = vmul.f32 %v6657_v39, %v6657_v39  ;;  %v6675_v18 = vmul.f32 %v6378_v25, %v2201_v34  ;;  %v2499_v3 = vmul.f32 %v6610_v23, %v2498_v21  ;;  %v2731_v46 = vsub.f32 1.5, %v2730_v4 }
 0x237   :  { %10185 = vst [vmem:[#allocation32_spill] sm:$0xff] %v6657_v39  ;;  %3359 = vmatpush.bf16.xpose.msrb.mxu1 %v10189_v38  ;;  %v6686_v41 = vmul.f32 %v10192_v14, %v10192_v14  ;;  %v6689_v38 = vmul.f32 %v6449_v63, %v2711_v10  ;;  %v6692_v45 = vmul.f32 %v2726_v36, %v10194_v54  ;;  %v2230_v34 = vmul.f32 0.5, %v2229_v59  ;;  %v6711_v36 = vpop.xlane.xlu0 %1371 }
 0x238   :  { %10186 = vst [vmem:[#allocation29_spill] sm:$0xff] %v6667_v44  ;;  %v6695_v7 = vmax.f32 %v6258_v17, 1e-24  ;;  %1313 = vadd.xlane.f32.xlu1 %v1145_v42  ;;  %v6697_v62 = vpop.eup %4331  ;;  %v2221_v21 = vsub.f32 1.5, %v6659_v58  ;;  %v2509_v4 = vmul.f32 %v6639_v51, %v2508_v13  ;;  %v6701_v39 = vunpack.c.l.b16 %v3101_v35  ;;  %v6715_v35 = vpop.xlane.xlu1 %1477 }
 0x239   :  { %10193 = vst [vmem:[#allocation58_spill] sm:$0xff] %v6689_v38  ;;  %v6703_v14 = vunpack.c.l.b16 %v3102_v11  ;;  %v2246_v10 = vsel %vm6679_vm0, %v6487_v29, %v2242_v48  ;;  %4333 = vrsqrt.f32 %v6667_v44  ;;  %v2252_v17 = vmul.f32 %v6519_v53, %v2251_v0  ;;  %v10201_v0 = vld [vmem:[#allocation56_spill] sm:$0xff]  ;;  %v10209_v11 = vld [vmem:[#allocation129_spill] sm:$0xff]  ;;  %v10266_v38 = vld [vmem:[#allocation110_spill] sm:$0xff] }
 0x23a   :  { %10195 = vst [vmem:[#allocation17_spill] sm:$0xff] %v6692_v45  ;;  %vm2254_vm8 = vweird.f32 %v6519_v53  ;;  %v2500_v59 = vmul.f32 0.5, %v2499_v3  ;;  %v2732_v58 = vmul.f32 %v6534_v32, %v2731_v46  ;;  %vm2734_vm9 = vweird.f32 %v6534_v32  ;;  %v819_v13 = vpop.f32.mrf.mxu0  ;;  %v6737_v54 = vpop.xlane.xlu2 %1479 }
 0x23b   :  { %10196 = vst [vmem:[#allocation20_spill] sm:$0xff] %v6695_v7  ;;  %v2518_v29 = vmul.f32 %v6697_v62, %v6608_v33  ;;  %4335 = vrsqrt.f32 %v6695_v7  ;;  %vm2253_vm10 = vweird.f32 %v6425_v12  ;;  %v6724_v48 = vadd.f32 %v6321_v56, %v819_v13 }
 0x23c   :  { %10197 = vst [vmem:[#allocation19_spill] sm:$0xff] %v6697_v62  ;;  %v6727_v42 = vmul.f32 %v2246_v10, %v10201_v0  ;;  %v2231_v47 = vsub.f32 1.5, %v2230_v34  ;;  %vm2223_vm11 = vweird.f32 %v6454_v50  ;;  %vm2224_vm12 = vweird.f32 %v6543_v61  ;;  %vm6733_vm15 = vmor %vm2253_vm10, %vm2254_vm8  ;;  %v10206_v10 = vld [vmem:[#allocation16_spill] sm:$0xff] }
 0x23d   :  { %10198 = vst [vmem:[#allocation139_spill] sm:$0xff] %v6701_v39  ;;  %v2510_v3 = vmul.f32 0.5, %v2509_v4  ;;  %vm2233_vm3 = vweird.f32 %v6496_v26  ;;  %vm2733_vm4 = vweird.f32 %v6445_v22  ;;  %v2256_v12 = vsel %vm6733_vm15, %v6519_v53, %v2252_v17  ;;  %v10208_v0 = vld [vmem:[#allocation92_spill] sm:$0xff]  ;;  %v10212_v22 = vld [vmem:[#allocation167_spill] sm:$0xff]  ;;  %vm6875_vm10 = vmor %vm2223_vm11, %vm2224_vm12 }
 0x23e   :  { %10199 = vst [vmem:[#allocation52_spill] sm:$0xff] %v6703_v14  ;;  %v6745_v34 = vmax.f32 %v6300_v9, 1e-24  ;;  %v10205_v4 = vpack.c.b16 %v6395_v19, %v6273_v60  ;;  %v10210_v33 = vsel %vm5503_vm1, %v10208_v0, %v10209_v11  ;;  %v10211_v14 = vld [vmem:[#allocation148_spill] sm:$0xff]  ;;  %vm2164_vm14 = vweird.f32 %v10212_v22  ;;  %vm6761_vm13 = vmor %vm2733_vm4, %vm2734_vm9  ;;  %v10217_v17 = vld [vmem:[#allocation91_spill] sm:$0xff] }
 0x23f   :  { %10200 = vst [vmem:[#allocation175_spill] sm:$0xff] %v6724_v48  ;;  %v1101_v39 = vmul.f32 %v10210_v33, %v10206_v10  ;;  %vm2163_vm7 = vweird.f32 %v10211_v14  ;;  %vm2234_vm2 = vweird.f32 %v6575_v2  ;;  %v2501_v53 = vsub.f32 1.5, %v2500_v59  ;;  %v6770_v33 = vpop.eup %4333  ;;  %v10219_v0 = vld [vmem:[#allocation66_spill] sm:$0xff] }
 0x240   :  { %10204 = vst [vmem:[#allocation56_spill] sm:$0xff] %v6745_v34  ;;  %3360 = vmatpush.bf16.xpose.msrb.mxu1 %v10205_v4  ;;  %v6766_v60 = vmax.f32 %v6360_v24, 1e-24  ;;  %v1146_v19 = vmul.f32 %v6724_v48, %v6724_v48  ;;  %vm2183_vm1 = vweird.f32 %v10217_v17  ;;  %vm2184_vm5 = vweird.f32 %v6018_v15  ;;  %v10218_v4 = vld [vmem:[#allocation157_spill] sm:$0xff]  ;;  %vm2235_vm11 = vmor %vm2233_vm3, %vm2234_vm2  ;;  %v10276_v17 = vld [vmem:[#allocation158_spill] sm:$0xff] }
 0x241   :  { %10216 = vst [vmem:[#allocation131_spill] sm:$0xff] %v6770_v33  ;;  %v6777_v11 = vmul.f32 %v6543_v61, %v2221_v21  ;;  %v2736_v24 = vsel %vm6761_vm13, %v6534_v32, %v2732_v58  ;;  %v2519_v46 = vmul.f32 %v6697_v62, %v2518_v29  ;;  %1403 = vadd.xlane.f32.xlu1 %v10218_v4  ;;  %vm2203_vm6 = vweird.f32 %v6279_v37  ;;  %v6792_v9 = vpop.eup %4335  ;;  %v10221_v58 = vld [vmem:[#allocation18_spill] sm:$0xff]  ;;  %vm6904_vm12 = vmor %vm2163_vm7, %vm2164_vm14  ;;  %v10282_v37 = vld [vmem:[#allocation35_spill] sm:$0xff] }
 0x242   :  { %10215 = vst [vmem:[#allocation16_spill] sm:$0xff] %v6766_v60  ;;  %vm2204_vm0 = vweird.f32 %v6378_v25  ;;  %v3091_v10 = vpack.c.bf16 %v6727_v42, %v6727_v42  ;;  %v6789_v13 = vmul.f32 %v6575_v2, %v2231_v47  ;;  %v2511_v21 = vsub.f32 1.5, %v2510_v3  ;;  %1315 = vadd.xlane.f32.xlu2 %v1146_v19  ;;  %v10224_v47 = vld [vmem:[#allocation28_spill] sm:$0xff]  ;;  %v10228_v19 = vld [vmem:[#allocation61_spill] sm:$0xff]  ;;  %v6837_v8 = vpop.xlane.xlu2 %1285  ;;  %vm6919_vm3 = vmor %vm2183_vm1, %vm2184_vm5 }
 0x243   :  { %v2960_v59 = vmul.f32 %v2256_v12, %v10219_v0  ;;  %10220 = vst [vmem:[#allocation92_spill] sm:$0xff] %v6792_v9  ;;  %vm2213_vm8 = vweird.f32 %v6241_v43  ;;  %vm2214_vm9 = vweird.f32 %v6345_v20  ;;  %4337 = vrsqrt.f32 %v6745_v34  ;;  %vm6934_vm7 = vmor %vm2203_vm6, %vm2204_vm0 }
 0x244   :  { %v3025_v32 = vpack.c.bf16 %v1101_v39, %v1101_v39  ;;  %v10222_v29 = vpack.c.bf16 %v10221_v58, %v10221_v58  ;;  %v10225_v3 = vpack.c.bf16 %v10224_v47, %v10224_v47  ;;  %v6808_v12 = vmul.f32 %v6610_v23, %v2501_v53  ;;  %v822_v39 = vpop.f32.mrf.mxu0  ;;  %v6821_v47 = vpop.xlane.xlu0 %1375  ;;  %vm6950_vm14 = vmor %vm2213_vm8, %vm2214_vm9 }
 0x245   :  { %v6811_v0 = vmul.f32 %v2736_v24, %v10228_v19  ;;  %v1798_v48 = vmul.f32 %v6770_v33, %v6667_v44  ;;  %4339 = vrsqrt.f32 %v6766_v60  ;;  %v6816_v58 = vmul.f32 0.5, %v2519_v46  ;;  %v6835_v23 = vpop.xlane.xlu1 %1283  ;;  %v10235_v24 = vld [vmem:[#allocation21_spill] sm:$0xff] }
 0x246   :  { %v6800_v42 = vunpack.c.l.b16 %v10222_v29  ;;  %v6805_v4 = vunpack.c.l.b16 %v10225_v3  ;;  %10227 = vst [vmem:[#allocation167_spill] sm:$0xff] %v6808_v12  ;;  %v6819_v29 = vmax.f32 %v6431_v5, 1e-24  ;;  %v10231_v3 = vld [vmem:[#allocation34_spill] sm:$0xff]  ;;  %vm2194_vm15 = vweird.f32 %v6161_v31 }
 0x247   :  { %10229 = vst [vmem:[#allocation91_spill] sm:$0xff] %v6811_v0  ;;  %v10232_v53 = vpack.c.bf16 %v10231_v3, %v10231_v3  ;;  %v6831_v19 = vmul.f32 %v6639_v51, %v2511_v21  ;;  %v2528_v5 = vmul.f32 %v6792_v9, %v6695_v7  ;;  %v3092_v46 = vpack.c.bf16 %v2960_v59, %v2960_v59  ;;  %v10239_v59 = vld [vmem:[#allocation115_spill] sm:$0xff] }
 0x248   :  { %10223 = vst [vmem:[#allocation129_spill] sm:$0xff] %v6800_v42  ;;  %v6840_v3 = vadd.f32 %v6321_v56, %v822_v39  ;;  %v10236_v42 = vld [vmem:[#allocation140_spill] sm:$0xff]  ;;  %v3159_v21 = vunpack.c.l.b16 %v3025_v32  ;;  %v6854_v7 = vmul.f32 %v10239_v59, %v10239_v59  ;;  %v1799_v28 = vmul.f32 %v6770_v33, %v1798_v48 }
 0x249   :  { %10226 = vst [vmem:[#allocation148_spill] sm:$0xff] %v6805_v4  ;;  %v3160_v12 = vunpack.c.l.b16 %v10232_v53  ;;  %v6843_v53 = vmax.f32 %v6260_v55, 1e-24  ;;  %v10237_v4 = vpack.c.b16 %v10235_v24, %v10236_v42  ;;  %v10240_v55 = vld [vmem:[#allocation117_spill] sm:$0xff]  ;;  %v10241_v42 = vld [vmem:[#allocation107_spill] sm:$0xff]  ;;  %v10243_v24 = vld [vmem:[#allocation160_spill] sm:$0xff]  ;;  %vm2174_vm13 = vweird.f32 %v5990_v16  ;;  %1465 = vadd.xlane.f32.xlu1 %v6686_v41 }
 0x24a   :  { %10230 = vst [vmem:[#allocation157_spill] sm:$0xff] %v6819_v29  ;;  %v6861_v57 = vmul.f32 %v10240_v55, %v10240_v55  ;;  %v6865_v32 = vmul.f32 %v10241_v42, %v10241_v42  ;;  %vm2173_vm4 = vweird.f32 %v10243_v24  ;;  %4341 = vrsqrt.f32 %v6819_v29  ;;  %v10288_v24 = vld [vmem:[#allocation156_spill] sm:$0xff] }
 0x24b   :  { %10233 = vst [vmem:[#allocation66_spill] sm:$0xff] %v6831_v19  ;;  %3361 = vmatpush.bf16.xpose.msrb.mxu1 %v10237_v4  ;;  %v10238_v19 = vld [vmem:[#allocation113_spill] sm:$0xff]  ;;  %v6867_v4 = vpop.eup %4337  ;;  %v6885_v42 = vpack.c.b16 %v3160_v12, %v3159_v21  ;;  %v2529_v50 = vmul.f32 %v6792_v9, %v2528_v5  ;;  %v1147_v39 = vmul.f32 %v6840_v3, %v6840_v3  ;;  %4343 = vrsqrt.f32 %v6843_v53  ;;  %vm7027_vm5 = vmor %vm2173_vm4, %vm2174_vm13 }
 0x24c   :  { %10234 = vst [vmem:[#allocation18_spill] sm:$0xff] %v6840_v3  ;;  %v6850_v51 = vmul.f32 %v10238_v19, %v10238_v19  ;;  %v6881_v19 = vmax.f32 %v6483_v27, 1e-24  ;;  %v6887_v59 = vpop.eup %4339  ;;  %v3290_v27 = vunpack.c.l.b16 %v3092_v46  ;;  %v2226_v41 = vsel %vm6875_vm10, %v6543_v61, %v6777_v11  ;;  %v10252_v46 = vld [vmem:[#allocation54_spill] sm:$0xff]  ;;  %v824_v48 = vpop.f32.mrf.mxu0 }
 0x24d   :  { %10242 = vst [vmem:[#allocation28_spill] sm:$0xff] %v6867_v4  ;;  %v6910_v26 = vmax.f32 %v6362_v30, 1e-24  ;;  %v2236_v5 = vsel %vm2235_vm11, %v6575_v2, %v6789_v13  ;;  %v2957_v21 = vmul.f32 %v2226_v41, %v10252_v46  ;;  %v6923_v14 = vmul.f32 0.5, %v1799_v28  ;;  %1317 = vadd.xlane.f32.xlu2 %v1147_v39  ;;  %v10256_v30 = vld [vmem:[#allocation55_spill] sm:$0xff]  ;;  %v10257_v3 = vld [vmem:[#allocation106_spill] sm:$0xff]  ;;  %v6957_v41 = vpop.xlane.xlu2 %1483  ;;  %v6972_v63 = vpop.xlane.xlu0 %1281 }
 0x24e   :  { %10246 = vst [vmem:[#allocation61_spill] sm:$0xff] %v6881_v19  ;;  %v3289_v11 = vunpack.c.l.b16 %v3091_v10  ;;  %v2958_v55 = vmul.f32 %v2236_v5, %v10256_v30  ;;  %v6928_v2 = vmul.f32 %v10257_v3, %v10257_v3  ;;  %v1788_v28 = vmul.f32 %v6887_v59, %v6766_v60 }
 0x24f   :  { %10247 = vst [vmem:[#allocation34_spill] sm:$0xff] %v6885_v42  ;;  %v1778_v10 = vmul.f32 %v6867_v4, %v6745_v34  ;;  %4345 = vrsqrt.f32 %v6881_v19  ;;  %v6944_v13 = vadd.f32 %v6321_v56, %v824_v48  ;;  %v6955_v39 = vmax.f32 %v6527_v52, 1e-24  ;;  %v10265_v48 = vld [vmem:[#allocation123_spill] sm:$0xff]  ;;  %v10268_v52 = vld [vmem:[#allocation62_spill] sm:$0xff] }
 0x250   :  { %10248 = vst [vmem:[#allocation21_spill] sm:$0xff] %v6887_v59  ;;  %v3322_v5 = vpack.c.b16 %v3290_v27, %v3289_v11  ;;  %v3089_v46 = vpack.c.bf16 %v2957_v21, %v2957_v21  ;;  %v3090_v30 = vpack.c.bf16 %v2958_v55, %v2958_v55  ;;  %v6959_v3 = vpop.eup %4341  ;;  %v6961_v56 = vmul.f32 0.5, %v2529_v50  ;;  %v6974_v27 = vpop.xlane.xlu1 %1481  ;;  %v10269_v50 = vld [vmem:[#allocation63_spill] sm:$0xff] }
 0x251   :  { %10251 = vst [vmem:[#allocation140_spill] sm:$0xff] %v6910_v26  ;;  %4347 = vrsqrt.f32 %v6910_v26  ;;  %v6965_v43 = vmax.f32 %v6551_v40, 1e-24  ;;  %v10267_v0 = vpack.c.b16 %v10265_v48, %v10266_v38  ;;  %v1169_v45 = vmul.f32 %v10268_v52, %v10268_v52  ;;  %v6990_v11 = vpop.eup %4343  ;;  %1331 = vadd.xlane.f32.xlu1 %v10276_v17  ;;  %v10281_v17 = vld [vmem:[#allocation39_spill] sm:$0xff] }
 0x252   :  { %10255 = vst [vmem:[#allocation160_spill] sm:$0xff] %v6923_v14  ;;  %v1148_v55 = vmul.f32 %v6944_v13, %v6944_v13  ;;  %v2206_v40 = vsel %vm6934_vm7, %v6378_v25, %v6675_v18  ;;  %v2186_v38 = vsel %vm6919_vm3, %v6018_v15, %v10269_v50  ;;  %vm10271_vm2 = vweird.f32 %v6079_v6  ;;  %v10274_v15 = vld [vmem:[#allocation38_spill] sm:$0xff] }
 0x253   :  { %10260 = vst [vmem:[#allocation54_spill] sm:$0xff] %v6944_v13  ;;  %3362 = vmatpush.bf16.xpose.msrb.mxu1 %v10267_v0  ;;  %v10270_v0 = vld [vmem:[#allocation127_spill] sm:$0xff]  ;;  %vm6996_vm1 = vmor %vm10271_vm2, %vm2194_vm15  ;;  %v1789_v25 = vmul.f32 %v6887_v59, %v1788_v28  ;;  %v1779_v18 = vmul.f32 %v6867_v4, %v1778_v10  ;;  %v7003_v61 = vmax.f32 %v10274_v15, 1e-24  ;;  %v7012_v6 = vmul.f32 %v6959_v3, %v6819_v29 }
 0x254   :  { %10263 = vst [vmem:[#allocation55_spill] sm:$0xff] %v6955_v39  ;;  %v2166_v21 = vsel %vm6904_vm12, %v10212_v22, %v10270_v0  ;;  %v10277_v22 = vld [vmem:[#allocation102_spill] sm:$0xff]  ;;  %4349 = vrsqrt.f32 %v6955_v39  ;;  %1319 = vadd.xlane.f32.xlu0 %v1148_v55  ;;  %v3287_v28 = vunpack.c.l.b16 %v3089_v46  ;;  %v3288_v48 = vunpack.c.l.b16 %v3090_v30  ;;  %v10280_v0 = vld [vmem:[#allocation45_spill] sm:$0xff]  ;;  %v10293_v29 = vld [vmem:[#allocation143_spill] sm:$0xff] }
 0x255   :  { %10264 = vst [vmem:[#allocation176_spill] sm:$0xff] %v6959_v3  ;;  %v2216_v12 = vsel %vm6950_vm14, %v6345_v20, %v10277_v22  ;;  %v7015_v10 = vpop.eup %4345  ;;  %v7018_v50 = vmax.f32 %v6648_v1, 1e-24  ;;  %v2955_v15 = vmul.f32 %v2206_v40, %v10280_v0  ;;  %v2953_v52 = vmul.f32 %v2186_v38, %v10281_v17  ;;  %1361 = vadd.xlane.f32.xlu2 %v1169_v45  ;;  %v10285_v1 = vld [vmem:[#allocation47_spill] sm:$0xff]  ;;  %v10286_v55 = vld [vmem:[#allocation137_spill] sm:$0xff]  ;;  %v10291_v17 = vld [vmem:[#allocation172_spill] sm:$0xff]  ;;  %v7062_v22 = vpop.xlane.xlu0 %1287 }
 0x256   :  { %10275 = vst [vmem:[#allocation123_spill] sm:$0xff] %v7003_v61  ;;  %v2951_v20 = vmul.f32 %v2166_v21, %v10282_v37  ;;  %v1818_v46 = vmul.f32 %v6990_v11, %v6843_v53  ;;  %4351 = vrsqrt.f32 %v6965_v43  ;;  %v2956_v30 = vmul.f32 %v2216_v12, %v10285_v1  ;;  %v7053_v12 = vpop.xlane.xlu2 %1289  ;;  %v10292_v1 = vld [vmem:[#allocation42_spill] sm:$0xff] }
 0x257   :  { %10278 = vst [vmem:[#allocation110_spill] sm:$0xff] %v7015_v10  ;;  %v2196_v40 = vsel %vm6996_vm1, %v6161_v31, %v10286_v55  ;;  %v7039_v38 = vpop.eup %4347  ;;  %4353 = vrsqrt.f32 %v7003_v61  ;;  %v7043_v21 = vmax.f32 %v10288_v24, 1e-24  ;;  %v7046_v0 = vmax.f32 %v6711_v36, 1e-24 }
 0x258   :  { %10279 = vst [vmem:[#allocation63_spill] sm:$0xff] %v7018_v50  ;;  %v2176_v45 = vsel %vm7027_vm5, %v5990_v16, %v10291_v17  ;;  %v3321_v31 = vpack.c.b16 %v3288_v48, %v3287_v28  ;;  %v3088_v37 = vpack.c.bf16 %v2956_v30, %v2956_v30  ;;  %v2954_v55 = vmul.f32 %v2196_v40, %v10292_v1  ;;  %v7064_v16 = vpop.xlane.xlu1 %1485 }
 0x259   :  { %10287 = vst [vmem:[#allocation127_spill] sm:$0xff] %v7039_v38  ;;  %v7057_v24 = vmax.f32 %v10293_v29, 1e-24  ;;  %4355 = vrsqrt.f32 %v7018_v50  ;;  %v3085_v36 = vpack.c.bf16 %v2953_v52, %v2953_v52  ;;  %v3083_v13 = vpack.c.bf16 %v2951_v20, %v2951_v20  ;;  %v10296_v52 = vld [vmem:[#allocation159_spill] sm:$0xff]  ;;  %1397 = vadd.xlane.f32.xlu1 %v6850_v51 }
 0x25a   :  { %10289 = vst [vmem:[#allocation38_spill] sm:$0xff] %v7043_v21  ;;  %3363 = vmatmul.bf16.vlgmr.msrb.gmra.mxu1 %v6885_v42  ;;  %v7060_v60 = vpop.eup %4349  ;;  %v3286_v28 = vunpack.c.l.b16 %v3088_v37  ;;  %v3086_v48 = vpack.c.bf16 %v2954_v55, %v2954_v55  ;;  %v2548_v29 = vmul.f32 %v7015_v10, %v6881_v19  ;;  %v2298_v40 = vmul.f32 %v7039_v38, %v6910_v26 }
 0x25b   :  { %3397 = vmatpush.bf16.xpose.msra.mxu1 %v3322_v5  ;;  %10290 = vst [vmem:[#allocation158_spill] sm:$0xff] %v7046_v0  ;;  %v3087_v5 = vpack.c.bf16 %v2955_v15, %v2955_v15  ;;  %v10295_v15 = vld [vmem:[#allocation37_spill] sm:$0xff]  ;;  %4357 = vrsqrt.f32 %v7046_v0  ;;  %v1222_v20 = vmul.f32 %v10296_v52, %v10296_v52  ;;  %v7085_v19 = vmul.f32 0.5, %v1789_v25 }
 0x25c   :  { %10294 = vst [vmem:[#allocation102_spill] sm:$0xff] %v7060_v60  ;;  %v2952_v30 = vmul.f32 %v2176_v45, %v10295_v15  ;;  %v7075_v1 = vpop.eup %4351  ;;  %1401 = vadd.xlane.f32.xlu0 %v6861_v57  ;;  %v7080_v45 = vunpack.c.l.b16 %v3086_v48  ;;  %v2531_v15 = vsub.f32 1.5, %v6961_v56  ;;  %v7087_v26 = vmul.f32 0.5, %v1779_v18  ;;  %v10307_v57 = vld [vmem:[#allocation60_spill] sm:$0xff] }
 0x25d   :  { %v3285_v17 = vunpack.c.l.b16 %v3087_v5  ;;  %v7078_v5 = vunpack.c.l.b16 %v3085_v36  ;;  %v7082_v55 = vpop.eup %4353  ;;  %10298 = vst [vmem:[#allocation39_spill] sm:$0xff] %v7085_v19  ;;  %4359 = vrsqrt.f32 %v7043_v21  ;;  %1467 = vadd.xlane.f32.xlu2 %v1222_v20  ;;  %v7093_v51 = vunpack.c.l.b16 %v3083_v13 }
 0x25e   :  { %v3084_v37 = vpack.c.bf16 %v2952_v30, %v2952_v30  ;;  %10297 = vst [vmem:[#allocation45_spill] sm:$0xff] %v7082_v55  ;;  %4361 = vrsqrt.f32 %v7057_v24  ;;  %v10301_v56 = vsub.f32 1.5, %v6816_v58  ;;  %v1819_v18 = vmul.f32 %v6990_v11, %v1818_v46  ;;  %v7112_v20 = vpop.xlane.xlu2 %1291 }
 0x25f   :  { %10299 = vst [vmem:[#allocation35_spill] sm:$0xff] %v7087_v26  ;;  %v7108_v48 = vmax.f32 %v6821_v47, 1e-24  ;;  %v2549_v13 = vmul.f32 %v7015_v10, %v2548_v29  ;;  %v2299_v30 = vmul.f32 %v7039_v38, %v2298_v40  ;;  %v7124_v47 = vmul.f32 %v6792_v9, %v2531_v15  ;;  %v10316_v26 = vld [vmem:[#allocation149_spill] sm:$0xff] }
 0x260   :  { %v7095_v36 = vunpack.c.l.b16 %v3084_v37  ;;  %v7102_v25 = vmul.f32 %v6697_v62, %v10301_v56  ;;  %v10304_v37 = vld [vmem:[#allocation36_spill] sm:$0xff]  ;;  %v7129_v40 = vmul.f32 %v10307_v57, %v10307_v57  ;;  %v2318_v58 = vmul.f32 %v7082_v55, %v7003_v61  ;;  %v1340_v42 = vpop.xlane.xlu1 %1339 }
 0x261   :  { %10303 = vst [vmem:[#allocation156_spill] sm:$0xff] %v7108_v48  ;;  %v7118_v56 = vmul.f32 %v10304_v37, %v10304_v37  ;;  %v7135_v37 = vmax.f32 %v6663_v49, 1e-24  ;;  %v7141_v29 = vmul.f32 0.5, %v1819_v18  ;;  %4363 = vrsqrt.f32 %v7108_v48  ;;  %v10312_v57 = vld [vmem:[#allocation164_spill] sm:$0xff]  ;;  %v10313_v18 = vld [vmem:[#allocation145_spill] sm:$0xff] }
 0x262   :  { %10302 = vst [vmem:[#allocation137_spill] sm:$0xff] %v7102_v25  ;;  %v1294_v25 = vpop.xlane.xlu0 %1293  ;;  %1055 = vadd.xlane.f32.xlu1 %v10312_v57  ;;  %v7151_v49 = vmul.f32 0.5, %v2549_v13  ;;  %v10315_v61 = vld [vmem:[#allocation24_spill] sm:$0xff] }
 0x263   :  { %3398 = vmatpush.bf16.xpose.msra.mxu1 %v3321_v31  ;;  %v3320_v31 = vpack.c.b16 %v3286_v28, %v3285_v17  ;;  %v7097_v17 = vpop.eup %4355  ;;  %v2539_v28 = vmul.f32 %v6959_v3, %v7012_v6  ;;  %10306 = vst [vmem:[#allocation42_spill] sm:$0xff] %v7124_v47  ;;  %v10309_v6 = vld [vmem:[#allocation146_spill] sm:$0xff]  ;;  %v7146_v52 = vmax.f32 %v1294_v25, 1e-24  ;;  %v1838_v25 = vmul.f32 %v7075_v1, %v6965_v43 }
 0x264   :  { %10300 = vst [vmem:[#allocation47_spill] sm:$0xff] %v7097_v17  ;;  %v7120_v46 = vpop.eup %4357  ;;  %v1170_v15 = vmul.f32 %v10309_v6, %v10309_v6  ;;  %v1808_v6 = vmul.f32 %v7060_v60, %v6955_v39  ;;  %v2818_v57 = vmul.f32 %v7097_v17, %v7018_v50  ;;  %v2551_v34 = vsub.f32 1.5, %v7151_v49 }
 0x265   :  { %10305 = vst [vmem:[#allocation172_spill] sm:$0xff] %v7120_v46  ;;  %v7139_v47 = vpop.eup %4359  ;;  %v7143_v9 = vmul.f32 0.5, %v2539_v28  ;;  %v7159_v28 = vmul.f32 %v10313_v18, %v10313_v18  ;;  %v2308_v13 = vmul.f32 %v7120_v46, %v7046_v0  ;;  %4365 = vrsqrt.f32 %v7146_v52  ;;  %1433 = vadd.xlane.f32.xlu2 %v10315_v61 }
 0x266   :  { %10308 = vst [vmem:[#allocation143_spill] sm:$0xff] %v7135_v37  ;;  %v7149_v62 = vpop.eup %4361  ;;  %1363 = vadd.xlane.f32.xlu0 %v1170_v15  ;;  %v1828_v15 = vmul.f32 %v7139_v47, %v7043_v21  ;;  %4367 = vrsqrt.f32 %v7135_v37  ;;  %v7173_v18 = vmax.f32 %v6715_v35, 1e-24  ;;  %v7180_v0 = vmax.f32 %v6972_v63, 1e-24 }
 0x267   :  { %10310 = vst [vmem:[#allocation37_spill] sm:$0xff] %v7139_v47  ;;  %v2541_v19 = vsub.f32 1.5, %v7143_v9  ;;  %v1848_v50 = vmul.f32 %v7149_v62, %v7057_v24  ;;  %v1809_v35 = vmul.f32 %v7060_v60, %v1808_v6  ;;  %v7190_v61 = vmax.f32 %v6835_v23, 1e-24  ;;  %v7192_v9 = vpop.xlane.xlu2 %1487  ;;  %v7194_v39 = vpop.eup %4363 }
 0x268   :  { %10311 = vst [vmem:[#allocation177_spill] sm:$0xff] %v7141_v29  ;;  %v1839_v59 = vmul.f32 %v7075_v1, %v1838_v25  ;;  %v2309_v4 = vmul.f32 %v7120_v46, %v2308_v13  ;;  %v1829_v49 = vmul.f32 %v7139_v47, %v1828_v15  ;;  %4369 = vrsqrt.f32 %v7173_v18  ;;  %v10322_v15 = vld [vmem:[#allocation170_spill] sm:$0xff] }
 0x269   :  { %10314 = vst [vmem:[#allocation164_spill] sm:$0xff] %v7173_v18  ;;  %v7203_v23 = vmax.f32 %v6737_v54, 1e-24  ;;  %v10319_v6 = vpack.c.b16 %v7080_v45, %v7078_v5  ;;  %v1849_v25 = vmul.f32 %v7149_v62, %v1848_v50  ;;  %4371 = vrsqrt.f32 %v7180_v0 }
 0x26a   :  { %10317 = vst [vmem:[#allocation24_spill] sm:$0xff] %v7194_v39  ;;  %v1296_v60 = vpop.xlane.xlu0 %1295  ;;  %v2328_v5 = vmul.f32 %v7194_v39, %v7108_v48  ;;  %4373 = vrsqrt.f32 %v7190_v61  ;;  %v7224_v45 = vmax.f32 %v7112_v20, 1e-24  ;;  %v7232_v44 = vmul.f32 0.5, %v1839_v59  ;;  %v7236_v20 = vpop.xlane.xlu1 %1407 }
 0x26b   :  { %3399 = vmatpush.bf16.xpose.msra.mxu1 %v3320_v31  ;;  %v7153_v31 = vmul.f32 0.5, %v2299_v30  ;;  %v2319_v30 = vmul.f32 %v7082_v55, %v2318_v58  ;;  %v7184_v58 = vmul.f32 %v10316_v26, %v10316_v26  ;;  %v2819_v26 = vmul.f32 %v7097_v17, %v2818_v57  ;;  %10318 = vst [vmem:[#allocation178_spill] sm:$0xff] %v7203_v23 }
 0x26c   :  { %v7213_v57 = vmax.f32 %v7053_v12, 1e-24  ;;  %v7215_v13 = vmax.f32 %v1296_v60, 1e-24  ;;  %v7229_v12 = vmul.f32 0.5, %v1809_v35  ;;  %10324 = vst [vmem:[#allocation179_spill] sm:$0xff] %v7232_v44  ;;  %v7249_v59 = vmul.f32 %v6959_v3, %v2541_v19 }
 0x26d   :  { %v2301_v63 = vsub.f32 1.5, %v7153_v31  ;;  %v2320_v14 = vmul.f32 0.5, %v2319_v30  ;;  %v7208_v31 = vpop.eup %4365  ;;  %v10320_v30 = vld [vmem:[#allocation168_spill] sm:$0xff]  ;;  %v2820_v60 = vmul.f32 0.5, %v2819_v26  ;;  %1399 = vadd.xlane.f32.xlu2 %v6854_v7  ;;  %v7239_v33 = vmul.f32 0.5, %v1829_v49 }
 0x26e   :  { %1429 = vadd.xlane.f32.xlu1 %v10320_v30  ;;  %v7218_v54 = vpop.eup %4367  ;;  %v1918_v50 = vmul.f32 %v7208_v31, %v7146_v52  ;;  %1329 = vadd.xlane.f32.xlu0 %v10322_v15  ;;  %10323 = vst [vmem:[#allocation170_spill] sm:$0xff] %v7229_v12  ;;  %4375 = vrsqrt.f32 %v7215_v13  ;;  %v7260_v15 = vmul.f32 %v7015_v10, %v2551_v34  ;;  %vm1924_vm6 = vweird.f32 %v7208_v31 }
 0x26f   :  { %10321 = vst [vmem:[#allocation168_spill] sm:$0xff] %v7218_v54  ;;  %v2321_v30 = vsub.f32 1.5, %v2320_v14  ;;  %4377 = vrsqrt.f32 %v7203_v23  ;;  %v2828_v35 = vmul.f32 %v7218_v54, %v7135_v37  ;;  %v7246_v26 = vpop.eup %4369  ;;  %v7251_v14 = vmul.f32 0.5, %v1849_v25  ;;  %v7255_v7 = vpop.xlane.xlu2 %1441 }
 0x270   :  { %v1919_v48 = vmul.f32 %v7208_v31, %v1918_v50  ;;  %10325 = vst [vmem:[#allocation180_spill] sm:$0xff] %v7239_v33  ;;  %4379 = vrsqrt.f32 %v7213_v57  ;;  %v2329_v50 = vmul.f32 %v7194_v39, %v2328_v5  ;;  %v7257_v49 = vpop.eup %4371  ;;  %v2821_v37 = vsub.f32 1.5, %v2820_v60 }
 0x271   :  { %10326 = vst [vmem:[#allocation181_spill] sm:$0xff] %v7246_v26  ;;  %4381 = vrsqrt.f32 %v7224_v45  ;;  %v7265_v19 = vpop.eup %4373  ;;  %v7269_v5 = vmul.f32 %v7082_v55, %v2321_v30  ;;  %v10332_v21 = vpack.c.b16 %v7095_v36, %v7093_v51  ;;  %v2829_v60 = vmul.f32 %v7218_v54, %v2828_v35  ;;  %v10335_v36 = vld [vmem:[#allocation33_spill] sm:$0xff]  ;;  %v10340_v55 = vld [vmem:[#allocation162_spill] sm:$0xff] }
 0x272   :  { %10327 = vst [vmem:[#allocation182_spill] sm:$0xff] %v7249_v59  ;;  %v1920_v3 = vmul.f32 0.5, %v1919_v48  ;;  %v1338_v34 = vpop.xlane.xlu0 %1337  ;;  %v2330_v25 = vmul.f32 0.5, %v2329_v50  ;;  %v2838_v50 = vmul.f32 %v7246_v26, %v7173_v18  ;;  %v1868_v59 = vmul.f32 %v7265_v19, %v7190_v61 }
 0x273   :  { %3400 = vmatpush.bf16.xpose.msra.mxu1 %v10319_v6  ;;  %v2310_v6 = vmul.f32 0.5, %v2309_v4  ;;  %v7244_v4 = vmax.f32 %v1340_v42, 1e-24  ;;  %10328 = vst [vmem:[#allocation183_spill] sm:$0xff] %v7251_v14  ;;  %v7263_v42 = vmul.f32 %v7039_v38, %v2301_v63  ;;  %v7301_v63 = vmax.f32 %v7062_v22, 1e-24 }
 0x274   :  { %10329 = vst [vmem:[#allocation184_spill] sm:$0xff] %v7260_v15  ;;  %v7275_v15 = vpop.eup %4375  ;;  %v1921_v48 = vsub.f32 1.5, %v1920_v3  ;;  %v1858_v22 = vmul.f32 %v7257_v49, %v7180_v0  ;;  %v2331_v10 = vsub.f32 1.5, %v2330_v25  ;;  %v10339_v38 = vld [vmem:[#allocation161_spill] sm:$0xff]  ;;  %vm1923_vm0 = vweird.f32 %v7146_v52 }
 0x275   :  { %10330 = vst [vmem:[#allocation185_spill] sm:$0xff] %v7263_v42  ;;  %v2311_v29 = vsub.f32 1.5, %v2310_v6  ;;  %4383 = vrsqrt.f32 %v7244_v4  ;;  %v7280_v6 = vmax.f32 %v1338_v34, 1e-24  ;;  %v7283_v30 = vpop.eup %4377  ;;  %v1928_v51 = vmul.f32 %v7275_v15, %v7215_v13  ;;  %1461 = vadd.xlane.f32.xlu2 %v7159_v28  ;;  %vm7361_vm8 = vmor %vm1923_vm0, %vm1924_vm6 }
 0x276   :  { %10331 = vst [vmem:[#allocation186_spill] sm:$0xff] %v7269_v5  ;;  %1395 = vadd.xlane.f32.xlu1 %v6865_v32  ;;  %1435 = vadd.xlane.f32.xlu0 %v10335_v36  ;;  %v7292_v35 = vpop.eup %4379  ;;  %v7295_v34 = vmul.f32 %v7097_v17, %v2821_v37  ;;  %v7309_v36 = vmax.f32 %v7064_v16, 1e-24  ;;  %v2848_v16 = vmul.f32 %v7283_v30, %v7203_v23  ;;  %v7331_v17 = vmax.f32 %v6957_v41, 1e-24 }
 0x277   :  { %10333 = vst [vmem:[#allocation187_spill] sm:$0xff] %v7283_v30  ;;  %v7298_v32 = vmul.f32 %v7120_v46, %v2311_v29  ;;  %4385 = vrsqrt.f32 %v7280_v6  ;;  %v1929_v37 = vmul.f32 %v7275_v15, %v1928_v51  ;;  %v2830_v29 = vmul.f32 0.5, %v2829_v60  ;;  %v7323_v51 = vpop.xlane.xlu1 %1469  ;;  %v7325_v28 = vpop.xlane.xlu2 %1365 }
 0x278   :  { %10336 = vst [vmem:[#allocation33_spill] sm:$0xff] %v7295_v34  ;;  %v7318_v34 = vmax.f32 %v6837_v8, 1e-24  ;;  %v1898_v8 = vmul.f32 %v7292_v35, %v7213_v57  ;;  %v2839_v23 = vmul.f32 %v7246_v26, %v2838_v50  ;;  %v1922_v18 = vmul.f32 %v7208_v31, %v1921_v48 }
 0x279   :  { %10337 = vst [vmem:[#allocation189_spill] sm:$0xff] %v7298_v32  ;;  %v1930_v3 = vmul.f32 0.5, %v1929_v37  ;;  %v1859_v41 = vmul.f32 %v7257_v49, %v1858_v22  ;;  %v1869_v42 = vmul.f32 %v7265_v19, %v1868_v59  ;;  %v2849_v50 = vmul.f32 %v7283_v30, %v2848_v16 }
 0x27a   :  { %10338 = vst [vmem:[#allocation190_spill] sm:$0xff] %v7331_v17  ;;  %v7340_v37 = vpop.xlane.xlu0 %1443  ;;  %v1899_v59 = vmul.f32 %v7292_v35, %v1898_v8  ;;  %v7366_v16 = vmax.f32 %v7192_v9, 1e-24  ;;  %vm1934_vm9 = vweird.f32 %v7275_v15  ;;  %v10344_v8 = vld [vmem:[#allocation171_spill] sm:$0xff]  ;;  %v7380_v33 = vmul.f32 0.5, %v2839_v23 }
 0x27b   :  { %3401 = vmatpush.bf16.xpose.msra.mxu1 %v10332_v21  ;;  %v7287_v21 = vmax.f32 %v6974_v27, 1e-24  ;;  %v7304_v27 = vpop.eup %4381  ;;  %v1931_v46 = vsub.f32 1.5, %v1930_v3  ;;  %v2831_v3 = vsub.f32 1.5, %v2830_v29  ;;  %v7382_v9 = vmul.f32 0.5, %v1859_v41 }
 0x27c   :  { %v7327_v60 = vpop.eup %4383  ;;  %v1908_v25 = vmul.f32 %v7304_v27, %v7224_v45  ;;  %vm1933_vm10 = vweird.f32 %v7215_v13  ;;  %vm1904_vm4 = vweird.f32 %v7292_v35  ;;  %vm1914_vm13 = vweird.f32 %v7304_v27 }
 0x27d   :  { %10334 = vst [vmem:[#allocation188_spill] sm:$0xff] %v7287_v21  ;;  %4387 = vrsqrt.f32 %v7287_v21  ;;  %v7343_v32 = vpop.eup %4385  ;;  %v2148_v5 = vmul.f32 %v7327_v60, %v7244_v4  ;;  %1431 = vadd.xlane.f32.xlu2 %v10344_v8  ;;  %v1932_v29 = vmul.f32 %v7275_v15, %v1931_v46  ;;  %vm7401_vm15 = vmor %vm1933_vm10, %vm1934_vm9  ;;  %v10353_v46 = vld [vmem:[#allocation169_spill] sm:$0xff]  ;;  %vm1903_vm11 = vweird.f32 %v7213_v57 }
 0x27e   :  { %4389 = vrsqrt.f32 %v7301_v63  ;;  %1425 = vadd.xlane.f32.xlu1 %v10339_v38  ;;  %v2138_v48 = vmul.f32 %v7343_v32, %v7280_v6  ;;  %1053 = vadd.xlane.f32.xlu0 %v10340_v55  ;;  %v1909_v22 = vmul.f32 %v7304_v27, %v1908_v25  ;;  %v7371_v55 = vmul.f32 %v7194_v39, %v2331_v10  ;;  %vm7461_vm12 = vmor %vm1903_vm11, %vm1904_vm4 }
 0x27f   :  { %4391 = vrsqrt.f32 %v7309_v36  ;;  %v1926_v25 = vsel %vm7361_vm8, %v7208_v31, %v1922_v18  ;;  %v7390_v39 = vmul.f32 0.5, %v1869_v42  ;;  %v2149_v8 = vmul.f32 %v7327_v60, %v2148_v5  ;;  %v7394_v18 = vpop.xlane.xlu2 %1471  ;;  %v10348_v42 = vld [vmem:[#allocation155_spill] sm:$0xff] }
 0x280   :  { %4393 = vrsqrt.f32 %v7318_v34  ;;  %10343 = vst [vmem:[#allocation161_spill] sm:$0xff] %v7371_v55  ;;  %v2139_v14 = vmul.f32 %v7343_v32, %v2138_v48  ;;  %v7388_v55 = vmul.f32 0.5, %v2849_v50  ;;  %v1900_v31 = vmul.f32 0.5, %v1899_v59  ;;  %v7413_v59 = vpop.xlane.xlu1 %1335 }
 0x281   :  { %4395 = vrsqrt.f32 %v7331_v17  ;;  %10345 = vst [vmem:[#allocation162_spill] sm:$0xff] %v7394_v18  ;;  %v1910_v41 = vmul.f32 0.5, %v1909_v22  ;;  %v2927_v50 = vmul.f32 %v1926_v25, %v10348_v42  ;;  %v7407_v5 = vmul.f32 %v7218_v54, %v2831_v3 }
 0x282   :  { %4397 = vrsqrt.f32 %v7366_v16  ;;  %v7415_v22 = vpop.xlane.xlu0 %1405  ;;  %v1936_v38 = vsel %vm7401_vm15, %v7275_v15, %v1932_v29  ;;  %v2150_v18 = vmul.f32 0.5, %v2149_v8  ;;  %v1901_v15 = vsub.f32 1.5, %v1900_v31 }
 0x283   :  { %v7368_v52 = vpop.eup %4387  ;;  %10349 = vst [vmem:[#allocation171_spill] sm:$0xff] %v7407_v5  ;;  %v2140_v5 = vmul.f32 0.5, %v2139_v14  ;;  %v1911_v29 = vsub.f32 1.5, %v1910_v41  ;;  %v2928_v25 = vmul.f32 %v1936_v38, %v10353_v46  ;;  %v3059_v47 = vpack.c.bf16 %v2927_v50, %v2927_v50 }
 0x284   :  { %v7378_v12 = vpop.eup %4389  ;;  %v2858_v13 = vmul.f32 %v7368_v52, %v7287_v21  ;;  %10350 = vst [vmem:[#allocation155_spill] sm:$0xff] %v7415_v22  ;;  %v7429_v22 = vmax.f32 %v7236_v20, 1e-24  ;;  %v2151_v50 = vsub.f32 1.5, %v2150_v18  ;;  %vm1913_vm3 = vweird.f32 %v7224_v45 }
 0x285   :  { %v7386_v10 = vpop.eup %4391  ;;  %v1888_v48 = vmul.f32 %v7378_v12, %v7301_v63  ;;  %1457 = vadd.xlane.f32.xlu2 %v7118_v56  ;;  %v2141_v31 = vsub.f32 1.5, %v2140_v5  ;;  %v3060_v41 = vpack.c.bf16 %v2928_v25, %v2928_v25  ;;  %v1902_v56 = vmul.f32 %v7292_v35, %v1901_v15  ;;  %vm7471_vm14 = vmor %vm1913_vm3, %vm1914_vm13 }
 0x286   :  { %v7396_v23 = vpop.eup %4393  ;;  %v2878_v42 = vmul.f32 %v7386_v10, %v7309_v36  ;;  %10352 = vst [vmem:[#allocation192_spill] sm:$0xff] %v7429_v22  ;;  %1463 = vadd.xlane.f32.xlu0 %v7184_v58  ;;  %v2859_v14 = vmul.f32 %v7368_v52, %v2858_v13  ;;  %4399 = vrsqrt.f32 %v7429_v22  ;;  %v7447_v13 = vmax.f32 %v7323_v51, 1e-24 }
 0x287   :  { %v7420_v44 = vpop.eup %4395  ;;  %v1878_v3 = vmul.f32 %v7396_v23, %v7318_v34  ;;  %v1889_v54 = vmul.f32 %v7378_v12, %v1888_v48  ;;  %v3257_v48 = vunpack.c.l.b16 %v3059_v47  ;;  %v3258_v38 = vunpack.c.l.b16 %v3060_v41  ;;  %v7449_v46 = vpop.xlane.xlu2 %1437 }
 0x288   :  { %10351 = vst [vmem:[#allocation191_spill] sm:$0xff] %v7420_v44  ;;  %v2868_v8 = vmul.f32 %v7420_v44, %v7331_v17  ;;  %v7440_v20 = vpop.eup %4397  ;;  %v2879_v58 = vmul.f32 %v7386_v10, %v2878_v42  ;;  %v1912_v21 = vmul.f32 %v7304_v27, %v1911_v29  ;;  %v7454_v5 = vmul.f32 0.5, %v2859_v14  ;;  %v7477_v14 = vpop.xlane.xlu1 %1297 }
 0x289   :  { %10354 = vst [vmem:[#allocation169_spill] sm:$0xff] %v7447_v13  ;;  %v1879_v42 = vmul.f32 %v7396_v23, %v1878_v3  ;;  %v2888_v18 = vmul.f32 %v7440_v20, %v7366_v16  ;;  %v2142_v51 = vmul.f32 %v7343_v32, %v2141_v31  ;;  %vm2144_vm7 = vweird.f32 %v7343_v32 }
 0x28a   :  { %v3306_v25 = vpack.c.b16 %v3258_v38, %v3257_v48  ;;  %v2869_v3 = vmul.f32 %v7420_v44, %v2868_v8  ;;  %v2880_v15 = vmul.f32 0.5, %v2879_v58  ;;  %v2152_v29 = vmul.f32 %v7327_v60, %v2151_v50  ;;  %v7479_v45 = vpop.xlane.xlu0 %1367  ;;  %v10365_v38 = vld [vmem:[#allocation153_spill] sm:$0xff] }
 0x28b   :  { %vm2154_vm2 = vweird.f32 %v7327_v60  ;;  %4401 = vrsqrt.f32 %v7447_v13  ;;  %vm2143_vm1 = vweird.f32 %v7280_v6  ;;  %v1906_v8 = vsel %vm7461_vm12, %v7292_v35, %v1902_v56  ;;  %v10363_v6 = vld [vmem:[#allocation163_spill] sm:$0xff]  ;;  %v10364_v35 = vld [vmem:[#allocation142_spill] sm:$0xff] }
 0x28c   :  { %3369 = vmatpush.bf16.xpose.msrb.mxu2 %v3306_v25  ;;  %v1916_v58 = vsel %vm7471_vm14, %v7304_v27, %v1912_v21  ;;  %v7490_v31 = vpop.eup %4399  ;;  %v2889_v41 = vmul.f32 %v7440_v20, %v2888_v18  ;;  %v7494_v50 = vmax.f32 %v7255_v7, 1e-24  ;;  %vm7498_vm5 = vmor %vm2143_vm1, %vm2144_vm7  ;;  %v2925_v48 = vmul.f32 %v1906_v8, %v10364_v35  ;;  %v10366_v25 = vld [vmem:[#allocation100_spill] sm:$0xff] }
 0x28d   :  { %10359 = vst [vmem:[#allocation193_spill] sm:$0xff] %v7490_v31  ;;  %1427 = vadd.xlane.f32.xlu2 %v10363_v6  ;;  %v2926_v56 = vmul.f32 %v1916_v58, %v10365_v38  ;;  %v1890_v21 = vmul.f32 0.5, %v1889_v54  ;;  %vm2153_vm6 = vweird.f32 %v7244_v4  ;;  %v7507_v27 = vmax.f32 %v7413_v59, 1e-24 }
 0x28e   :  { %1393 = vadd.xlane.f32.xlu0 %v6928_v2  ;;  %10360 = vst [vmem:[#allocation194_spill] sm:$0xff] %v7494_v50  ;;  %v2146_v7 = vsel %vm7498_vm5, %v7343_v32, %v2142_v51  ;;  %v1880_v18 = vmul.f32 0.5, %v1879_v42  ;;  %vm1893_vm0 = vweird.f32 %v7301_v63  ;;  %v2881_v47 = vsub.f32 1.5, %v2880_v15  ;;  %vm2155_vm10 = vmor %vm2153_vm6, %vm2154_vm2  ;;  %v10368_v2 = vld [vmem:[#allocation104_spill] sm:$0xff] }
 0x28f   :  { %vm2883_vm8 = vweird.f32 %v7309_v36  ;;  %vm2884_vm9 = vweird.f32 %v7386_v10  ;;  %vm1883_vm15 = vweird.f32 %v7318_v34  ;;  %v3057_v54 = vpack.c.bf16 %v2925_v48, %v2925_v48 }
 0x290   :  { %v3058_v4 = vpack.c.bf16 %v2926_v56, %v2926_v56  ;;  %v2156_v59 = vsel %vm2155_vm10, %v7327_v60, %v2152_v29  ;;  %v2949_v57 = vmul.f32 %v2146_v7, %v10366_v25  ;;  %vm1864_vm4 = vweird.f32 %v7257_v49  ;;  %v7530_v29 = vpop.xlane.xlu2 %1299  ;;  %vm7546_vm3 = vmor %vm2883_vm8, %vm2884_vm9 }
 0x291   :  { %v7521_v32 = vmul.f32 0.5, %v2869_v3  ;;  %v2890_v42 = vmul.f32 0.5, %v2889_v41  ;;  %v2488_v51 = vmul.f32 %v7490_v31, %v7429_v22  ;;  %4403 = vrsqrt.f32 %v7494_v50  ;;  %v7526_v15 = vpop.eup %4401 }
 0x292   :  { %10367 = vst [vmem:[#allocation163_spill] sm:$0xff] %v7526_v15  ;;  %4405 = vrsqrt.f32 %v7507_v27  ;;  %v3255_v8 = vunpack.c.l.b16 %v3057_v54  ;;  %v3256_v58 = vunpack.c.l.b16 %v3058_v4  ;;  %v2950_v60 = vmul.f32 %v2156_v59, %v10368_v2 }
 0x293   :  { %vm1863_vm13 = vweird.f32 %v7180_v0  ;;  %vm1874_vm11 = vweird.f32 %v7265_v19  ;;  %vm1894_vm12 = vweird.f32 %v7378_v12  ;;  %v7536_v3 = vmul.f32 %v7386_v10, %v2881_v47  ;;  %v1334_v47 = vpop.xlane.xlu0 %1333 }
 0x294   :  { %v7539_v41 = vmax.f32 %v7325_v28, 1e-24  ;;  %v3081_v6 = vpack.c.bf16 %v2949_v57, %v2949_v57  ;;  %v1881_v35 = vsub.f32 1.5, %v1880_v18  ;;  %v1891_v48 = vsub.f32 1.5, %v1890_v21  ;;  %v7555_v21 = vpop.xlane.xlu1 %1301  ;;  %vm7574_vm5 = vmor %vm1893_vm0, %vm1894_vm12 }
 0x295   :  { %v3305_v56 = vpack.c.b16 %v3256_v58, %v3255_v8  ;;  %v3082_v7 = vpack.c.bf16 %v2950_v60, %v2950_v60  ;;  %vm1873_vm7 = vweird.f32 %v7190_v61  ;;  %vm1884_vm14 = vweird.f32 %v7396_v23  ;;  %vm7615_vm8 = vmor %vm1863_vm13, %vm1864_vm4 }
 0x296   :  { %1459 = vadd.xlane.f32.xlu0 %v7129_v40  ;;  %v2489_v28 = vmul.f32 %v7490_v31, %v2488_v51  ;;  %v2798_v40 = vmul.f32 %v7526_v15, %v7447_v13  ;;  %v3279_v18 = vunpack.c.l.b16 %v3081_v6  ;;  %v2861_v36 = vsub.f32 1.5, %v7454_v5  ;;  %vm1885_vm6 = vmor %vm1883_vm15, %vm1884_vm14 }
 0x297   :  { %v2871_v54 = vsub.f32 1.5, %v7521_v32  ;;  %v2891_v4 = vsub.f32 1.5, %v2890_v42  ;;  %3370 = vmatpush.bf16.xpose.msrb.mxu2 %v3305_v56  ;;  %v3280_v59 = vunpack.c.l.b16 %v3082_v7  ;;  %v7559_v25 = vpop.eup %4403  ;;  %v2886_v57 = vsel %vm7546_vm3, %v7386_v10, %v7536_v3  ;;  %v10377_v56 = vld [vmem:[#allocation138_spill] sm:$0xff]  ;;  %vm1875_vm13 = vmor %vm1873_vm7, %vm1874_vm11 }
 0x298   :  { %10371 = vst [vmem:[#allocation142_spill] sm:$0xff] %v7559_v25  ;;  %vm2893_vm2 = vweird.f32 %v7366_v16  ;;  %vm2894_vm1 = vweird.f32 %v7440_v20  ;;  %4407 = vrsqrt.f32 %v7539_v41  ;;  %v7568_v51 = vpop.eup %4405  ;;  %v7578_v42 = vmax.f32 %v1334_v47, 1e-24  ;;  %v10389_v16 = vld [vmem:[#allocation141_spill] sm:$0xff] }
 0x299   :  { %v3317_v32 = vpack.c.b16 %v3280_v59, %v3279_v18  ;;  %v1882_v10 = vmul.f32 %v7396_v23, %v1881_v35  ;;  %v1892_v8 = vmul.f32 %v7378_v12, %v1891_v48  ;;  %v2490_v58 = vmul.f32 0.5, %v2489_v28  ;;  %vm7642_vm10 = vmor %vm2893_vm2, %vm2894_vm1 }
 0x29a   :  { %v2799_v2 = vmul.f32 %v7526_v15, %v2798_v40  ;;  %v7588_v63 = vmax.f32 %v7340_v37, 1e-24  ;;  %v10375_v60 = vsub.f32 1.5, %v7382_v9  ;;  %v2892_v6 = vmul.f32 %v7440_v20, %v2891_v4  ;;  %v10376_v9 = vld [vmem:[#allocation136_spill] sm:$0xff] }
 0x29b   :  { %3402 = vmatpush.bf16.xpose.msra.mxu1 %v3317_v32  ;;  %4409 = vrsqrt.f32 %v7578_v42  ;;  %v1886_v35 = vsel %vm1885_vm6, %v7396_v23, %v1882_v10  ;;  %v1896_v34 = vsel %vm7574_vm5, %v7378_v12, %v1892_v8  ;;  %v2658_v48 = vmul.f32 %v7559_v25, %v7494_v50 }
 0x29c   :  { %10374 = vst [vmem:[#allocation153_spill] sm:$0xff] %v7588_v63  ;;  %v1862_v3 = vmul.f32 %v7257_v49, %v10375_v60  ;;  %v2128_v37 = vmul.f32 %v7568_v51, %v7507_v27  ;;  %v2923_v38 = vmul.f32 %v1886_v35, %v10376_v9  ;;  %v2924_v7 = vmul.f32 %v1896_v34, %v10377_v56 }
 0x29d   :  { %vm1844_vm0 = vweird.f32 %v7075_v1  ;;  %v10378_v28 = vsub.f32 1.5, %v7380_v33  ;;  %v10382_v40 = vsub.f32 1.5, %v7388_v55  ;;  %v7625_v47 = vmul.f32 %v7368_v52, %v2861_v36  ;;  %v7627_v33 = vpop.xlane.xlu2 %1303 }
 0x29e   :  { %v10385_v4 = vsub.f32 1.5, %v7390_v39  ;;  %v7632_v5 = vpop.eup %4407  ;;  %vm1854_vm9 = vweird.f32 %v7149_v62  ;;  %v7636_v0 = vmul.f32 %v7420_v44, %v2871_v54  ;;  %4411 = vrsqrt.f32 %v7588_v63  ;;  %v7647_v39 = vpop.xlane.xlu1 %1305 }
 0x29f   :  { %v7609_v23 = vmul.f32 %v7246_v26, %v10378_v28  ;;  %v7622_v18 = vmul.f32 %v7283_v30, %v10382_v40  ;;  %10384 = vst [vmem:[#allocation136_spill] sm:$0xff] %v7625_v47  ;;  %v3055_v36 = vpack.c.bf16 %v2923_v38, %v2923_v38  ;;  %v1866_v32 = vsel %vm7615_vm8, %v7257_v49, %v1862_v3  ;;  %v10391_v38 = vld [vmem:[#allocation122_spill] sm:$0xff]  ;;  %v10520_v30 = vld [vmem:[#allocation161_spill] sm:$0xff] }
 0x2a0   :  { %v1872_v59 = vmul.f32 %v7265_v19, %v10385_v4  ;;  %10386 = vst [vmem:[#allocation138_spill] sm:$0xff] %v7636_v0  ;;  %vm1824_vm15 = vweird.f32 %v6990_v11  ;;  %vm1843_vm4 = vweird.f32 %v6965_v43  ;;  %v7659_v54 = vmul.f32 %v2886_v57, %v10389_v16  ;;  %v10399_v4 = vld [vmem:[#allocation155_spill] sm:$0xff] }
 0x2a1   :  { %10379 = vst [vmem:[#allocation100_spill] sm:$0xff] %v7609_v23  ;;  %v2896_v10 = vsel %vm7642_vm10, %v7440_v20, %v2892_v6  ;;  %v2491_v8 = vsub.f32 1.5, %v2490_v58  ;;  %v3056_v60 = vpack.c.bf16 %v2924_v7, %v2924_v7  ;;  %vm1853_vm12 = vweird.f32 %v7057_v24  ;;  %v7668_v61 = vpop.eup %4409  ;;  %v10392_v20 = vld [vmem:[#allocation133_spill] sm:$0xff]  ;;  %v10394_v7 = vld [vmem:[#allocation166_spill] sm:$0xff]  ;;  %vm7721_vm1 = vmor %vm1843_vm4, %vm1844_vm0 }
 0x2a2   :  { %10383 = vst [vmem:[#allocation104_spill] sm:$0xff] %v7622_v18  ;;  %v2659_v49 = vmul.f32 %v7559_v25, %v2658_v48  ;;  %v2800_v3 = vmul.f32 0.5, %v2799_v2  ;;  %v2129_v35 = vmul.f32 %v7568_v51, %v2128_v37  ;;  %v1876_v34 = vsel %vm1875_vm13, %v7265_v19, %v1872_v59  ;;  %v10393_v6 = vld [vmem:[#allocation37_spill] sm:$0xff]  ;;  %v10396_v48 = vld [vmem:[#allocation162_spill] sm:$0xff]  ;;  %vm1855_vm5 = vmor %vm1853_vm12, %vm1854_vm9  ;;  %v1440_v18 = vpop.xlane.xlu0 %1439 }
 0x2a3   :  { %10390 = vst [vmem:[#allocation141_spill] sm:$0xff] %v7659_v54  ;;  %vm1823_vm11 = vweird.f32 %v6843_v53  ;;  %v3253_v57 = vunpack.c.l.b16 %v3055_v36  ;;  %v3254_v9 = vunpack.c.l.b16 %v3056_v60  ;;  %v2921_v56 = vmul.f32 %v1866_v32, %v10391_v38  ;;  %v10402_v32 = vld [vmem:[#allocation38_spill] sm:$0xff] }
 0x2a4   :  { %v2922_v58 = vmul.f32 %v1876_v34, %v10392_v20  ;;  %vm1834_vm3 = vweird.f32 %v10393_v6  ;;  %v7675_v28 = vmul.f32 %v2896_v10, %v10394_v7  ;;  %v2278_v2 = vmul.f32 %v7632_v5, %v7539_v41  ;;  %v7692_v36 = vpop.eup %4411  ;;  %vm7747_vm0 = vmor %vm1823_vm11, %vm1824_vm15 }
 0x2a5   :  { %v7680_v19 = vmax.f32 %v10396_v48, 1e-24  ;;  %v2118_v37 = vmul.f32 %v7668_v61, %v7578_v42  ;;  %v7687_v40 = vmul.f32 %v7490_v31, %v2491_v8  ;;  %v7690_v59 = vmax.f32 %v10399_v4, 1e-24  ;;  %10401 = vst [vmem:[#allocation162_spill] sm:$0xff] %v7692_v36  ;;  %v10420_v31 = vld [vmem:[#allocation124_spill] sm:$0xff] }
 0x2a6   :  { %10395 = vst [vmem:[#allocation122_spill] sm:$0xff] %v7675_v28  ;;  %v3304_v55 = vpack.c.b16 %v3254_v9, %v3253_v57  ;;  %vm1833_vm7 = vweird.f32 %v10402_v32  ;;  %v2801_v16 = vsub.f32 1.5, %v2800_v3  ;;  %v3053_v60 = vpack.c.bf16 %v2921_v56, %v2921_v56  ;;  %v7706_v7 = vpop.xlane.xlu1 %1309  ;;  %v10404_v56 = vld [vmem:[#allocation179_spill] sm:$0xff]  ;;  %v10410_v57 = vld [vmem:[#allocation177_spill] sm:$0xff] }
 0x2a7   :  { %10397 = vst [vmem:[#allocation133_spill] sm:$0xff] %v7680_v19  ;;  %v2119_v10 = vmul.f32 %v7668_v61, %v2118_v37  ;;  %v3054_v34 = vpack.c.bf16 %v2922_v58, %v2922_v58  ;;  %v7696_v38 = vmul.f32 0.5, %v2659_v49  ;;  %v2130_v20 = vmul.f32 0.5, %v2129_v35  ;;  %v7712_v35 = vpop.xlane.xlu2 %1307  ;;  %vm7783_vm13 = vmor %vm1833_vm7, %vm1834_vm3  ;;  %v10440_v32 = vld [vmem:[#allocation95_spill] sm:$0xff] }
 0x2a8   :  { %10398 = vst [vmem:[#allocation37_spill] sm:$0xff] %v7687_v40  ;;  %vm2134_vm14 = vweird.f32 %v7568_v51  ;;  %v7700_v8 = vmax.f32 %v7477_v14, 1e-24  ;;  %3371 = vmatpush.bf16.xpose.msrb.mxu2 %v3304_v55  ;;  %v2279_v9 = vmul.f32 %v7632_v5, %v2278_v2  ;;  %4413 = vrsqrt.f32 %v7680_v19  ;;  %v10408_v55 = vld [vmem:[#allocation183_spill] sm:$0xff]  ;;  %v10422_v2 = vld [vmem:[#allocation29_spill] sm:$0xff] }
 0x2a9   :  { %10400 = vst [vmem:[#allocation166_spill] sm:$0xff] %v7690_v59  ;;  %v2120_v3 = vmul.f32 0.5, %v2119_v10  ;;  %vm2133_vm2 = vweird.f32 %v7507_v27  ;;  %v2668_v49 = vmul.f32 %v7692_v36, %v7588_v63  ;;  %4415 = vrsqrt.f32 %v7690_v59  ;;  %v10442_v27 = vld [vmem:[#allocation44_spill] sm:$0xff] }
 0x2aa   :  { %10403 = vst [vmem:[#allocation155_spill] sm:$0xff] %v7700_v8  ;;  %v3252_v14 = vunpack.c.l.b16 %v3054_v34  ;;  %v10405_v58 = vsub.f32 1.5, %v10404_v56  ;;  %v3251_v4 = vunpack.c.l.b16 %v3053_v60  ;;  %v10409_v10 = vsub.f32 1.5, %v10408_v55 }
 0x2ab   :  { %v2121_v37 = vsub.f32 1.5, %v2120_v3  ;;  %v10411_v12 = vsub.f32 1.5, %v10410_v57  ;;  %v7736_v43 = vmul.f32 %v7526_v15, %v2801_v16  ;;  %4417 = vrsqrt.f32 %v7700_v8  ;;  %v10414_v3 = vld [vmem:[#allocation131_spill] sm:$0xff]  ;;  %v10417_v57 = vld [vmem:[#allocation80_spill] sm:$0xff] }
 0x2ac   :  { %v1842_v48 = vmul.f32 %v7075_v1, %v10405_v58  ;;  %v1852_v34 = vmul.f32 %v7149_v62, %v10409_v10  ;;  %v2131_v58 = vsub.f32 1.5, %v2130_v20  ;;  %v7740_v60 = vmax.f32 %v7449_v46, 1e-24  ;;  %v10418_v10 = vld [vmem:[#allocation93_spill] sm:$0xff] }
 0x2ad   :  { %v1822_v56 = vmul.f32 %v6990_v11, %v10411_v12  ;;  %10412 = vst [vmem:[#allocation38_spill] sm:$0xff] %v7736_v43  ;;  %vm1804_vm6 = vweird.f32 %v10414_v3  ;;  %vm2124_vm8 = vweird.f32 %v7668_v61  ;;  %v3303_v24 = vpack.c.b16 %v3252_v14, %v3251_v4  ;;  %v10421_v14 = vld [vmem:[#allocation65_spill] sm:$0xff]  ;;  %v10437_v43 = vld [vmem:[#allocation78_spill] sm:$0xff] }
 0x2ae   :  { %10413 = vst [vmem:[#allocation179_spill] sm:$0xff] %v7740_v60  ;;  %v1846_v16 = vsel %vm7721_vm1, %v7075_v1, %v1842_v48  ;;  %v1856_v46 = vsel %vm1855_vm5, %v7149_v62, %v1852_v34  ;;  %v2122_v20 = vmul.f32 %v7668_v61, %v2121_v37  ;;  %v7762_v22 = vpop.eup %4413  ;;  %vm2703_vm9 = vweird.f32 %v10420_v31  ;;  %v10423_v37 = vld [vmem:[#allocation180_spill] sm:$0xff] }
 0x2af   :  { %v2919_v55 = vmul.f32 %v1846_v16, %v10417_v57  ;;  %v2920_v40 = vmul.f32 %v1856_v46, %v10418_v10  ;;  %v1826_v53 = vsel %vm7747_vm0, %v6990_v11, %v1822_v56  ;;  %10419 = vst [vmem:[#allocation183_spill] sm:$0xff] %v7762_v22  ;;  %vm2704_vm10 = vweird.f32 %v10421_v14  ;;  %v7776_v11 = vpop.eup %4415  ;;  %v10426_v56 = vld [vmem:[#allocation102_spill] sm:$0xff]  ;;  %v10429_v16 = vld [vmem:[#allocation28_spill] sm:$0xff]  ;;  %vm2135_vm0 = vmor %vm2133_vm2, %vm2134_vm14 }
 0x2b0   :  { %vm1803_vm15 = vweird.f32 %v10422_v2  ;;  %v7767_v1 = vmul.f32 0.5, %v2279_v9  ;;  %v2669_v62 = vmul.f32 %v7692_v36, %v2668_v49  ;;  %v7771_v48 = vmax.f32 %v7479_v45, 1e-24  ;;  %10425 = vst [vmem:[#allocation177_spill] sm:$0xff] %v7776_v11  ;;  %3372 = vmatpush.bf16.xpose.msrb.mxu2 %v3303_v24 }
 0x2b1   :  { %v10424_v4 = vsub.f32 1.5, %v10423_v37  ;;  %vm1814_vm4 = vweird.f32 %v10426_v56  ;;  %v2132_v49 = vmul.f32 %v7568_v51, %v2131_v58  ;;  %vm2123_vm12 = vweird.f32 %v7578_v42  ;;  %v10433_v58 = vld [vmem:[#allocation73_spill] sm:$0xff]  ;;  %v7806_v57 = vpop.eup %4417  ;;  %vm1805_vm2 = vmor %vm1803_vm15, %vm1804_vm6 }
 0x2b2   :  { %v3051_v45 = vpack.c.bf16 %v2919_v55, %v2919_v55  ;;  %v3052_v12 = vpack.c.bf16 %v2920_v40, %v2920_v40  ;;  %vm1784_vm11 = vweird.f32 %v10429_v16  ;;  %4419 = vrsqrt.f32 %v7740_v60  ;;  %vm7796_vm3 = vmor %vm2123_vm12, %vm2124_vm8  ;;  %v7804_v40 = vpop.xlane.xlu1 %1313  ;;  %10434 = vst [vmem:[#allocation80_spill] sm:$0xff] %v7806_v57  ;;  %v10435_v55 = vld [vmem:[#allocation21_spill] sm:$0xff] }
 0x2b3   :  { %v1832_v34 = vmul.f32 %v10393_v6, %v10424_v4  ;;  %v7792_v46 = vmax.f32 %v7555_v21, 1e-24  ;;  %v2917_v24 = vmul.f32 %v1826_v53, %v10433_v58  ;;  %vm1794_vm7 = vweird.f32 %v10435_v55  ;;  %v10436_v21 = vld [vmem:[#allocation55_spill] sm:$0xff]  ;;  %v7810_v4 = vpop.xlane.xlu2 %1311  ;;  %v10441_v58 = vld [vmem:[#allocation53_spill] sm:$0xff]  ;;  %vm7868_vm6 = vmor %vm2703_vm9, %vm2704_vm10 }
 0x2b4   :  { %vm1813_vm1 = vweird.f32 %v10436_v21  ;;  %v3249_v10 = vunpack.c.l.b16 %v3051_v45  ;;  %v3250_v37 = vunpack.c.l.b16 %v3052_v12  ;;  %v2808_v53 = vmul.f32 %v7762_v22, %v7680_v19  ;;  %v10439_v45 = vld [vmem:[#allocation16_spill] sm:$0xff] }
 0x2b5   :  { %10430 = vst [vmem:[#allocation131_spill] sm:$0xff] %v7792_v46  ;;  %v1836_v42 = vsel %vm7783_vm13, %v10393_v6, %v1832_v34  ;;  %v2126_v6 = vsel %vm7796_vm3, %v7668_v61, %v2122_v20  ;;  %v10438_v34 = vld [vmem:[#allocation56_spill] sm:$0xff]  ;;  %v2478_v9 = vmul.f32 %v7776_v11, %v7690_v59  ;;  %4421 = vrsqrt.f32 %v7771_v48  ;;  %vm1815_vm9 = vmor %vm1813_vm1, %vm1814_vm4 }
 0x2b6   :  { %v2918_v13 = vmul.f32 %v1836_v42, %v10437_v43  ;;  %vm1783_vm5 = vweird.f32 %v10438_v34  ;;  %v3049_v43 = vpack.c.bf16 %v2917_v24, %v2917_v24  ;;  %vm1793_vm8 = vweird.f32 %v10439_v45  ;;  %v10443_v24 = vld [vmem:[#allocation96_spill] sm:$0xff]  ;;  %v10477_v34 = vld [vmem:[#allocation41_spill] sm:$0xff] }
 0x2b7   :  { %v3302_v12 = vpack.c.b16 %v3250_v37, %v3249_v10  ;;  %v2136_v20 = vsel %vm2135_vm0, %v7568_v51, %v2132_v49  ;;  %v2947_v42 = vmul.f32 %v2126_v6, %v10440_v32  ;;  %vm2713_vm13 = vweird.f32 %v10441_v58  ;;  %v10444_v37 = vld [vmem:[#allocation160_spill] sm:$0xff]  ;;  %vm7898_vm10 = vmor %vm1783_vm5, %vm1784_vm11 }
 0x2b8   :  { %v3050_v61 = vpack.c.bf16 %v2918_v13, %v2918_v13  ;;  %vm2714_vm14 = vweird.f32 %v10442_v27  ;;  %v1938_v59 = vmul.f32 %v7806_v57, %v7700_v8  ;;  %v2948_v15 = vmul.f32 %v2136_v20, %v10443_v24  ;;  %v7839_v6 = vpop.eup %4419  ;;  %v10454_v24 = vld [vmem:[#allocation68_spill] sm:$0xff]  ;;  %vm7912_vm15 = vmor %vm1793_vm8, %vm1794_vm7 }
 0x2b9   :  { %v3247_v50 = vunpack.c.l.b16 %v3049_v43  ;;  %v3079_v13 = vpack.c.bf16 %v2947_v42, %v2947_v42  ;;  %v10445_v51 = vsub.f32 1.5, %v10444_v37  ;;  %10446 = vst [vmem:[#allocation93_spill] sm:$0xff] %v7839_v6  ;;  %v7841_v32 = vmul.f32 0.5, %v2669_v62  ;;  %3373 = vmatpush.bf16.xpose.msrb.mxu2 %v3302_v12  ;;  %vm7944_vm4 = vmor %vm2713_vm13, %vm2714_vm14 }
 0x2ba   :  { %v3248_v10 = vunpack.c.l.b16 %v3050_v61  ;;  %v2809_v19 = vmul.f32 %v7762_v22, %v2808_v53  ;;  %v2479_v63 = vmul.f32 %v7776_v11, %v2478_v9  ;;  %v3080_v23 = vpack.c.bf16 %v2948_v15, %v2948_v15  ;;  %v7862_v42 = vpop.xlane.xlu1 %1403 }
 0x2bb   :  { %v1802_v49 = vmul.f32 %v10414_v3, %v10445_v51  ;;  %4423 = vrsqrt.f32 %v7792_v46  ;;  %v7851_v43 = vmax.f32 %v7530_v29, 1e-24  ;;  %v3277_v62 = vunpack.c.l.b16 %v3079_v13  ;;  %v7853_v20 = vpop.eup %4421 }
 0x2bc   :  { %v3301_v61 = vpack.c.b16 %v3248_v10, %v3247_v50  ;;  %v7856_v53 = vmul.f32 %v7806_v57, %v1938_v59  ;;  %v7859_v15 = vmax.f32 %v7647_v39, 1e-24  ;;  %v3278_v9 = vunpack.c.l.b16 %v3080_v23  ;;  %v10452_v59 = vld [vmem:[#allocation170_spill] sm:$0xff]  ;;  %v7878_v10 = vpop.xlane.xlu2 %1315 }
 0x2bd   :  { %10447 = vst [vmem:[#allocation124_spill] sm:$0xff] %v7851_v43  ;;  %v1806_v2 = vsel %vm1805_vm2, %v10414_v3, %v1802_v49  ;;  %v7872_v29 = vmax.f32 %v1440_v18, 1e-24  ;;  %v10453_v12 = vsub.f32 1.5, %v10452_v59  ;;  %v10455_v3 = vld [vmem:[#allocation35_spill] sm:$0xff]  ;;  %v7887_v31 = vmul.f32 0.5, %v2809_v19 }
 0x2be   :  { %10448 = vst [vmem:[#allocation65_spill] sm:$0xff] %v7859_v15  ;;  %v2915_v23 = vmul.f32 %v1806_v2, %v10454_v24  ;;  %v10456_v13 = vsub.f32 1.5, %v10455_v3  ;;  %v7889_v18 = vmul.f32 0.5, %v2479_v63  ;;  %v3316_v51 = vpack.c.b16 %v3278_v9, %v3277_v62  ;;  %v10457_v49 = vld [vmem:[#allocation39_spill] sm:$0xff]  ;;  %v10464_v9 = vld [vmem:[#allocation76_spill] sm:$0xff] }
 0x2bf   :  { %10451 = vst [vmem:[#allocation29_spill] sm:$0xff] %v7872_v29  ;;  %v1812_v39 = vmul.f32 %v10426_v56, %v10453_v12  ;;  %v10458_v59 = vsub.f32 1.5, %v10457_v49  ;;  %v2638_v21 = vmul.f32 %v7839_v6, %v7740_v60  ;;  %v2288_v63 = vmul.f32 %v7853_v20, %v7771_v48  ;;  %v10467_v49 = vld [vmem:[#allocation69_spill] sm:$0xff] }
 0x2c0   :  { %v1782_v37 = vmul.f32 %v10429_v16, %v10456_v13  ;;  %4425 = vrsqrt.f32 %v7851_v43  ;;  %v7918_v62 = vmax.f32 %v7627_v33, 1e-24  ;;  %3403 = vmatpush.bf16.xpose.msra.mxu1 %v3316_v51  ;;  %v3047_v3 = vpack.c.bf16 %v2915_v23, %v2915_v23 }
 0x2c1   :  { %v1792_v2 = vmul.f32 %v10435_v55, %v10458_v59  ;;  %v1816_v19 = vsel %vm1815_vm9, %v10426_v56, %v1812_v39  ;;  %4427 = vrsqrt.f32 %v7859_v15  ;;  %v7921_v13 = vpop.eup %4423  ;;  %v7925_v56 = vmax.f32 %v7712_v35, 1e-24  ;;  %3374 = vmatpush.bf16.xpose.msrb.mxu2 %v3301_v61 }
 0x2c2   :  { %10463 = vst [vmem:[#allocation180_spill] sm:$0xff] %v7918_v62  ;;  %v2916_v24 = vmul.f32 %v1816_v19, %v10464_v9  ;;  %4429 = vrsqrt.f32 %v7872_v29  ;;  %v1786_v45 = vsel %vm7898_vm10, %v10429_v16, %v1782_v37  ;;  %v7934_v39 = vmax.f32 %v7706_v7, 1e-24  ;;  %v10470_v16 = vld [vmem:[#allocation70_spill] sm:$0xff]  ;;  %v10471_v37 = vld [vmem:[#allocation17_spill] sm:$0xff] }
 0x2c3   :  { %10465 = vst [vmem:[#allocation102_spill] sm:$0xff] %v7921_v13  ;;  %v1796_v33 = vsel %vm7912_vm15, %v10435_v55, %v1792_v2  ;;  %v7937_v23 = vmax.f32 %v7810_v4, 1e-24  ;;  %v2913_v59 = vmul.f32 %v1786_v45, %v10467_v49  ;;  %v10472_v7 = vpack.c.bf16 %v10471_v37, %v10471_v37  ;;  %v10474_v4 = vld [vmem:[#allocation91_spill] sm:$0xff]  ;;  %v7963_v45 = vpop.xlane.xlu1 %1465 }
 0x2c4   :  { %10466 = vst [vmem:[#allocation28_spill] sm:$0xff] %v7925_v56  ;;  %v3048_v51 = vpack.c.bf16 %v2916_v24, %v2916_v24  ;;  %v2914_v55 = vmul.f32 %v1796_v33, %v10470_v16  ;;  %v10475_v12 = vpack.c.bf16 %v10474_v4, %v10474_v4  ;;  %v2706_v58 = vsel %vm7868_vm6, %v10421_v14, %v10477_v34  ;;  %v10478_v33 = vld [vmem:[#allocation58_spill] sm:$0xff]  ;;  %v1318_v4 = vpop.xlane.xlu2 %1317 }
 0x2c5   :  { %v7952_v2 = vunpack.c.l.b16 %v10472_v7  ;;  %v3245_v9 = vunpack.c.l.b16 %v3047_v3  ;;  %v3045_v61 = vpack.c.bf16 %v2913_v59, %v2913_v59  ;;  %v2716_v49 = vsel %vm7944_vm4, %v10442_v27, %v10478_v33  ;;  %v10481_v27 = vld [vmem:[#allocation46_spill] sm:$0xff] }
 0x2c6   :  { %v7957_v19 = vunpack.c.l.b16 %v10475_v12  ;;  %v3246_v24 = vunpack.c.l.b16 %v3048_v51  ;;  %v7969_v16 = vpop.eup %4425  ;;  %4431 = vrsqrt.f32 %v7918_v62  ;;  %v7973_v37 = vmax.f32 %v7804_v40, 1e-24  ;;  %v10483_v12 = vld [vmem:[#allocation49_spill] sm:$0xff] }
 0x2c7   :  { %10473 = vst [vmem:[#allocation73_spill] sm:$0xff] %v7952_v2  ;;  %v3046_v7 = vpack.c.bf16 %v2914_v55, %v2914_v55  ;;  %v7977_v50 = vpop.eup %4427  ;;  %v1958_v3 = vmul.f32 %v7921_v13, %v7792_v46  ;;  %4433 = vrsqrt.f32 %v7925_v56  ;;  %v3005_v59 = vmul.f32 %v2706_v58, %v10481_v27 }
 0x2c8   :  { %10476 = vst [vmem:[#allocation21_spill] sm:$0xff] %v7957_v19  ;;  %v3300_v51 = vpack.c.b16 %v3246_v24, %v3245_v9  ;;  %v7983_v35 = vpop.eup %4429  ;;  %4435 = vrsqrt.f32 %v7934_v39  ;;  %v7986_v40 = vunpack.c.l.b16 %v3045_v61  ;;  %v3006_v34 = vmul.f32 %v2716_v49, %v10483_v12 }
 0x2c9   :  { %10479 = vst [vmem:[#allocation55_spill] sm:$0xff] %v7969_v16  ;;  %v7988_v55 = vunpack.c.l.b16 %v3046_v7  ;;  %v2671_v33 = vsub.f32 1.5, %v7841_v32  ;;  %v7993_v14 = vmul.f32 0.5, %v7856_v53  ;;  %4437 = vrsqrt.f32 %v7937_v23 }
 0x2ca   :  { %10480 = vst [vmem:[#allocation78_spill] sm:$0xff] %v7977_v50  ;;  %v7996_v9 = vmax.f32 %v1318_v4, 1e-24  ;;  %v2639_v58 = vmul.f32 %v7839_v6, %v2638_v21  ;;  %v2289_v24 = vmul.f32 %v7853_v20, %v2288_v63  ;;  %4439 = vrsqrt.f32 %v7973_v37  ;;  %v10488_v21 = vld [vmem:[#allocation123_spill] sm:$0xff]  ;;  %v10489_v63 = vld [vmem:[#allocation45_spill] sm:$0xff]  ;;  %3375 = vmatpush.bf16.xpose.msrb.mxu2 %v3300_v51 }
 0x2cb   :  { %10482 = vst [vmem:[#allocation56_spill] sm:$0xff] %v7983_v35  ;;  %v3299_v61 = vpack.c.b16 %v7988_v55, %v7986_v40  ;;  %v10485_v49 = vsub.f32 1.5, %v7696_v38  ;;  %v2811_v53 = vsub.f32 1.5, %v7887_v31  ;;  %v3137_v7 = vpack.c.bf16 %v3005_v59, %v3005_v59 }
 0x2cc   :  { %10484 = vst [vmem:[#allocation16_spill] sm:$0xff] %v7993_v14  ;;  %4441 = vrsqrt.f32 %v7996_v9  ;;  %v8010_v27 = vpop.eup %4431  ;;  %vm2323_vm12 = vweird.f32 %v10488_v21  ;;  %vm2324_vm11 = vweird.f32 %v10489_v63  ;;  %v10490_v4 = vsub.f32 1.5, %v7767_v1 }
 0x2cd   :  { %v8006_v32 = vmul.f32 %v7559_v25, %v10485_v49  ;;  %10487 = vst [vmem:[#allocation53_spill] sm:$0xff] %v8010_v27  ;;  %v2481_v38 = vsub.f32 1.5, %v7889_v18  ;;  %v1959_v55 = vmul.f32 %v7921_v13, %v1958_v3  ;;  %v3138_v31 = vpack.c.bf16 %v3006_v34, %v3006_v34  ;;  %v8021_v12 = vpop.eup %4433  ;;  %v10493_v18 = vld [vmem:[#allocation156_spill] sm:$0xff]  ;;  %vm8118_vm13 = vmor %vm2323_vm12, %vm2324_vm11  ;;  %v10519_v13 = vld [vmem:[#allocation186_spill] sm:$0xff] }
 0x2ce   :  { %v8017_v40 = vmul.f32 %v7632_v5, %v10490_v4  ;;  %10491 = vst [vmem:[#allocation44_spill] sm:$0xff] %v8021_v12  ;;  %v8024_v59 = vmul.f32 %v7692_v36, %v2671_v33  ;;  %v1978_v1 = vmul.f32 %v7977_v50, %v7859_v15  ;;  %v1332_v4 = vpop.xlane.xlu1 %1331  ;;  %v8031_v60 = vpop.eup %4435  ;;  %vm2333_vm3 = vweird.f32 %v10493_v18  ;;  %v10494_v3 = vld [vmem:[#allocation24_spill] sm:$0xff] }
 0x2cf   :  { %10486 = vst [vmem:[#allocation95_spill] sm:$0xff] %v8006_v32  ;;  %v1948_v32 = vmul.f32 %v7969_v16, %v7851_v43  ;;  %vm2334_vm7 = vweird.f32 %v10494_v3  ;;  %v2640_v51 = vmul.f32 0.5, %v2639_v58  ;;  %v2290_v34 = vmul.f32 0.5, %v2289_v24  ;;  %v8039_v36 = vpop.eup %4437 }
 0x2d0   :  { %10492 = vst [vmem:[#allocation96_spill] sm:$0xff] %v8024_v59  ;;  %v2648_v33 = vmul.f32 %v7983_v35, %v7872_v29  ;;  %v1320_v59 = vpop.xlane.xlu0 %1319  ;;  %v8037_v49 = vunpack.c.l.b16 %v3138_v31  ;;  %v8042_v14 = vmul.f32 %v7762_v22, %v2811_v53  ;;  %v8045_v25 = vmax.f32 %v7862_v42, 1e-24  ;;  %v8051_v58 = vpop.eup %4439  ;;  %vm8139_vm14 = vmor %vm2333_vm3, %vm2334_vm7 }
 0x2d1   :  { %v8047_v2 = vmax.f32 %v1320_v59, 1e-24  ;;  %v8049_v19 = vunpack.c.l.b16 %v3137_v7  ;;  %v8054_v24 = vmul.f32 %v7776_v11, %v2481_v38  ;;  %v8056_v29 = vmul.f32 0.5, %v1959_v55 }
 0x2d2   :  { %10495 = vst [vmem:[#allocation160_spill] sm:$0xff] %v8037_v49  ;;  %v1968_v31 = vmul.f32 %v8010_v27, %v7918_v62  ;;  %v8061_v53 = vmax.f32 %v7878_v10, 1e-24  ;;  %v8063_v42 = vpop.eup %4441  ;;  %v1949_v59 = vmul.f32 %v7969_v16, %v1948_v32  ;;  %v1979_v7 = vmul.f32 %v7977_v50, %v1978_v1  ;;  %3376 = vmatpush.bf16.xpose.msrb.mxu2 %v3299_v61  ;;  %v10507_v16 = vld [vmem:[#allocation31_spill] sm:$0xff] }
 0x2d3   :  { %10496 = vst [vmem:[#allocation170_spill] sm:$0xff] %v8042_v14  ;;  %v1362_v14 = vpop.xlane.xlu2 %1361  ;;  %4443 = vrsqrt.f32 %v8047_v2  ;;  %v2641_v55 = vsub.f32 1.5, %v2640_v51  ;;  %v2649_v11 = vmul.f32 %v7983_v35, %v2648_v33  ;;  %v8072_v22 = vmax.f32 %v7963_v45, 1e-24  ;;  %v10503_v33 = vld [vmem:[#allocation121_spill] sm:$0xff] }
 0x2d4   :  { %10497 = vst [vmem:[#allocation68_spill] sm:$0xff] %v8045_v25  ;;  %v1988_v10 = vmul.f32 %v8021_v12, %v7925_v56  ;;  %v1998_v32 = vmul.f32 %v8031_v60, %v7934_v39  ;;  %v2008_v1 = vmul.f32 %v8039_v36, %v7937_v23  ;;  %4445 = vrsqrt.f32 %v8045_v25  ;;  %v10530_v56 = vld [vmem:[#allocation79_spill] sm:$0xff] }
 0x2d5   :  { %10498 = vst [vmem:[#allocation35_spill] sm:$0xff] %v8049_v19  ;;  %v1969_v38 = vmul.f32 %v8010_v27, %v1968_v31  ;;  %v2018_v51 = vmul.f32 %v8051_v58, %v7973_v37  ;;  %4447 = vrsqrt.f32 %v8061_v53  ;;  %v2038_v45 = vmul.f32 %v8063_v42, %v7996_v9  ;;  %v10506_v31 = vld [vmem:[#allocation144_spill] sm:$0xff] }
 0x2d6   :  { %10499 = vst [vmem:[#allocation39_spill] sm:$0xff] %v8054_v24  ;;  %v2291_v24 = vsub.f32 1.5, %v2290_v34  ;;  %v10502_v34 = vld [vmem:[#allocation26_spill] sm:$0xff]  ;;  %vm2684_vm5 = vweird.f32 %v10503_v33  ;;  %v8090_v49 = vmul.f32 0.5, %v1949_v59  ;;  %v8092_v43 = vmul.f32 0.5, %v1979_v7  ;;  %v8099_v61 = vpop.xlane.xlu1 %1397 }
 0x2d7   :  { %10500 = vst [vmem:[#allocation76_spill] sm:$0xff] %v8056_v29  ;;  %vm2683_vm1 = vweird.f32 %v10502_v34  ;;  %v10508_v8 = vpack.c.b16 %v10506_v31, %v10507_v16  ;;  %v8097_v57 = vmax.f32 %v1332_v4, 1e-24  ;;  %v8102_v62 = vmul.f32 %v7839_v6, %v2641_v55  ;;  %v8108_v7 = vld [vmem:[#allocation5] sm:$0xf] }
 0x2d8   :  { %10501 = vst [vmem:[#allocation69_spill] sm:$0xff] %v8072_v22  ;;  %v8105_v0 = vmul.f32 %v7853_v20, %v2291_v24  ;;  %v2650_v46 = vmul.f32 0.5, %v2649_v11  ;;  %4449 = vrsqrt.f32 %v8072_v22  ;;  %v1402_v59 = vpop.xlane.xlu0 %1401  ;;  %v10511_v16 = vld [vmem:[#allocation116_spill] sm:$0xff]  ;;  %v1989_v11 = vmul.f32 %v8021_v12, %v1988_v10  ;;  %v10527_v10 = vld [vmem:[#allocation82_spill] sm:$0xff]  ;;  %vm8202_vm9 = vmor %vm2683_vm1, %vm2684_vm5 }
 0x2d9   :  { %10504 = vst [vmem:[#allocation70_spill] sm:$0xff] %v8090_v49  ;;  %v8110_v19 = vpop.eup %4443  ;;  %vm2693_vm0 = vweird.f32 %v10511_v16  ;;  %v1999_v24 = vmul.f32 %v8031_v60, %v1998_v32  ;;  %v2009_v55 = vmul.f32 %v8039_v36, %v2008_v1  ;;  %v8125_v31 = vmax.f32 %v1362_v14, 1e-24 }
 0x2da   :  { %10505 = vst [vmem:[#allocation17_spill] sm:$0xff] %v8092_v43  ;;  %3609 = vmatpush.bf16.xpose.msra.mxu2 %v10508_v8  ;;  %v10512_v8 = vld [vmem:[#allocation174_spill] sm:$0xff]  ;;  %v2019_v6 = vmul.f32 %v8051_v58, %v2018_v51  ;;  %v2039_v29 = vmul.f32 %v8063_v42, %v2038_v45  ;;  %v2048_v21 = vmul.f32 %v8110_v19, %v8047_v2  ;;  %v8133_v47 = vpop.eup %4445  ;;  %4451 = vrsqrt.f32 %v8097_v57 }
 0x2db   :  { %10509 = vst [vmem:[#allocation91_spill] sm:$0xff] %v8097_v57  ;;  %vm2694_vm8 = vweird.f32 %v10512_v8  ;;  %v1468_v27 = vpop.xlane.xlu2 %1467  ;;  %v8147_v1 = vpop.eup %4447  ;;  %v2651_v51 = vsub.f32 1.5, %v2650_v46  ;;  %v2326_v18 = vsel %vm8118_vm13, %v10489_v63, %v10519_v13  ;;  %v2336_v14 = vsel %vm8139_vm14, %v10494_v3, %v10520_v30  ;;  %v10523_v43 = vld [vmem:[#allocation34_spill] sm:$0xff]  ;;  %v10525_v13 = vld [vmem:[#allocation127_spill] sm:$0xff] }
 0x2dc   :  { %10510 = vst [vmem:[#allocation41_spill] sm:$0xff] %v8102_v62  ;;  %v8127_v62 = vmul.f32 0.5, %v1969_v38  ;;  %v2049_v45 = vmul.f32 %v8110_v19, %v2048_v21  ;;  %v8158_v38 = vmul.f32 0.5, %v1989_v11  ;;  %v8160_v49 = vmul.f32 0.5, %v1999_v24  ;;  %3377 = vmatmul.bf16.vlgmr.msrb.gmra.mxu2 %v10523_v43  ;;  %v10524_v21 = vld [vmem:[#allocation140_spill] sm:$0xff]  ;;  %v3364_v11 = vpop.f32.mrf.mxu1  ;;  %vm8219_vm10 = vmor %vm2693_vm0, %vm2694_vm8 }
 0x2dd   :  { %10516 = vst [vmem:[#allocation46_spill] sm:$0xff] %v8133_v47  ;;  %v8162_v32 = vmul.f32 0.5, %v2009_v55  ;;  %4453 = vrsqrt.f32 %v8125_v31  ;;  %vm2303_vm2 = vweird.f32 %v10524_v21  ;;  %vm2304_vm6 = vweird.f32 %v10525_v13  ;;  %v10526_v55 = vld [vmem:[#allocation98_spill] sm:$0xff] }
 0x2de   :  { %10515 = vst [vmem:[#allocation58_spill] sm:$0xff] %v8127_v62  ;;  %v8166_v46 = vpop.eup %4449  ;;  %v8171_v4 = vmul.f32 0.5, %v2019_v6  ;;  %v2468_v30 = vmul.f32 %v8133_v47, %v8045_v25  ;;  %v2040_v3 = vmul.f32 0.5, %v2039_v29  ;;  %v2028_v24 = vmul.f32 %v8147_v1, %v8061_v53  ;;  %v1056_v54 = vpop.xlane.xlu1 %1055  ;;  %v10531_v6 = vld [vmem:[#allocation101_spill] sm:$0xff]  ;;  %vm8267_vm3 = vmor %vm2303_vm2, %vm2304_vm6 }
 0x2df   :  { %10521 = vst [vmem:[#allocation49_spill] sm:$0xff] %v8158_v38  ;;  %v10528_v43 = vpack.c.b16 %v10526_v55, %v10527_v10  ;;  %v10529_v26 = vperm.slane %v8108_v7, 0  ;;  %v2967_v63 = vmul.f32 %v2326_v18, %v10530_v56  ;;  %v2968_v62 = vmul.f32 %v2336_v14, %v10531_v6 }
 0x2e0   :  { %10522 = vst [vmem:[#allocation123_spill] sm:$0xff] %v8162_v32  ;;  %v8185_v44 = vmul.f32 %v7983_v35, %v2651_v51  ;;  %v2050_v29 = vmul.f32 0.5, %v2049_v45  ;;  %v8187_v25 = vmax.f32 %v1402_v59, 1e-24  ;;  %v8189_v17 = vmax.f32 %v1056_v54, 1e-24  ;;  %v8191_v12 = vpop.eup %4451  ;;  %v1364_v14 = vpop.xlane.xlu0 %1363 }
 0x2e1   :  { %v3685_v28 = vmul.f32 %v10529_v26, %v3364_v11  ;;  %v2778_v56 = vmul.f32 %v8166_v46, %v8072_v22  ;;  %v2041_v51 = vsub.f32 1.5, %v2040_v3  ;;  %v8208_v45 = vmax.f32 %v8099_v61, 1e-24  ;;  %v10539_v61 = vld [vmem:[#allocation172_spill] sm:$0xff]  ;;  %v10542_v59 = vld [vmem:[#allocation158_spill] sm:$0xff]  ;;  %v10544_v54 = vld [vmem:[#allocation147_spill] sm:$0xff] }
 0x2e2   :  { %3610 = vmatpush.bf16.xpose.msra.mxu2 %v10528_v43  ;;  %10532 = vst [vmem:[#allocation45_spill] sm:$0xff] %v8185_v44  ;;  %4455 = vrsqrt.f32 %v8189_v17  ;;  %v2469_v10 = vmul.f32 %v8133_v47, %v2468_v30  ;;  %v3099_v34 = vpack.c.bf16 %v2967_v63, %v2967_v63  ;;  %v3100_v6 = vpack.c.bf16 %v2968_v62, %v2968_v62  ;;  %v10540_v63 = vld [vmem:[#allocation128_spill] sm:$0xff]  ;;  %v10543_v44 = vld [vmem:[#allocation165_spill] sm:$0xff] }
 0x2e3   :  { %10533 = vst [vmem:[#allocation156_spill] sm:$0xff] %v8187_v25  ;;  %3701 = vmax.xlane.f32.xlu0 %v3685_v28  ;;  %v1434_v18 = vpop.xlane.xlu2 %1433  ;;  %v8211_v11 = vpop.eup %4453  ;;  %v2029_v28 = vmul.f32 %v8147_v1, %v2028_v24  ;;  %vm2314_vm15 = vweird.f32 %v10539_v61  ;;  %v2108_v43 = vmul.f32 %v8191_v12, %v8097_v57  ;;  %v2051_v26 = vsub.f32 1.5, %v2050_v29  ;;  %v10541_v30 = vld [vmem:[#allocation48_spill] sm:$0xff]  ;;  %v10558_v57 = vld [vmem:[#allocation185_spill] sm:$0xff] }
 0x2e4   :  { %10536 = vst [vmem:[#allocation24_spill] sm:$0xff] %v8208_v45  ;;  %v8226_v55 = vmax.f32 %v1468_v27, 1e-24  ;;  %4457 = vrsqrt.f32 %v8187_v25  ;;  %vm2044_vm4 = vweird.f32 %v8063_v42  ;;  %v2779_v62 = vmul.f32 %v8166_v46, %v2778_v56  ;;  %v3366_v29 = vpop.f32.mrf.mxu1 }
 0x2e5   :  { %v2686_v16 = vsel %vm8202_vm9, %v10503_v33, %v10540_v63  ;;  %v2696_v24 = vsel %vm8219_vm10, %v10512_v8, %v10541_v30  ;;  %vm2313_vm12 = vweird.f32 %v10542_v59  ;;  %v2258_v27 = vmul.f32 %v8211_v11, %v8125_v31 }
 0x2e6   :  { %vm2054_vm11 = vweird.f32 %v8110_v19  ;;  %4459 = vrsqrt.f32 %v8208_v45  ;;  %v2042_v56 = vmul.f32 %v8063_v42, %v2041_v51  ;;  %v10545_v33 = vpack.c.b16 %v10543_v44, %v10544_v54  ;;  %v10553_v54 = vld [vmem:[#allocation43_spill] sm:$0xff]  ;;  %vm8323_vm8 = vmor %vm2313_vm12, %vm2314_vm15 }
 0x2e7   :  { %v8248_v63 = vmax.f32 %v1434_v18, 1e-24  ;;  %v10546_v8 = vperm.slane %v8108_v7, 0  ;;  %v8252_v30 = vunpack.c.l.b16 %v3099_v34  ;;  %v8254_v22 = vunpack.c.l.b16 %v3100_v6  ;;  %v1430_v34 = vpop.xlane.xlu1 %1429  ;;  %v10563_v7 = vld [vmem:[#allocation139_spill] sm:$0xff] }
 0x2e8   :  { %v8256_v35 = vpop.eup %4455  ;;  %v2109_v38 = vmul.f32 %v8191_v12, %v2108_v43  ;;  %4461 = vrsqrt.f32 %v8226_v55  ;;  %v8260_v51 = vmax.f32 %v1364_v14, 1e-24  ;;  %v2052_v44 = vmul.f32 %v8110_v19, %v2051_v26  ;;  %v10549_v14 = vld [vmem:[#allocation40_spill] sm:$0xff] }
 0x2e9   :  { %v3689_v3 = vmul.f32 %v10546_v8, %v3366_v29  ;;  %v2470_v18 = vmul.f32 0.5, %v2469_v10  ;;  %vm2043_vm7 = vweird.f32 %v7996_v9  ;;  %v3003_v6 = vmul.f32 %v2686_v16, %v10549_v14  ;;  %v10566_v16 = vld [vmem:[#allocation189_spill] sm:$0xff] }
 0x2ea   :  { %3611 = vmatpush.bf16.xpose.msra.mxu2 %v10545_v33  ;;  %v8275_v29 = vpop.eup %4457  ;;  %v8277_v26 = vmul.f32 0.5, %v2029_v28  ;;  %vm8281_vm1 = vmor %vm2043_vm7, %vm2044_vm4  ;;  %v2780_v10 = vmul.f32 0.5, %v2779_v62  ;;  %vm2053_vm5 = vweird.f32 %v8047_v2  ;;  %v3004_v33 = vmul.f32 %v2696_v24, %v10553_v54 }
 0x2eb   :  { %3703 = vmax.xlane.f32.xlu0 %v3689_v3  ;;  %10550 = vst [vmem:[#allocation26_spill] sm:$0xff] %v8275_v29  ;;  %v1400_v9 = vpop.xlane.xlu2 %1399  ;;  %v2259_v8 = vmul.f32 %v8211_v11, %v2258_v27  ;;  %vm8290_vm0 = vmor %vm2053_vm5, %vm2054_vm11  ;;  %4463 = vrsqrt.f32 %v8248_v63  ;;  %v1092_v28 = vmul.f32 %v8256_v35, %v8189_v17  ;;  %v1330_v3 = vpop.xlane.xlu0 %1329  ;;  %v2046_v2 = vsel %vm8281_vm1, %v8063_v42, %v2042_v56 }
 0x2ec   :  { %v8300_v62 = vpop.eup %4459  ;;  %v2110_v24 = vmul.f32 0.5, %v2109_v38  ;;  %4465 = vrsqrt.f32 %v8260_v51  ;;  %v8303_v27 = vmax.f32 %v1430_v34, 1e-24  ;;  %v2056_v14 = vsel %vm8290_vm0, %v8110_v19, %v2052_v44  ;;  %v10559_v34 = vld [vmem:[#allocation18_spill] sm:$0xff]  ;;  %v10562_v44 = vld [vmem:[#allocation52_spill] sm:$0xff] }
 0x2ed   :  { %10556 = vst [vmem:[#allocation121_spill] sm:$0xff] %v8300_v62  ;;  %v2471_v54 = vsub.f32 1.5, %v2470_v18  ;;  %v2458_v43 = vmul.f32 %v8275_v29, %v8187_v25  ;;  %v2306_v42 = vsel %vm8267_vm3, %v10525_v13, %v10558_v57  ;;  %v3135_v56 = vpack.c.bf16 %v3003_v6, %v3003_v6 }
 0x2ee   :  { %10557 = vst [vmem:[#allocation144_spill] sm:$0xff] %v8303_v27  ;;  %v8314_v21 = vpop.eup %4461  ;;  %v2781_v38 = vsub.f32 1.5, %v2780_v10  ;;  %v8316_v32 = vmax.f32 %v1330_v3, 1e-24  ;;  %v2939_v15 = vmul.f32 %v2046_v2, %v10559_v34  ;;  %v3136_v50 = vpack.c.bf16 %v3004_v33, %v3004_v33  ;;  %v10565_v10 = vld [vmem:[#allocation54_spill] sm:$0xff] }
 0x2ef   :  { %vm2284_vm13 = vweird.f32 %v7632_v5  ;;  %v2260_v57 = vmul.f32 0.5, %v2259_v8  ;;  %v2438_v13 = vmul.f32 %v8300_v62, %v8208_v45  ;;  %v10564_v18 = vpack.c.b16 %v10562_v44, %v10563_v7  ;;  %v10567_v3 = vld [vmem:[#allocation74_spill] sm:$0xff]  ;;  %v10569_v7 = vld [vmem:[#allocation85_spill] sm:$0xff] }
 0x2f0   :  { %v1093_v6 = vmul.f32 %v8256_v35, %v1092_v28  ;;  %v2940_v33 = vmul.f32 %v2056_v14, %v10565_v10  ;;  %vm2294_vm14 = vweird.f32 %v7853_v20  ;;  %v2111_v59 = vsub.f32 1.5, %v2110_v24 }
 0x2f1   :  { %4467 = vrsqrt.f32 %v8303_v27  ;;  %v2316_v8 = vsel %vm8323_vm8, %v10539_v61, %v10566_v16  ;;  %v2965_v2 = vmul.f32 %v2306_v42, %v10567_v3  ;;  %v8342_v34 = vpop.eup %4463  ;;  %vm2283_vm2 = vweird.f32 %v7539_v41 }
 0x2f2   :  { %3612 = vmatpush.bf16.xpose.msra.mxu2 %v10564_v18  ;;  %vm2024_vm6 = vweird.f32 %v8051_v58  ;;  %v2031_v28 = vsub.f32 1.5, %v8277_v26  ;;  %v8348_v14 = vmul.f32 %v8133_v47, %v2471_v54  ;;  %v2788_v24 = vmul.f32 %v8314_v21, %v8226_v55  ;;  %v8353_v19 = vpop.eup %4465  ;;  %vm8407_vm11 = vmor %vm2283_vm2, %vm2284_vm13 }
 0x2f3   :  { %v2459_v44 = vmul.f32 %v8275_v29, %v2458_v43  ;;  %vm2293_vm9 = vweird.f32 %v7771_v48  ;;  %vm2034_vm10 = vweird.f32 %v8147_v1  ;;  %4469 = vrsqrt.f32 %v8316_v32  ;;  %v1462_v16 = vpop.xlane.xlu2 %1461  ;;  %v1436_v25 = vpop.xlane.xlu0 %1435 }
 0x2f4   :  { %10568 = vst [vmem:[#allocation31_spill] sm:$0xff] %v8348_v14  ;;  %v3071_v61 = vpack.c.bf16 %v2939_v15, %v2939_v15  ;;  %v3072_v42 = vpack.c.bf16 %v2940_v33, %v2940_v33  ;;  %v2966_v26 = vmul.f32 %v2316_v8, %v10569_v7  ;;  %vm2023_vm15 = vweird.f32 %v7973_v37  ;;  %vm8419_vm7 = vmor %vm2293_vm9, %vm2294_vm14 }
 0x2f5   :  { %v2261_v54 = vsub.f32 1.5, %v2260_v57  ;;  %v2439_v18 = vmul.f32 %v8300_v62, %v2438_v13  ;;  %v1094_v10 = vmul.f32 0.5, %v1093_v6  ;;  %v8361_v43 = vunpack.c.l.b16 %v3135_v56  ;;  %vm8435_vm5 = vmor %vm2023_vm15, %vm2024_vm6 }
 0x2f6   :  { %vm2033_vm4 = vweird.f32 %v8061_v53  ;;  %v8365_v3 = vmul.f32 %v8166_v46, %v2781_v38  ;;  %v8368_v45 = vmul.f32 %v8191_v12, %v2111_v59  ;;  %v3097_v15 = vpack.c.bf16 %v2965_v2, %v2965_v2 }
 0x2f7   :  { %v8370_v33 = vunpack.c.l.b16 %v3136_v50  ;;  %v2789_v8 = vmul.f32 %v8314_v21, %v2788_v24  ;;  %v2618_v57 = vmul.f32 %v8342_v34, %v8248_v63  ;;  %v2268_v56 = vmul.f32 %v8353_v19, %v8260_v51  ;;  %v8379_v6 = vpop.eup %4467  ;;  %vm8456_vm13 = vmor %vm2033_vm4, %vm2034_vm10 }
 0x2f8   :  { %10570 = vst [vmem:[#allocation116_spill] sm:$0xff] %v8365_v3  ;;  %v8377_v13 = vmax.f32 %v1400_v9, 1e-24  ;;  %v8381_v38 = vmul.f32 0.5, %v2459_v44  ;;  %v3269_v7 = vunpack.c.l.b16 %v3071_v61  ;;  %v3270_v59 = vunpack.c.l.b16 %v3072_v42  ;;  %v8392_v9 = vpop.xlane.xlu1 %1395 }
 0x2f9   :  { %10572 = vst [vmem:[#allocation186_spill] sm:$0xff] %v8379_v6  ;;  %v3098_v62 = vpack.c.bf16 %v2966_v26, %v2966_v26  ;;  %v8384_v50 = vmul.f32 %v8211_v11, %v2261_v54  ;;  %v8386_v2 = vmul.f32 0.5, %v2439_v18  ;;  %v1095_v24 = vsub.f32 1.5, %v1094_v10  ;;  %v8394_v44 = vpop.eup %4469 }
 0x2fa   :  { %10571 = vst [vmem:[#allocation174_spill] sm:$0xff] %v8377_v13  ;;  %vm1097_vm12 = vweird.f32 %v8189_v17  ;;  %v10574_v14 = vpack.c.b16 %v8254_v22, %v8252_v30  ;;  %v3312_v61 = vpack.c.b16 %v3270_v59, %v3269_v7  ;;  %v3485_v42 = vunpack.c.l.b16 %v3097_v15  ;;  %v10587_v59 = vld [vmem:[#allocation32_spill] sm:$0xff] }
 0x2fb   :  { %10573 = vst [vmem:[#allocation161_spill] sm:$0xff] %v8386_v2  ;;  %v3486_v26 = vunpack.c.l.b16 %v3098_v62  ;;  %v8396_v47 = vmax.f32 %v1462_v16, 1e-24  ;;  %v2619_v54 = vmul.f32 %v8342_v34, %v2618_v57  ;;  %v2269_v18 = vmul.f32 %v8353_v19, %v2268_v56 }
 0x2fc   :  { %3613 = vmatpush.bf16.xpose.msra.mxu2 %v10574_v14  ;;  %4471 = vrsqrt.f32 %v8377_v13  ;;  %v2598_v22 = vmul.f32 %v8379_v6, %v8303_v27  ;;  %v8411_v62 = vmul.f32 0.5, %v2789_v8  ;;  %v2461_v14 = vsub.f32 1.5, %v8381_v38  ;;  %3385 = vmatpush.bf16.xpose.msrb.mxu3 %v3312_v61  ;;  %v10588_v61 = vld [vmem:[#allocation150_spill] sm:$0xff]  ;;  %v10721_v27 = vld [vmem:[#allocation35_spill] sm:$0xff] }
 0x2fd   :  { %10575 = vst [vmem:[#allocation140_spill] sm:$0xff] %v8396_v47  ;;  %vm1098_vm3 = vweird.f32 %v8256_v35  ;;  %v3547_v10 = vpack.c.b16 %v3486_v26, %v3485_v42  ;;  %vm2004_vm1 = vweird.f32 %v8031_v60  ;;  %v1096_v41 = vmul.f32 %v8256_v35, %v1095_v24 }
 0x2fe   :  { %v2098_v15 = vmul.f32 %v8394_v44, %v8316_v32  ;;  %v10580_v8 = vsub.f32 1.5, %v8171_v4  ;;  %v2032_v56 = vmul.f32 %v8147_v1, %v2031_v28  ;;  %4473 = vrsqrt.f32 %v8396_v47  ;;  %vm8471_vm2 = vmor %vm1097_vm12, %vm1098_vm3 }
 0x2ff   :  { %v8440_v38 = vmax.f32 %v1436_v25, 1e-24  ;;  %v2286_v4 = vsel %vm8407_vm11, %v7632_v5, %v8017_v40  ;;  %v2296_v28 = vsel %vm8419_vm7, %v7853_v20, %v8105_v0  ;;  %vm2003_vm0 = vweird.f32 %v7934_v39  ;;  %v1432_v20 = vpop.xlane.xlu2 %1431 }
 0x300   :  { %v2022_v57 = vmul.f32 %v8051_v58, %v10580_v8  ;;  %vm2014_vm8 = vweird.f32 %v8039_v36  ;;  %v8460_v37 = vmul.f32 0.5, %v2619_v54  ;;  %v2270_v5 = vmul.f32 0.5, %v2269_v18  ;;  %vm8523_vm11 = vmor %vm2003_vm0, %vm2004_vm1 }
 0x301   :  { %v2599_v40 = vmul.f32 %v8379_v6, %v2598_v22  ;;  %vm2264_vm14 = vweird.f32 %v8211_v11  ;;  %v2036_v7 = vsel %vm8456_vm13, %v8147_v1, %v2032_v56  ;;  %v2963_v42 = vmul.f32 %v2286_v4, %v10588_v61  ;;  %v10591_v1 = vld [vmem:[#allocation175_spill] sm:$0xff]  ;;  %v10594_v4 = vld [vmem:[#allocation154_spill] sm:$0xff] }
 0x302   :  { %v2026_v0 = vsel %vm8435_vm5, %v8051_v58, %v2022_v57  ;;  %v10589_v58 = vld [vmem:[#allocation152_spill] sm:$0xff]  ;;  %v8481_v54 = vpop.eup %4471  ;;  %vm2013_vm6 = vweird.f32 %v7937_v23  ;;  %v2791_v17 = vsub.f32 1.5, %v8411_v62  ;;  %v1100_v18 = vsel %vm8471_vm2, %v8256_v35, %v1096_v41 }
 0x303   :  { %v2937_v24 = vmul.f32 %v2026_v0, %v10587_v59  ;;  %v2964_v26 = vmul.f32 %v2296_v28, %v10589_v58  ;;  %10590 = vst [vmem:[#allocation127_spill] sm:$0xff] %v8481_v54  ;;  %v2099_v22 = vmul.f32 %v8394_v44, %v2098_v15  ;;  %v2938_v30 = vmul.f32 %v2036_v7, %v10591_v1  ;;  %v1054_v15 = vpop.xlane.xlu0 %1053  ;;  %v10598_v1 = vld [vmem:[#allocation78_spill] sm:$0xff]  ;;  %vm8546_vm5 = vmor %vm2013_vm6, %vm2014_vm8 }
 0x304   :  { %3614 = vmatpush.bf16.xpose.msra.mxu2 %v3547_v10  ;;  %vm2263_vm9 = vweird.f32 %v8125_v31  ;;  %4475 = vrsqrt.f32 %v8440_v38  ;;  %v3095_v8 = vpack.c.bf16 %v2963_v42, %v2963_v42  ;;  %v8492_v57 = vmax.f32 %v1432_v20, 1e-24  ;;  %v1426_v10 = vpop.xlane.xlu1 %1425  ;;  %v8499_v48 = vpop.eup %4473  ;;  %v10596_v42 = vld [vmem:[#allocation188_spill] sm:$0xff]  ;;  %v10615_v31 = vld [vmem:[#allocation191_spill] sm:$0xff] }
 0x305   :  { %v3069_v16 = vpack.c.bf16 %v2937_v24, %v2937_v24  ;;  %v8495_v56 = vmul.f32 %v8275_v29, %v2461_v14  ;;  %v2621_v62 = vsub.f32 1.5, %v8460_v37  ;;  %vm2273_vm10 = vweird.f32 %v8260_v51  ;;  %vm8561_vm13 = vmor %vm2263_vm9, %vm2264_vm14 }
 0x306   :  { %10592 = vst [vmem:[#allocation98_spill] sm:$0xff] %v8492_v57  ;;  %v3070_v35 = vpack.c.bf16 %v2938_v30, %v2938_v30  ;;  %v3096_v41 = vpack.c.bf16 %v2964_v26, %v2964_v26  ;;  %v1104_v28 = vmul.f32 %v1100_v18, %v10594_v4  ;;  %v2271_v25 = vsub.f32 1.5, %v2270_v5  ;;  %v10617_v30 = vld [vmem:[#allocation120_spill] sm:$0xff] }
 0x307   :  { %10593 = vst [vmem:[#allocation82_spill] sm:$0xff] %v8495_v56  ;;  %v2448_v0 = vmul.f32 %v8481_v54, %v8377_v13  ;;  %v2600_v20 = vmul.f32 0.5, %v2599_v40  ;;  %v3267_v53 = vunpack.c.l.b16 %v3069_v16  ;;  %v3483_v7 = vunpack.c.l.b16 %v3095_v8 }
 0x308   :  { %v3268_v14 = vunpack.c.l.b16 %v3070_v35  ;;  %v3484_v59 = vunpack.c.l.b16 %v3096_v41  ;;  %v2100_v37 = vmul.f32 0.5, %v2099_v22  ;;  %4477 = vrsqrt.f32 %v8492_v57 }
 0x309   :  { %v8505_v24 = vmax.f32 %v1426_v10, 1e-24  ;;  %v8507_v61 = vmax.f32 %v1054_v15, 1e-24  ;;  %vm2863_vm15 = vweird.f32 %v10596_v42  ;;  %vm2864_vm4 = vweird.f32 %v7368_v52  ;;  %v10657_v42 = vld [vmem:[#allocation138_spill] sm:$0xff] }
 0x30a   :  { %v2758_v5 = vmul.f32 %v8499_v48, %v8396_v47  ;;  %v3311_v58 = vpack.c.b16 %v3268_v14, %v3267_v53  ;;  %v3546_v40 = vpack.c.b16 %v3484_v59, %v3483_v7  ;;  %v10597_v26 = vsub.f32 1.5, %v8160_v49  ;;  %v8516_v22 = vpop.eup %4475  ;;  %v10612_v53 = vld [vmem:[#allocation91_spill] sm:$0xff] }
 0x30b   :  { %10595 = vst [vmem:[#allocation79_spill] sm:$0xff] %v8505_v24  ;;  %vm1984_vm12 = vweird.f32 %v10598_v1  ;;  %v8528_v16 = vmul.f32 %v8314_v21, %v2791_v17  ;;  %v3028_v8 = vpack.c.bf16 %v1104_v28, %v1104_v28  ;;  %vm2274_vm3 = vweird.f32 %v8353_v19  ;;  %v10603_v17 = vld [vmem:[#allocation65_spill] sm:$0xff]  ;;  %v10607_v28 = vld [vmem:[#allocation123_spill] sm:$0xff] }
 0x30c   :  { %v2002_v18 = vmul.f32 %v8031_v60, %v10597_v26  ;;  %v8532_v49 = vmax.f32 %v8392_v9, 1e-24  ;;  %vm2114_vm7 = vweird.f32 %v8191_v12  ;;  %v2272_v35 = vmul.f32 %v8353_v19, %v2271_v25  ;;  %3386 = vmatpush.bf16.xpose.msrb.mxu3 %v3311_v58  ;;  %3615 = vmatpush.bf16.xpose.msra.mxu2 %v3546_v40  ;;  %v10613_v14 = vld [vmem:[#allocation27_spill] sm:$0xff]  ;;  %vm2275_vm6 = vmor %vm2273_vm10, %vm2274_vm3  ;;  %v10616_v26 = vld [vmem:[#allocation28_spill] sm:$0xff] }
 0x30d   :  { %10601 = vst [vmem:[#allocation101_spill] sm:$0xff] %v8528_v16  ;;  %v2449_v41 = vmul.f32 %v8481_v54, %v2448_v0  ;;  %4479 = vrsqrt.f32 %v8507_v61  ;;  %vm1983_vm1 = vweird.f32 %v10603_v17  ;;  %v8551_v10 = vmul.f32 %v8342_v34, %v2621_v62  ;;  %vm8627_vm10 = vmor %vm2863_vm15, %vm2864_vm4  ;;  %v10653_v54 = vld [vmem:[#allocation90_spill] sm:$0xff]  ;;  %v10728_v47 = vld [vmem:[#allocation23_spill] sm:$0xff] }
 0x30e   :  { %10602 = vst [vmem:[#allocation172_spill] sm:$0xff] %v8532_v49  ;;  %v2006_v39 = vsel %vm8523_vm11, %v8031_v60, %v2002_v18  ;;  %v2601_v15 = vsub.f32 1.5, %v2600_v20  ;;  %v2101_v4 = vsub.f32 1.5, %v2100_v37  ;;  %v10608_v25 = vsub.f32 1.5, %v10607_v28  ;;  %v10609_v60 = vld [vmem:[#allocation44_spill] sm:$0xff]  ;;  %v8571_v59 = vpop.eup %4477  ;;  %v10614_v37 = vld [vmem:[#allocation190_spill] sm:$0xff]  ;;  %v1458_v28 = vpop.xlane.xlu2 %1457  ;;  %vm8643_vm15 = vmor %vm1983_vm1, %vm1984_vm12 }
 0x30f   :  { %10606 = vst [vmem:[#allocation128_spill] sm:$0xff] %v8551_v10  ;;  %vm1994_vm0 = vweird.f32 %v10609_v60  ;;  %vm2113_vm8 = vweird.f32 %v10612_v53  ;;  %v2759_v62 = vmul.f32 %v8499_v48, %v2758_v5  ;;  %v2628_v20 = vmul.f32 %v8516_v22, %v8440_v38  ;;  %v10686_v10 = vld [vmem:[#allocation110_spill] sm:$0xff] }
 0x310   :  { %v2012_v0 = vmul.f32 %v8039_v36, %v10608_v25  ;;  %4481 = vrsqrt.f32 %v8505_v24  ;;  %v2935_v7 = vmul.f32 %v2006_v39, %v10613_v14  ;;  %vm2874_vm14 = vweird.f32 %v10615_v31  ;;  %vm8653_vm4 = vmor %vm2113_vm8, %vm2114_vm7 }
 0x311   :  { %v8575_v58 = vunpack.c.l.b16 %v3028_v8  ;;  %vm2103_vm9 = vweird.f32 %v8316_v32  ;;  %vm2104_vm11 = vweird.f32 %v8394_v44  ;;  %v2266_v40 = vsel %vm8561_vm13, %v8211_v11, %v8384_v50  ;;  %v1464_v11 = vpop.xlane.xlu0 %1463 }
 0x312   :  { %v2016_v5 = vsel %vm8546_vm5, %v8039_v36, %v2012_v0  ;;  %vm1993_vm2 = vweird.f32 %v10616_v26  ;;  %v8591_v18 = vmul.f32 0.5, %v2449_v41  ;;  %v3067_v8 = vpack.c.bf16 %v2935_v7, %v2935_v7  ;;  %v10619_v36 = vld [vmem:[#allocation62_spill] sm:$0xff]  ;;  %vm8667_vm7 = vmor %vm2103_vm9, %vm2104_vm11  ;;  %v10651_v26 = vld [vmem:[#allocation53_spill] sm:$0xff] }
 0x313   :  { %v2936_v51 = vmul.f32 %v2016_v5, %v10617_v30  ;;  %v2276_v39 = vsel %vm2275_vm6, %v8353_v19, %v2272_v35  ;;  %v8596_v25 = vmul.f32 %v8379_v6, %v2601_v15  ;;  %4483 = vrsqrt.f32 %v8532_v49  ;;  %v10620_v0 = vld [vmem:[#allocation146_spill] sm:$0xff]  ;;  %v8601_v50 = vpop.eup %4479  ;;  %vm8683_vm9 = vmor %vm1993_vm2, %vm1994_vm0 }
 0x314   :  { %v2961_v9 = vmul.f32 %v2266_v40, %v10619_v36  ;;  %v2962_v23 = vmul.f32 %v2276_v39, %v10620_v0  ;;  %v2102_v41 = vmul.f32 %v8394_v44, %v2101_v4  ;;  %v8604_v14 = vmul.f32 0.5, %v2759_v62  ;;  %v10621_v4 = vld [vmem:[#allocation141_spill] sm:$0xff] }
 0x315   :  { %10618 = vst [vmem:[#allocation48_spill] sm:$0xff] %v8596_v25  ;;  %v8607_v7 = vmul.f32 %v8516_v22, %v2628_v20  ;;  %v3068_v19 = vpack.c.bf16 %v2936_v51, %v2936_v51  ;;  %v8611_v35 = vmul.f32 %v8571_v59, %v8492_v57  ;;  %v1082_v15 = vmul.f32 %v8601_v50, %v8507_v61  ;;  %v10623_v20 = vld [vmem:[#allocation122_spill] sm:$0xff]  ;;  %v10693_v57 = vld [vmem:[#allocation104_spill] sm:$0xff] }
 0x316   :  { %v3265_v5 = vunpack.c.l.b16 %v3067_v8  ;;  %v3093_v40 = vpack.c.bf16 %v2961_v9, %v2961_v9  ;;  %v8615_v30 = vpop.eup %4481  ;;  %v3094_v36 = vpack.c.bf16 %v2962_v23, %v2962_v23  ;;  %v10622_v62 = vpack.c.bf16 %v10621_v4, %v10621_v4  ;;  %v10630_v4 = vld [vmem:[#allocation181_spill] sm:$0xff] }
 0x317   :  { %v3266_v39 = vunpack.c.l.b16 %v3068_v19  ;;  %v10624_v51 = vpack.c.bf16 %v10623_v20, %v10623_v20  ;;  %v1083_v8 = vmul.f32 %v8601_v50, %v1082_v15  ;;  %vm1087_vm3 = vweird.f32 %v8507_v61  ;;  %v10629_v19 = vld [vmem:[#allocation164_spill] sm:$0xff]  ;;  %v10662_v61 = vld [vmem:[#allocation83_spill] sm:$0xff] }
 0x318   :  { %v3543_v0 = vunpack.c.l.b16 %v10622_v62  ;;  %v8633_v9 = vmax.f32 %v1458_v28, 1e-24  ;;  %v8635_v23 = vmax.f32 %v1464_v11, 1e-24  ;;  %vm2843_vm5 = vweird.f32 %v10629_v19  ;;  %v10654_v11 = vld [vmem:[#allocation131_spill] sm:$0xff] }
 0x319   :  { %v3544_v13 = vunpack.c.l.b16 %v10624_v51  ;;  %vm2844_vm13 = vweird.f32 %v10630_v4  ;;  %v3310_v62 = vpack.c.b16 %v3266_v39, %v3265_v5  ;;  %v3481_v15 = vunpack.c.l.b16 %v3093_v40  ;;  %v8647_v28 = vpop.eup %4483  ;;  %v10636_v5 = vld [vmem:[#allocation178_spill] sm:$0xff]  ;;  %v10640_v39 = vld [vmem:[#allocation17_spill] sm:$0xff] }
 0x31a   :  { %10627 = vst [vmem:[#allocation158_spill] sm:$0xff] %v8633_v9  ;;  %v3482_v20 = vunpack.c.l.b16 %v3094_v36  ;;  %v2578_v17 = vmul.f32 %v8615_v30, %v8505_v24  ;;  %v1084_v2 = vmul.f32 0.5, %v1083_v8  ;;  %vm1088_vm12 = vweird.f32 %v8601_v50  ;;  %v10642_v8 = vld [vmem:[#allocation49_spill] sm:$0xff]  ;;  %v10644_v24 = vld [vmem:[#allocation102_spill] sm:$0xff] }
 0x31b   :  { %10628 = vst [vmem:[#allocation165_spill] sm:$0xff] %v8635_v23  ;;  %v3576_v51 = vpack.c.b16 %v3544_v13, %v3543_v0  ;;  %4485 = vrsqrt.f32 %v8633_v9  ;;  %vm2853_vm1 = vweird.f32 %v10636_v5  ;;  %v10637_v13 = vld [vmem:[#allocation187_spill] sm:$0xff]  ;;  %3387 = vmatpush.bf16.xpose.msrb.mxu3 %v3310_v62  ;;  %v10641_v36 = vsub.f32 1.5, %v10640_v39  ;;  %v10698_v5 = vld [vmem:[#allocation130_spill] sm:$0xff] }
 0x31c   :  { %10633 = vst [vmem:[#allocation147_spill] sm:$0xff] %v8647_v28  ;;  %vm2854_vm6 = vweird.f32 %v10637_v13  ;;  %v3545_v40 = vpack.c.b16 %v3482_v20, %v3481_v15  ;;  %4487 = vrsqrt.f32 %v8635_v23  ;;  %v10643_v56 = vsub.f32 1.5, %v10642_v8  ;;  %v10647_v20 = vld [vmem:[#allocation136_spill] sm:$0xff]  ;;  %v10656_v8 = vld [vmem:[#allocation111_spill] sm:$0xff] }
 0x31d   :  { %v1982_v0 = vmul.f32 %v10598_v1, %v10641_v36  ;;  %vm1964_vm8 = vweird.f32 %v10644_v24  ;;  %v1085_v62 = vsub.f32 1.5, %v1084_v2  ;;  %v2106_v15 = vsel %vm8667_vm7, %v8394_v44, %v2102_v41  ;;  %v10655_v36 = vld [vmem:[#allocation119_spill] sm:$0xff]  ;;  %vm8756_vm7 = vmor %vm2843_vm5, %vm2844_vm13 }
 0x31e   :  { %v1992_v25 = vmul.f32 %v10609_v60, %v10643_v56  ;;  %v2116_v56 = vsel %vm8653_vm4, %v8191_v12, %v8368_v45  ;;  %v2866_v39 = vsel %vm8627_vm10, %v7368_v52, %v10647_v20  ;;  %vm10648_vm0 = vweird.f32 %v10614_v37  ;;  %3616 = vmatpush.bf16.xpose.msra.mxu2 %v3545_v40  ;;  %v10652_v52 = vld [vmem:[#allocation87_spill] sm:$0xff]  ;;  %v1428_v37 = vpop.xlane.xlu2 %1427  ;;  %vm8776_vm5 = vmor %vm2853_vm1, %vm2854_vm6 }
 0x31f   :  { %vm8702_vm2 = vmor %vm10648_vm0, %vm2874_vm14  ;;  %vm1974_vm11 = vweird.f32 %v10651_v26  ;;  %v1986_v12 = vsel %vm8643_vm15, %v10598_v1, %v1982_v0  ;;  %v2945_v44 = vmul.f32 %v2106_v15, %v10652_v52  ;;  %v2946_v41 = vmul.f32 %v2116_v56, %v10653_v54  ;;  %v10660_v15 = vld [vmem:[#allocation30_spill] sm:$0xff] }
 0x320   :  { %v1996_v45 = vsel %vm8683_vm9, %v10609_v60, %v1992_v25  ;;  %vm1963_vm14 = vweird.f32 %v10654_v11  ;;  %v1086_v53 = vmul.f32 %v8601_v50, %v1085_v62  ;;  %v2933_v40 = vmul.f32 %v1986_v12, %v10655_v36  ;;  %v1394_v60 = vpop.xlane.xlu0 %1393  ;;  %v10658_v25 = vld [vmem:[#allocation180_spill] sm:$0xff]  ;;  %vm1089_vm15 = vmor %vm1087_vm3, %vm1088_vm12 }
 0x321   :  { %v2934_v20 = vmul.f32 %v1996_v45, %v10656_v8  ;;  %v2876_v1 = vsel %vm8702_vm2, %v10615_v31, %v10657_v42  ;;  %vm1973_vm10 = vweird.f32 %v10658_v25  ;;  %v3077_v0 = vpack.c.bf16 %v2945_v44, %v2945_v44  ;;  %v8730_v12 = vpop.eup %4485  ;;  %vm8789_vm1 = vmor %vm1963_vm14, %vm1964_vm8 }
 0x322   :  { %v3078_v32 = vpack.c.bf16 %v2946_v41, %v2946_v41  ;;  %v3022_v56 = vmul.f32 %v2876_v1, %v10660_v15  ;;  %v1090_v45 = vsel %vm1089_vm15, %v8601_v50, %v1086_v53  ;;  %v3065_v2 = vpack.c.bf16 %v2933_v40, %v2933_v40  ;;  %v8735_v54 = vpop.eup %4487  ;;  %v10663_v41 = vld [vmem:[#allocation80_spill] sm:$0xff]  ;;  %v10668_v15 = vld [vmem:[#allocation155_spill] sm:$0xff]  ;;  %vm8812_vm15 = vmor %vm1973_vm10, %vm1974_vm11 }
 0x323   :  { %v3066_v31 = vpack.c.bf16 %v2934_v20, %v2934_v20  ;;  %v8733_v52 = vmax.f32 %v1428_v37, 1e-24  ;;  %v2761_v36 = vsub.f32 1.5, %v8604_v14  ;;  %v1103_v8 = vmul.f32 %v1090_v45, %v10662_v61 }
 0x324   :  { %v2738_v44 = vmul.f32 %v8730_v12, %v8633_v9  ;;  %vm1944_vm3 = vweird.f32 %v10663_v41  ;;  %v8743_v42 = vmul.f32 0.5, %v8607_v7  ;;  %v2768_v50 = vmul.f32 %v8735_v54, %v8635_v23  ;;  %v10727_v23 = vld [vmem:[#allocation81_spill] sm:$0xff] }
 0x325   :  { %10661 = vst [vmem:[#allocation40_spill] sm:$0xff] %v8733_v52  ;;  %v3263_v37 = vunpack.c.l.b16 %v3065_v2  ;;  %v3264_v53 = vunpack.c.l.b16 %v3066_v31  ;;  %v2609_v40 = vmul.f32 %v8571_v59, %v8611_v35  ;;  %v2579_v14 = vmul.f32 %v8615_v30, %v2578_v17  ;;  %v10669_v17 = vld [vmem:[#allocation157_spill] sm:$0xff] }
 0x326   :  { %3651 = vmatpush.bf16.xpose.msrb.mxu2 %v3576_v51  ;;  %v10659_v51 = vld [vmem:[#allocation135_spill] sm:$0xff]  ;;  %v3276_v20 = vunpack.c.l.b16 %v3078_v32  ;;  %vm1943_vm9 = vweird.f32 %v10668_v15  ;;  %v3027_v45 = vpack.c.bf16 %v1103_v8, %v1103_v8  ;;  %v3154_v2 = vpack.c.bf16 %v3022_v56, %v3022_v56  ;;  %v10670_v32 = vld [vmem:[#allocation176_spill] sm:$0xff] }
 0x327   :  { %v3021_v62 = vmul.f32 %v2866_v39, %v10659_v51  ;;  %v3275_v39 = vunpack.c.l.b16 %v3077_v0  ;;  %v10664_v51 = vld [vmem:[#allocation63_spill] sm:$0xff]  ;;  %v3309_v35 = vpack.c.b16 %v3264_v53, %v3263_v37  ;;  %4489 = vrsqrt.f32 %v8733_v52 }
 0x328   :  { %vm2823_vm4 = vweird.f32 %v10664_v51  ;;  %v10665_v0 = vld [vmem:[#allocation47_spill] sm:$0xff]  ;;  %vm2544_vm2 = vweird.f32 %v10670_v32  ;;  %v8769_v19 = vmul.f32 %v8647_v28, %v8532_v49  ;;  %v2739_v31 = vmul.f32 %v8730_v12, %v2738_v44  ;;  %v10677_v44 = vld [vmem:[#allocation168_spill] sm:$0xff]  ;;  %v1460_v29 = vpop.xlane.xlu0 %1459 }
 0x329   :  { %v3153_v1 = vpack.c.bf16 %v3021_v62, %v3021_v62  ;;  %vm2824_vm12 = vweird.f32 %v10665_v0  ;;  %v8765_v62 = vmul.f32 %v8499_v48, %v2761_v36  ;;  %v3315_v61 = vpack.c.b16 %v3276_v20, %v3275_v39  ;;  %v10675_v8 = vld [vmem:[#allocation55_spill] sm:$0xff]  ;;  %3388 = vmatpush.bf16.xpose.msrb.mxu3 %v3309_v35  ;;  %v10680_v20 = vld [vmem:[#allocation76_spill] sm:$0xff]  ;;  %v10682_v35 = vld [vmem:[#allocation58_spill] sm:$0xff] }
 0x32a   :  { %10672 = vst [vmem:[#allocation185_spill] sm:$0xff] %v8769_v19  ;;  %vm1954_vm13 = vweird.f32 %v10675_v8  ;;  %v2769_v37 = vmul.f32 %v8735_v54, %v2768_v50  ;;  %v3542_v49 = vunpack.c.l.b16 %v3154_v2  ;;  %v10676_v28 = vld [vmem:[#allocation143_spill] sm:$0xff]  ;;  %vm2834_vm0 = vweird.f32 %v10677_v44  ;;  %v10684_v19 = vld [vmem:[#allocation100_spill] sm:$0xff] }
 0x32b   :  { %10671 = vst [vmem:[#allocation43_spill] sm:$0xff] %v8765_v62  ;;  %v3541_v53 = vunpack.c.l.b16 %v3153_v1  ;;  %3404 = vmatpush.bf16.xpose.msra.mxu1 %v3315_v61  ;;  %v8793_v39 = vmax.f32 %v1394_v60, 1e-24  ;;  %v10681_v50 = vsub.f32 1.5, %v10680_v20  ;;  %v10683_v2 = vsub.f32 1.5, %v10682_v35  ;;  %v10685_v62 = vld [vmem:[#allocation61_spill] sm:$0xff] }
 0x32c   :  { %v2846_v11 = vsel %vm8756_vm7, %v10630_v4, %v10684_v19  ;;  %vm2553_vm6 = vweird.f32 %v10685_v62  ;;  %vm2554_vm8 = vweird.f32 %v10686_v10  ;;  %v10687_v61 = vld [vmem:[#allocation124_spill] sm:$0xff]  ;;  %v8816_v20 = vmul.f32 0.5, %v2609_v40  ;;  %v10690_v4 = vld [vmem:[#allocation21_spill] sm:$0xff]  ;;  %v10699_v60 = vld [vmem:[#allocation126_spill] sm:$0xff] }
 0x32d   :  { %v1962_v1 = vmul.f32 %v10644_v24, %v10681_v50  ;;  %v1972_v36 = vmul.f32 %v10651_v26, %v10683_v2  ;;  %vm1953_vm14 = vweird.f32 %v10687_v61  ;;  %v8818_v50 = vmul.f32 0.5, %v2579_v14  ;;  %v10691_v19 = vld [vmem:[#allocation73_spill] sm:$0xff]  ;;  %vm8861_vm7 = vmor %vm1943_vm9, %vm1944_vm3  ;;  %v10744_v62 = vld [vmem:[#allocation132_spill] sm:$0xff] }
 0x32e   :  { %v3413_v7 = vunpack.c.l.b16 %v3027_v45  ;;  %v10692_v35 = vpack.c.b16 %v10690_v4, %v10691_v19  ;;  %v3575_v2 = vpack.c.b16 %v3542_v49, %v3541_v53  ;;  %v8823_v9 = vmul.f32 0.5, %v2739_v31  ;;  %v8835_v45 = vpop.eup %4489  ;;  %v10695_v4 = vld [vmem:[#allocation22_spill] sm:$0xff]  ;;  %v10696_v49 = vld [vmem:[#allocation19_spill] sm:$0xff]  ;;  %v10697_v53 = vld [vmem:[#allocation173_spill] sm:$0xff] }
 0x32f   :  { %v1966_v25 = vsel %vm8789_vm1, %v10644_v24, %v1962_v1  ;;  %v1976_v40 = vsel %vm8812_vm15, %v10651_v26, %v1972_v36  ;;  %v2856_v14 = vsel %vm8776_vm5, %v10637_v13, %v10693_v57  ;;  %10694 = vst [vmem:[#allocation18_spill] sm:$0xff] %v8835_v45  ;;  %vm2523_vm11 = vweird.f32 %v10695_v4  ;;  %v10700_v36 = vld [vmem:[#allocation20_spill] sm:$0xff]  ;;  %v10702_v13 = vld [vmem:[#allocation134_spill] sm:$0xff]  ;;  %vm8879_vm3 = vmor %vm2823_vm4, %vm2824_vm12 }
 0x330   :  { %vm2524_vm10 = vweird.f32 %v10696_v49  ;;  %v8839_v31 = vmul.f32 0.5, %v2769_v37  ;;  %3652 = vmatpush.bf16.xpose.msrb.mxu2 %v3575_v2  ;;  %v2931_v24 = vmul.f32 %v1966_v25, %v10697_v53  ;;  %v2932_v1 = vmul.f32 %v1976_v40, %v10698_v5  ;;  %v10701_v19 = vld [vmem:[#allocation92_spill] sm:$0xff]  ;;  %vm8915_vm15 = vmor %vm1953_vm14, %vm1954_vm13  ;;  %v10749_v61 = vld [vmem:[#allocation29_spill] sm:$0xff] }
 0x331   :  { %v3019_v26 = vmul.f32 %v2846_v11, %v10699_v60  ;;  %v2588_v57 = vmul.f32 %v8835_v45, %v8733_v52  ;;  %4491 = vrsqrt.f32 %v8793_v39  ;;  %v3020_v56 = vmul.f32 %v2856_v14, %v10702_v13  ;;  %v10704_v53 = vld [vmem:[#allocation16_spill] sm:$0xff]  ;;  %v10706_v60 = vld [vmem:[#allocation162_spill] sm:$0xff]  ;;  %v10757_v52 = vld [vmem:[#allocation71_spill] sm:$0xff] }
 0x332   :  { %v8850_v37 = vmax.f32 %v1460_v29, 1e-24  ;;  %v3063_v2 = vpack.c.bf16 %v2931_v24, %v2931_v24  ;;  %v3064_v25 = vpack.c.bf16 %v2932_v1, %v2932_v1  ;;  %v10705_v11 = vsub.f32 1.5, %v10704_v53  ;;  %v10709_v1 = vld [vmem:[#allocation194_spill] sm:$0xff] }
 0x333   :  { %3637 = vmatpush.bf16.xpose.msrb.mxu1 %v10692_v35  ;;  %v10703_v35 = vld [vmem:[#allocation142_spill] sm:$0xff]  ;;  %v3151_v40 = vpack.c.bf16 %v3019_v26, %v3019_v26  ;;  %v2611_v29 = vsub.f32 1.5, %v8816_v20  ;;  %v2581_v14 = vsub.f32 1.5, %v8818_v50  ;;  %v3152_v24 = vpack.c.bf16 %v3020_v56, %v3020_v56  ;;  %v10710_v26 = vld [vmem:[#allocation163_spill] sm:$0xff]  ;;  %v10714_v50 = vld [vmem:[#allocation153_spill] sm:$0xff] }
 0x334   :  { %v1942_v5 = vmul.f32 %v10663_v41, %v10705_v11  ;;  %4493 = vrsqrt.f32 %v8850_v37  ;;  %vm2663_vm5 = vweird.f32 %v10709_v1  ;;  %v2741_v13 = vsub.f32 1.5, %v8823_v9  ;;  %v10711_v53 = vld [vmem:[#allocation34_spill] sm:$0xff]  ;;  %v10715_v56 = vld [vmem:[#allocation183_spill] sm:$0xff] }
 0x335   :  { %3405 = vmatmul.bf16.vlgmr.msra.gmra.mxu1 %v10711_v53  ;;  %v3261_v15 = vunpack.c.l.b16 %v3063_v2  ;;  %v3262_v11 = vunpack.c.l.b16 %v3064_v25  ;;  %vm2673_vm9 = vweird.f32 %v10714_v50  ;;  %v2771_v9 = vsub.f32 1.5, %v8839_v31  ;;  %v10723_v31 = vld [vmem:[#allocation70_spill] sm:$0xff]  ;;  %v10784_v50 = vld [vmem:[#allocation75_spill] sm:$0xff] }
 0x336   :  { %v1946_v16 = vsel %vm8861_vm7, %v10663_v41, %v1942_v5  ;;  %v2589_v2 = vmul.f32 %v8835_v45, %v2588_v57  ;;  %v3539_v25 = vunpack.c.l.b16 %v3151_v40  ;;  %v3540_v53 = vunpack.c.l.b16 %v3152_v24  ;;  %v10719_v41 = vld [vmem:[#allocation169_spill] sm:$0xff]  ;;  %v10720_v5 = vld [vmem:[#allocation160_spill] sm:$0xff] }
 0x337   :  { %vm10716_vm7 = vweird.f32 %v10669_v17  ;;  %vm2803_vm4 = vweird.f32 %v10719_v41  ;;  %v3308_v51 = vpack.c.b16 %v3262_v11, %v3261_v15  ;;  %v10722_v3 = vpack.c.b16 %v10720_v5, %v10721_v27  ;;  %v10725_v40 = vld [vmem:[#allocation108_spill] sm:$0xff]  ;;  %v8906_v17 = vpop.eup %4491  ;;  %v10729_v15 = vld [vmem:[#allocation133_spill] sm:$0xff] }
 0x338   :  { %vm8891_vm1 = vmor %vm10716_vm7, %vm2544_vm2  ;;  %v10724_v6 = vsub.f32 1.5, %v10723_v31  ;;  %v2929_v24 = vmul.f32 %v1946_v16, %v10725_v40  ;;  %v8904_v45 = vpack.c.b16 %v8575_v58, %v3413_v7  ;;  %vm2504_vm2 = vweird.f32 %v10728_v47  ;;  %v10736_v11 = vld [vmem:[#allocation93_spill] sm:$0xff]  ;;  %v10745_v40 = vld [vmem:[#allocation179_spill] sm:$0xff] }
 0x339   :  { %vm2813_vm7 = vweird.f32 %v10729_v15  ;;  %v8925_v16 = vmul.f32 %v8571_v59, %v2611_v29  ;;  %v3574_v58 = vpack.c.b16 %v3540_v53, %v3539_v25  ;;  %v3566_v7 = vpack.c.b16 %v8370_v33, %v8361_v43  ;;  %3389 = vmatpush.bf16.xpose.msrb.mxu3 %v3308_v51  ;;  %v10737_v33 = vld [vmem:[#allocation33_spill] sm:$0xff]  ;;  %v10740_v53 = vld [vmem:[#allocation56_spill] sm:$0xff]  ;;  %v10741_v25 = vld [vmem:[#allocation51_spill] sm:$0xff] }
 0x33a   :  { %v1952_v57 = vmul.f32 %v10675_v8, %v10724_v6  ;;  %10726 = vst [vmem:[#allocation52_spill] sm:$0xff] %v8904_v45  ;;  %vm10733_vm12 = vweird.f32 %v10676_v28  ;;  %vm2644_vm14 = vweird.f32 %v10736_v11  ;;  %v8940_v5 = vmul.f32 %v8615_v30, %v2581_v14  ;;  %3617 = vmatmul.bf16.vlgmr.msra.gmra.mxu2 %v8904_v45  ;;  %v8950_v29 = vpop.eup %4493 }
 0x33b   :  { %3638 = vmatpush.bf16.xpose.msrb.mxu1 %v10722_v3  ;;  %v10732_v3 = vsub.f32 1.5, %v8743_v42  ;;  %vm8933_vm13 = vmor %vm10733_vm12, %vm2834_vm0  ;;  %v2826_v28 = vsel %vm8879_vm3, %v10665_v0, %v10737_v33  ;;  %vm2654_vm12 = vweird.f32 %v10740_v53  ;;  %3653 = vmatpush.bf16.xpose.msrb.mxu2 %v3574_v58  ;;  %v3061_v20 = vpack.c.bf16 %v2929_v24, %v2929_v24  ;;  %v10742_v0 = vld [vmem:[#allocation171_spill] sm:$0xff]  ;;  %v10746_v24 = vld [vmem:[#allocation88_spill] sm:$0xff] }
 0x33c   :  { %v1956_v43 = vsel %vm8915_vm15, %v10675_v8, %v1952_v57  ;;  %vm8956_vm0 = vmor %vm2553_vm6, %vm2554_vm8  ;;  %v8962_v8 = vmul.f32 %v8730_v12, %v2741_v13  ;;  %v2836_v31 = vsel %vm8933_vm13, %v10677_v44, %v10742_v0  ;;  %v10743_v57 = vld [vmem:[#allocation25_spill] sm:$0xff]  ;;  %vm2643_vm8 = vweird.f32 %v10745_v40  ;;  %v10762_v42 = vld [vmem:[#allocation72_spill] sm:$0xff] }
 0x33d   :  { %v8922_v6 = vmul.f32 %v8516_v22, %v10732_v3  ;;  %v2930_v51 = vmul.f32 %v1956_v43, %v10741_v25  ;;  %v8973_v27 = vmul.f32 %v8735_v54, %v2771_v9  ;;  %v8975_v13 = vmul.f32 0.5, %v2589_v2  ;;  %vm8984_vm3 = vmor %vm2523_vm11, %vm2524_vm10  ;;  %v10750_v43 = vld [vmem:[#allocation114_spill] sm:$0xff] }
 0x33e   :  { %v2748_v3 = vmul.f32 %v8950_v29, %v8850_v37  ;;  %v3017_v58 = vmul.f32 %v2826_v28, %v10746_v24  ;;  %vm2653_vm13 = vweird.f32 %v10749_v61  ;;  %v8992_v9 = vmul.f32 %v8906_v17, %v8793_v39  ;;  %v10751_v28 = vld [vmem:[#allocation182_spill] sm:$0xff]  ;;  %v10756_v24 = vld [vmem:[#allocation184_spill] sm:$0xff]  ;;  %v10800_v61 = vld [vmem:[#allocation193_spill] sm:$0xff] }
 0x33f   :  { %v3062_v2 = vpack.c.bf16 %v2930_v51, %v2930_v51  ;;  %v3018_v33 = vmul.f32 %v2836_v31, %v10750_v43  ;;  %v2546_v4 = vsel %vm8891_vm1, %v10670_v32, %v10751_v28  ;;  %vm10752_vm11 = vweird.f32 %v10701_v19  ;;  %v10761_v43 = vld [vmem:[#allocation69_spill] sm:$0xff] }
 0x340   :  { %vm10753_vm10 = vweird.f32 %v10700_v36  ;;  %v2749_v0 = vmul.f32 %v8950_v29, %v2748_v3  ;;  %v3149_v51 = vpack.c.bf16 %v3017_v58, %v3017_v58  ;;  %v2556_v31 = vsel %vm8956_vm0, %v10686_v10, %v10756_v24  ;;  %v10776_v36 = vld [vmem:[#allocation38_spill] sm:$0xff] }
 0x341   :  { %vm9003_vm6 = vmor %vm10753_vm10, %vm10752_vm11  ;;  %v2989_v32 = vmul.f32 %v2546_v4, %v10757_v52  ;;  %vm10758_vm1 = vweird.f32 %v10703_v35  ;;  %vm2783_vm10 = vweird.f32 %v10761_v43  ;;  %v3259_v28 = vunpack.c.l.b16 %v3061_v20  ;;  %v10766_v20 = vld [vmem:[#allocation95_spill] sm:$0xff]  ;;  %v10775_v52 = vld [vmem:[#allocation112_spill] sm:$0xff] }
 0x342   :  { %vm9018_vm11 = vmor %vm2663_vm5, %vm10758_vm1  ;;  %v3260_v3 = vunpack.c.l.b16 %v3062_v2  ;;  %v3150_v58 = vpack.c.bf16 %v3018_v33, %v3018_v33  ;;  %v2990_v45 = vmul.f32 %v2556_v31, %v10762_v42  ;;  %vm10763_vm15 = vweird.f32 %v10706_v60 }
 0x343   :  { %vm9028_vm0 = vmor %vm2673_vm9, %vm10763_vm15  ;;  %v9033_v1 = vmul.f32 0.5, %v2749_v0  ;;  %3639 = vmatpush.bf16.xpose.msrb.mxu1 %v3566_v7  ;;  %v3537_v14 = vunpack.c.l.b16 %v3149_v51  ;;  %v3121_v4 = vpack.c.bf16 %v2989_v32, %v2989_v32  ;;  %v2666_v42 = vsel %vm9018_vm11, %v10703_v35, %v10766_v20  ;;  %v10770_v0 = vld [vmem:[#allocation96_spill] sm:$0xff]  ;;  %v10789_v35 = vld [vmem:[#allocation137_spill] sm:$0xff] }
 0x344   :  { %vm10767_vm1 = vweird.f32 %v10710_v26  ;;  %vm2624_vm15 = vweird.f32 %v8342_v34  ;;  %v3307_v2 = vpack.c.b16 %v3260_v3, %v3259_v28  ;;  %v3538_v33 = vunpack.c.l.b16 %v3150_v58  ;;  %v10777_v3 = vld [vmem:[#allocation170_spill] sm:$0xff] }
 0x345   :  { %vm9043_vm9 = vmor %vm2803_vm4, %vm10767_vm1  ;;  %v3122_v7 = vpack.c.bf16 %v2990_v45, %v2990_v45  ;;  %v2676_v51 = vsel %vm9028_vm0, %v10706_v60, %v10770_v0  ;;  %vm10771_vm11 = vweird.f32 %v10715_v56  ;;  %v2591_v41 = vsub.f32 1.5, %v8975_v13  ;;  %v10774_v45 = vld [vmem:[#allocation109_spill] sm:$0xff]  ;;  %v10896_v13 = vld [vmem:[#allocation174_spill] sm:$0xff] }
 0x346   :  { %vm9056_vm5 = vmor %vm2813_vm7, %vm10771_vm11  ;;  %v9062_v24 = vunpack.c.l.b16 %v3121_v4  ;;  %v3001_v31 = vmul.f32 %v2666_v42, %v10774_v45  ;;  %v3002_v32 = vmul.f32 %v2676_v51, %v10775_v52  ;;  %vm2623_vm0 = vweird.f32 %v8248_v63  ;;  %3390 = vmatpush.bf16.xpose.msrb.mxu3 %v3307_v2  ;;  %v10782_v4 = vld [vmem:[#allocation129_spill] sm:$0xff]  ;;  %v10829_v63 = vld [vmem:[#allocation26_spill] sm:$0xff] }
 0x347   :  { %v3573_v60 = vpack.c.b16 %v3538_v33, %v3537_v14  ;;  %v3510_v15 = vunpack.c.l.b16 %v3122_v7  ;;  %v2806_v28 = vsel %vm9043_vm9, %v10710_v26, %v10776_v36  ;;  %v2816_v58 = vsel %vm9056_vm5, %v10715_v56, %v10777_v3  ;;  %v10781_v26 = vld [vmem:[#allocation148_spill] sm:$0xff]  ;;  %v10788_v0 = vld [vmem:[#allocation77_spill] sm:$0xff] }
 0x348   :  { %vm10778_vm7 = vweird.f32 %v10727_v23  ;;  %vm2633_vm1 = vweird.f32 %v8440_v38  ;;  %vm2774_vm4 = vweird.f32 %v8735_v54  ;;  %v2751_v14 = vsub.f32 1.5, %v9033_v1  ;;  %v10787_v33 = vld [vmem:[#allocation140_spill] sm:$0xff]  ;;  %v10791_v52 = vld [vmem:[#allocation177_spill] sm:$0xff]  ;;  %v10809_v23 = vld [vmem:[#allocation103_spill] sm:$0xff] }
 0x349   :  { %vm9080_vm11 = vmor %vm10778_vm7, %vm2504_vm2  ;;  %v10783_v20 = vpack.c.b16 %v10781_v26, %v10782_v4  ;;  %v3133_v42 = vpack.c.bf16 %v3001_v31, %v3001_v31  ;;  %v3134_v56 = vpack.c.bf16 %v3002_v32, %v3002_v32  ;;  %v3015_v2 = vmul.f32 %v2806_v28, %v10784_v50  ;;  %3654 = vmatpush.bf16.xpose.msrb.mxu2 %v3573_v60  ;;  %v10790_v31 = vld [vmem:[#allocation42_spill] sm:$0xff]  ;;  %v10794_v32 = vld [vmem:[#allocation165_spill] sm:$0xff] }
 0x34a   :  { %vm9095_vm2 = vmor %vm2643_vm8, %vm2644_vm14  ;;  %vm2763_vm5 = vweird.f32 %v10787_v33  ;;  %v3559_v7 = vpack.c.b16 %v3510_v15, %v9062_v24  ;;  %v3016_v51 = vmul.f32 %v2816_v58, %v10788_v0  ;;  %v2526_v45 = vsel %vm8984_vm3, %v10696_v49, %v10789_v35  ;;  %v10795_v15 = vld [vmem:[#allocation64_spill] sm:$0xff]  ;;  %v10801_v28 = vld [vmem:[#allocation67_spill] sm:$0xff] }
 0x34b   :  { %v2536_v40 = vsel %vm9003_vm6, %v10701_v19, %v10790_v31  ;;  %vm9115_vm8 = vmor %vm2653_vm13, %vm2654_vm12  ;;  %vm2773_vm9 = vweird.f32 %v10794_v32  ;;  %v3521_v60 = vunpack.c.l.b16 %v3133_v42  ;;  %v3522_v44 = vunpack.c.l.b16 %v3134_v56  ;;  %v10802_v58 = vld [vmem:[#allocation41_spill] sm:$0xff]  ;;  %v10808_v56 = vld [vmem:[#allocation186_spill] sm:$0xff] }
 0x34c   :  { %v3147_v49 = vpack.c.bf16 %v3015_v2, %v3015_v2  ;;  %v2987_v36 = vmul.f32 %v2526_v45, %v10795_v15  ;;  %vm10796_vm3 = vweird.f32 %v10744_v62  ;;  %vm10797_vm6 = vweird.f32 %v10743_v57  ;;  %v10803_v4 = vld [vmem:[#allocation45_spill] sm:$0xff]  ;;  %v10804_v57 = vld [vmem:[#allocation166_spill] sm:$0xff]  ;;  %vm9183_vm12 = vmor %vm2623_vm0, %vm2624_vm15 }
 0x34d   :  { %vm9125_vm7 = vmor %vm10797_vm6, %vm10796_vm3  ;;  %v3148_v25 = vpack.c.bf16 %v3016_v51, %v3016_v51  ;;  %v2988_v3 = vmul.f32 %v2536_v40, %v10801_v28  ;;  %v2646_v26 = vsel %vm9095_vm2, %v10736_v11, %v10802_v58  ;;  %vm10805_vm3 = vweird.f32 %v8166_v46  ;;  %v10810_v51 = vld [vmem:[#allocation192_spill] sm:$0xff]  ;;  %v10815_v45 = vld [vmem:[#allocation105_spill] sm:$0xff] }
 0x34e   :  { %3623 = vmatpush.bf16.xpose.msra.mxu3 %v10783_v20  ;;  %v2656_v20 = vsel %vm9115_vm8, %v10740_v53, %v10803_v4  ;;  %vm9144_vm6 = vmor %vm2783_vm10, %vm10805_vm3  ;;  %v3565_v50 = vpack.c.b16 %v3522_v44, %v3521_v60  ;;  %v3535_v2 = vunpack.c.l.b16 %v3147_v49  ;;  %v3119_v11 = vpack.c.bf16 %v2987_v36, %v2987_v36  ;;  %v10816_v40 = vld [vmem:[#allocation116_spill] sm:$0xff]  ;;  %v10819_v15 = vld [vmem:[#allocation101_spill] sm:$0xff] }
 0x34f   :  { %v2999_v0 = vmul.f32 %v2646_v26, %v10809_v23  ;;  %vm2493_vm2 = vweird.f32 %v10810_v51  ;;  %vm10811_vm8 = vweird.f32 %v8314_v21  ;;  %vm10812_vm13 = vweird.f32 %v8226_v55  ;;  %v10817_v60 = vld [vmem:[#allocation144_spill] sm:$0xff]  ;;  %v10818_v55 = vld [vmem:[#allocation34_spill] sm:$0xff]  ;;  %v10822_v4 = vld [vmem:[#allocation159_spill] sm:$0xff] }
 0x350   :  { %vm9155_vm14 = vmor %vm10812_vm13, %vm10811_vm8  ;;  %vm2614_vm10 = vweird.f32 %v8571_v59  ;;  %v3536_v43 = vunpack.c.l.b16 %v3148_v25  ;;  %v3120_v35 = vpack.c.bf16 %v2988_v3, %v2988_v3  ;;  %v3000_v31 = vmul.f32 %v2656_v20, %v10815_v45  ;;  %3391 = vmatmul.bf16.vlgmr.msrb.gmra.mxu3 %v10818_v55  ;;  %3640 = vmatpush.bf16.xpose.msrb.mxu1 %v3565_v50  ;;  %v10820_v25 = vld [vmem:[#allocation151_spill] sm:$0xff]  ;;  %v10821_v3 = vld [vmem:[#allocation98_spill] sm:$0xff] }
 0x351   :  { %v2786_v24 = vsel %vm9144_vm6, %v8166_v46, %v10816_v40  ;;  %vm2603_vm3 = vweird.f32 %v10817_v60  ;;  %v9168_v44 = vunpack.c.l.b16 %v3119_v11  ;;  %v3131_v49 = vpack.c.bf16 %v2999_v0, %v2999_v0  ;;  %v10823_v42 = vld [vmem:[#allocation46_spill] sm:$0xff]  ;;  %v10833_v45 = vld [vmem:[#allocation57_spill] sm:$0xff]  ;;  %v10838_v40 = vld [vmem:[#allocation59_spill] sm:$0xff] }
 0x352   :  { %v2796_v36 = vsel %vm9155_vm14, %v8314_v21, %v10819_v15  ;;  %v3013_v28 = vmul.f32 %v2786_v24, %v10820_v25  ;;  %vm2613_vm13 = vweird.f32 %v10821_v3  ;;  %v3572_v46 = vpack.c.b16 %v3536_v43, %v3535_v2  ;;  %v10826_v21 = vld [vmem:[#allocation158_spill] sm:$0xff]  ;;  %v10827_v2 = vld [vmem:[#allocation167_spill] sm:$0xff]  ;;  %v10839_v55 = vld [vmem:[#allocation128_spill] sm:$0xff] }
 0x353   :  { %v3508_v58 = vunpack.c.l.b16 %v3120_v35  ;;  %v3132_v26 = vpack.c.bf16 %v3000_v31, %v3000_v31  ;;  %v3014_v20 = vmul.f32 %v2796_v36, %v10822_v4  ;;  %vm2743_vm14 = vweird.f32 %v10826_v21  ;;  %v10828_v53 = vld [vmem:[#allocation66_spill] sm:$0xff]  ;;  %v10843_v36 = vld [vmem:[#allocation97_spill] sm:$0xff] }
 0x354   :  { %v3519_v11 = vunpack.c.l.b16 %v3131_v49  ;;  %v3145_v23 = vpack.c.bf16 %v3013_v28, %v3013_v28  ;;  %v2506_v0 = vsel %vm9080_vm11, %v10728_v47, %v10827_v2  ;;  %v2516_v43 = vsel %vm9125_vm7, %v10744_v62, %v10828_v53  ;;  %3655 = vmatpush.bf16.xpose.msrb.mxu2 %v3572_v46  ;;  %v10834_v62 = vld [vmem:[#allocation68_spill] sm:$0xff]  ;;  %v10844_v28 = vld [vmem:[#allocation18_spill] sm:$0xff] }
 0x355   :  { %vm10830_vm0 = vweird.f32 %v8516_v22  ;;  %vm2753_vm6 = vweird.f32 %v8850_v37  ;;  %v3558_v47 = vpack.c.b16 %v3508_v58, %v9168_v44  ;;  %v3520_v10 = vunpack.c.l.b16 %v3132_v26  ;;  %v10840_v49 = vld [vmem:[#allocation156_spill] sm:$0xff]  ;;  %v10846_v58 = vld [vmem:[#allocation43_spill] sm:$0xff] }
 0x356   :  { %3624 = vmatpush.bf16.xpose.msra.mxu3 %v3559_v7  ;;  %vm9201_vm8 = vmor %vm2633_vm1, %vm10830_vm0  ;;  %v3146_v35 = vpack.c.bf16 %v3014_v20, %v3014_v20  ;;  %v2985_v19 = vmul.f32 %v2506_v0, %v10833_v45  ;;  %vm2473_vm11 = vweird.f32 %v10834_v62  ;;  %vm10835_vm7 = vweird.f32 %v8499_v48  ;;  %v10851_v20 = vld [vmem:[#allocation79_spill] sm:$0xff]  ;;  %v10852_v0 = vld [vmem:[#allocation145_spill] sm:$0xff] }
 0x357   :  { %vm9213_vm15 = vmor %vm2763_vm5, %vm10835_vm7  ;;  %v9220_v31 = vmul.f32 %v8950_v29, %v2751_v14  ;;  %v2986_v24 = vmul.f32 %v2516_v43, %v10838_v40  ;;  %v2626_v44 = vsel %vm9183_vm12, %v8342_v34, %v10839_v55  ;;  %v2636_v33 = vsel %vm9201_vm8, %v8516_v22, %v8922_v6  ;;  %v10845_v6 = vld [vmem:[#allocation99_spill] sm:$0xff]  ;;  %v10857_v43 = vld [vmem:[#allocation149_spill] sm:$0xff] }
 0x358   :  { %vm2463_vm1 = vweird.f32 %v10840_v49  ;;  %vm2584_vm5 = vweird.f32 %v8615_v30  ;;  %vm9237_vm0 = vmor %vm2773_vm9, %vm2774_vm4  ;;  %v3564_v14 = vpack.c.b16 %v3520_v10, %v3519_v11  ;;  %v3534_v15 = vunpack.c.l.b16 %v3146_v35  ;;  %v10863_v40 = vld [vmem:[#allocation125_spill] sm:$0xff] }
 0x359   :  { %v3117_v34 = vpack.c.bf16 %v2985_v19, %v2985_v19  ;;  %v2997_v25 = vmul.f32 %v2626_v44, %v10843_v36  ;;  %vm2594_vm12 = vweird.f32 %v10844_v28  ;;  %v3118_v22 = vpack.c.bf16 %v2986_v24, %v2986_v24  ;;  %v10862_v19 = vld [vmem:[#allocation37_spill] sm:$0xff] }
 0x35a   :  { %v2998_v46 = vmul.f32 %v2636_v33, %v10845_v6  ;;  %v2766_v26 = vsel %vm9213_vm15, %v8499_v48, %v10846_v58  ;;  %v2776_v32 = vsel %vm9237_vm0, %v8735_v54, %v8973_v27  ;;  %vm10847_vm4 = vweird.f32 %v10791_v52  ;;  %v10856_v27 = vld [vmem:[#allocation40_spill] sm:$0xff]  ;;  %3641 = vmatpush.bf16.xpose.msrb.mxu1 %v3564_v14  ;;  %v10866_v33 = vld [vmem:[#allocation50_spill] sm:$0xff] }
 0x35b   :  { %vm10848_vm9 = vweird.f32 %v10804_v57  ;;  %vm2583_vm7 = vweird.f32 %v10851_v20  ;;  %v3533_v50 = vunpack.c.l.b16 %v3145_v23  ;;  %v3505_v11 = vunpack.c.l.b16 %v3117_v34  ;;  %v10858_v23 = vld [vmem:[#allocation39_spill] sm:$0xff]  ;;  %v10887_v20 = vld [vmem:[#allocation118_spill] sm:$0xff] }
 0x35c   :  { %vm9256_vm8 = vmor %vm10848_vm9, %vm10847_vm4  ;;  %v3129_v2 = vpack.c.bf16 %v2997_v25, %v2997_v25  ;;  %v3011_v48 = vmul.f32 %v2766_v26, %v10852_v0  ;;  %vm10853_vm15 = vweird.f32 %v10800_v61  ;;  %vm2593_vm4 = vweird.f32 %v10856_v27  ;;  %v10874_v25 = vld [vmem:[#allocation89_spill] sm:$0xff]  ;;  %v10882_v0 = vld [vmem:[#allocation82_spill] sm:$0xff] }
 0x35d   :  { %vm9266_vm0 = vmor %vm2493_vm2, %vm10853_vm15  ;;  %v3506_v57 = vunpack.c.l.b16 %v3118_v22  ;;  %v3130_v53 = vpack.c.bf16 %v2998_v46, %v2998_v46  ;;  %v3012_v7 = vmul.f32 %v2776_v32, %v10857_v43  ;;  %v2486_v10 = vsel %vm9256_vm8, %v10791_v52, %v10858_v23  ;;  %v10880_v32 = vld [vmem:[#allocation36_spill] sm:$0xff] }
 0x35e   :  { %vm10859_vm9 = vweird.f32 %v10808_v56  ;;  %v3571_v35 = vpack.c.b16 %v3534_v15, %v3533_v50  ;;  %v3143_v45 = vpack.c.bf16 %v3011_v48, %v3011_v48  ;;  %v2496_v38 = vsel %vm9266_vm0, %v10800_v61, %v10862_v19  ;;  %vm9293_vm8 = vmor %vm2613_vm13, %vm2614_vm10  ;;  %3625 = vmatpush.bf16.xpose.msra.mxu3 %v3558_v47  ;;  %v10870_v47 = vld [vmem:[#allocation48_spill] sm:$0xff]  ;;  %v10890_v19 = vld [vmem:[#allocation147_spill] sm:$0xff] }
 0x35f   :  { %vm9280_vm2 = vmor %vm2603_vm3, %vm10859_vm9  ;;  %v2983_v24 = vmul.f32 %v2486_v10, %v10863_v40  ;;  %v3557_v60 = vpack.c.b16 %v3506_v57, %v3505_v11  ;;  %v3518_v55 = vunpack.c.l.b16 %v3130_v53  ;;  %v3144_v44 = vpack.c.bf16 %v3012_v7, %v3012_v7  ;;  %v10881_v11 = vld [vmem:[#allocation60_spill] sm:$0xff] }
 0x360   :  { %v2984_v1 = vmul.f32 %v2496_v38, %v10866_v33  ;;  %vm10867_vm3 = vweird.f32 %v8730_v12  ;;  %v2592_v3 = vmul.f32 %v10844_v28, %v2591_v41  ;;  %3656 = vmatpush.bf16.xpose.msrb.mxu2 %v3571_v35  ;;  %v2606_v15 = vsel %vm9280_vm2, %v10808_v56, %v10870_v47  ;;  %vm2595_vm9 = vmor %vm2593_vm4, %vm2594_vm12 }
 0x361   :  { %vm9302_vm15 = vmor %vm2743_vm14, %vm10867_vm3  ;;  %v3115_v14 = vpack.c.bf16 %v2983_v24, %v2983_v24  ;;  %v2616_v21 = vsel %vm9293_vm8, %v8571_v59, %v8925_v16  ;;  %vm10871_vm10 = vweird.f32 %v8950_v29  ;;  %v3517_v41 = vunpack.c.l.b16 %v3129_v2  ;;  %v10878_v16 = vld [vmem:[#allocation94_spill] sm:$0xff] }
 0x362   :  { %vm9321_vm13 = vmor %vm2753_vm6, %vm10871_vm10  ;;  %v3532_v34 = vunpack.c.l.b16 %v3144_v44  ;;  %v3116_v36 = vpack.c.bf16 %v2984_v1, %v2984_v1  ;;  %v2995_v22 = vmul.f32 %v2606_v15, %v10874_v25  ;;  %vm10875_vm14 = vweird.f32 %v10823_v42  ;;  %v10891_v24 = vld [vmem:[#allocation86_spill] sm:$0xff]  ;;  %v10897_v25 = vld [vmem:[#allocation24_spill] sm:$0xff] }
 0x363   :  { %vm9330_vm0 = vmor %vm2473_vm11, %vm10875_vm14  ;;  %v3503_v59 = vunpack.c.l.b16 %v3115_v14  ;;  %v2996_v37 = vmul.f32 %v2616_v21, %v10878_v16  ;;  %v2746_v6 = vsel %vm9302_vm15, %v8730_v12, %v8962_v8  ;;  %v2756_v46 = vsel %vm9321_vm13, %v8950_v29, %v9220_v31  ;;  %v10883_v8 = vld [vmem:[#allocation31_spill] sm:$0xff]  ;;  %v10895_v14 = vld [vmem:[#allocation121_spill] sm:$0xff] }
 0x364   :  { %vm10879_vm6 = vweird.f32 %v10829_v63  ;;  %v3563_v62 = vpack.c.b16 %v3518_v55, %v3517_v41  ;;  %v3531_v58 = vunpack.c.l.b16 %v3143_v45  ;;  %v3504_v26 = vunpack.c.l.b16 %v3116_v36  ;;  %v10889_v45 = vld [vmem:[#allocation185_spill] sm:$0xff]  ;;  %v10892_v55 = vld [vmem:[#allocation127_spill] sm:$0xff] }
 0x365   :  { %vm2465_vm11 = vmor %vm2463_vm1, %vm10879_vm6  ;;  %v3009_v4 = vmul.f32 %v2746_v6, %v10880_v32  ;;  %v3128_v50 = vpack.c.bf16 %v2996_v37, %v2996_v37  ;;  %v3010_v2 = vmul.f32 %v2756_v46, %v10881_v11  ;;  %v2476_v29 = vsel %vm9330_vm0, %v10823_v42, %v10883_v8  ;;  %v10901_v8 = vld [vmem:[#allocation52_spill] sm:$0xff] }
 0x366   :  { %v2466_v12 = vsel %vm2465_vm11, %v10829_v63, %v10882_v0  ;;  %vm9359_vm1 = vmor %vm2583_vm7, %vm2584_vm5  ;;  %v2419_v49 = vmul.f32 %v8906_v17, %v8992_v9  ;;  %3642 = vmatpush.bf16.xpose.msrb.mxu1 %v3563_v62  ;;  %v3556_v48 = vpack.c.b16 %v3504_v26, %v3503_v59  ;;  %v3127_v54 = vpack.c.bf16 %v2995_v22, %v2995_v22  ;;  %v10886_v63 = vld [vmem:[#allocation117_spill] sm:$0xff]  ;;  %v10898_v62 = vld [vmem:[#allocation115_spill] sm:$0xff] }
 0x367   :  { %v2981_v57 = vmul.f32 %v2466_v12, %v10886_v63  ;;  %v3570_v42 = vpack.c.b16 %v3532_v34, %v3531_v58  ;;  %v3142_v53 = vpack.c.bf16 %v3010_v2, %v3010_v2  ;;  %v2982_v43 = vmul.f32 %v2476_v29, %v10887_v20  ;;  %v10888_v9 = vld [vmem:[#allocation161_spill] sm:$0xff]  ;;  %3626 = vmatpush.bf16.xpose.msra.mxu3 %v3557_v60  ;;  %v10900_v0 = vld [vmem:[#allocation172_spill] sm:$0xff] }
 0x368   :  { %v2586_v7 = vsel %vm9359_vm1, %v8615_v30, %v8940_v5  ;;  %v2441_v23 = vsub.f32 1.5, %v10888_v9  ;;  %v3516_v10 = vunpack.c.l.b16 %v3128_v50  ;;  %v2596_v35 = vsel %vm2595_vm9, %v10844_v28, %v2592_v3  ;;  %v10893_v30 = vld [vmem:[#allocation84_spill] sm:$0xff]  ;;  %v3378_v9 = vpop.f32.mrf.mxu2 }
 0x369   :  { %v3113_v51 = vpack.c.bf16 %v2981_v57, %v2981_v57  ;;  %v2429_v27 = vmul.f32 %v10890_v19, %v10889_v45  ;;  %3657 = vmatpush.bf16.xpose.msrb.mxu2 %v3570_v42  ;;  %v3141_v38 = vpack.c.bf16 %v3009_v4, %v3009_v4  ;;  %v3114_v40 = vpack.c.bf16 %v2982_v43, %v2982_v43  ;;  %v10899_v4 = vld [vmem:[#allocation113_spill] sm:$0xff]  ;;  %v10903_v57 = vld [vmem:[#allocation107_spill] sm:$0xff] }
 0x36a   :  { %v2994_v52 = vmul.f32 %v2596_v35, %v10891_v24  ;;  %vm2454_vm5 = vweird.f32 %v10892_v55  ;;  %v3515_v44 = vunpack.c.l.b16 %v3127_v54  ;;  %v2993_v5 = vmul.f32 %v2586_v7, %v10893_v30 }
 0x36b   :  { %v3501_v33 = vunpack.c.l.b16 %v3113_v51  ;;  %v10894_v60 = vsub.f32 1.5, %v8591_v18  ;;  %v2420_v61 = vmul.f32 0.5, %v2419_v49  ;;  %v3530_v28 = vunpack.c.l.b16 %v3142_v53 }
 0x36c   :  { %v3502_v3 = vunpack.c.l.b16 %v3114_v40  ;;  %v2442_v47 = vmul.f32 %v10895_v14, %v2441_v23  ;;  %vm2444_vm12 = vweird.f32 %v10895_v14  ;;  %v3562_v15 = vpack.c.b16 %v3516_v10, %v3515_v44  ;;  %v4497_v23 = vld [vmem:[#allocation5] sm:$0xf] }
 0x36d   :  { %v2452_v1 = vmul.f32 %v10892_v55, %v10894_v60  ;;  %v3126_v21 = vpack.c.bf16 %v2994_v52, %v2994_v52  ;;  %vm2453_vm7 = vweird.f32 %v10896_v13  ;;  %v2430_v41 = vmul.f32 0.5, %v2429_v27  ;;  %v3666_v52 = vld [vmem:[#allocation5 + $0x4] sm:$0xf] }
 0x36e   :  { %v3529_v34 = vunpack.c.l.b16 %v3141_v38  ;;  %v3555_v36 = vpack.c.b16 %v3502_v3, %v3501_v33  ;;  %vm2455_vm4 = vmor %vm2453_vm7, %vm2454_vm5  ;;  %3643 = vmatpush.bf16.xpose.msrb.mxu1 %v3562_v15  ;;  %v3125_v18 = vpack.c.bf16 %v2993_v5, %v2993_v5  ;;  %vm2443_vm2 = vweird.f32 %v10897_v25 }
 0x36f   :  { %v2421_v22 = vsub.f32 1.5, %v2420_v61  ;;  %v2456_v59 = vsel %vm2455_vm4, %v10892_v55, %v2452_v1  ;;  %vm2445_vm8 = vmor %vm2443_vm2, %vm2444_vm12  ;;  %3627 = vmatpush.bf16.xpose.msra.mxu3 %v3556_v48  ;;  %v3514_v16 = vunpack.c.l.b16 %v3126_v21  ;;  %v2431_v37 = vsub.f32 1.5, %v2430_v41  ;;  %v10902_v48 = vld [vmem:[#allocation106_spill] sm:$0xff] }
 0x370   :  { %v3569_v56 = vpack.c.b16 %v3530_v28, %v3529_v34  ;;  %v2446_v6 = vsel %vm2445_vm8, %v10895_v14, %v2442_v47  ;;  %v3513_v46 = vunpack.c.l.b16 %v3125_v18  ;;  %v2980_v58 = vmul.f32 %v2456_v59, %v10898_v62  ;;  %v3380_v45 = vpop.f32.mrf.mxu2 }
 0x371   :  { %v2422_v26 = vmul.f32 %v8906_v17, %v2421_v22  ;;  %vm2424_vm3 = vweird.f32 %v8906_v17  ;;  %v2979_v50 = vmul.f32 %v2446_v6, %v10899_v4  ;;  %v2432_v11 = vmul.f32 %v10890_v19, %v2431_v37 }
 0x372   :  { %3658 = vmatpush.bf16.xpose.msrb.mxu2 %v3569_v56  ;;  %v3561_v32 = vpack.c.b16 %v3514_v16, %v3513_v46  ;;  %vm2434_vm15 = vweird.f32 %v10890_v19  ;;  %vm2423_vm10 = vweird.f32 %v8793_v39  ;;  %v3112_v2 = vpack.c.bf16 %v2980_v58, %v2980_v58  ;;  %v3702_v46 = vpop.xlane.xlu0 %3701 }
 0x373   :  { %vm2425_vm13 = vmor %vm2423_vm10, %vm2424_vm3  ;;  %vm2433_vm14 = vweird.f32 %v10900_v0  ;;  %v3111_v29 = vpack.c.bf16 %v2979_v50, %v2979_v50  ;;  %v3672_v10 = vperm.slane %v4497_v23, 3  ;;  %v3673_v44 = vperm.slane %v3666_v52, 0 }
 0x374   :  { %v2426_v12 = vsel %vm2425_vm13, %v8906_v17, %v2422_v26  ;;  %vm2435_vm0 = vmor %vm2433_vm14, %vm2434_vm15  ;;  %v3500_v49 = vunpack.c.l.b16 %v3112_v2  ;;  %v3671_v5 = vperm.slane %v4497_v23, 2  ;;  %v3675_v14 = vperm.slane %v3666_v52, 2 }
 0x375   :  { %v2436_v31 = vsel %vm2435_vm0, %v10890_v19, %v2432_v11  ;;  %v2977_v54 = vmul.f32 %v2426_v12, %v10902_v48  ;;  %v3499_v63 = vunpack.c.l.b16 %v3111_v29  ;;  %v3670_v19 = vperm.slane %v4497_v23, 1  ;;  %v3749_v23 = vld [vmem:[#allocation2 + $0x1] sm:$0x1] }
 0x376   :  { %3644 = vmatpush.bf16.xpose.msrb.mxu1 %v3561_v32  ;;  %v2978_v39 = vmul.f32 %v2436_v31, %v10903_v57  ;;  %v3674_v25 = vperm.slane %v3666_v52, 1  ;;  %vm3733_vm6 = vcmask 7168   ;;  %vm3738_vm11 = vcmask 15360  }
 0x377   :  { %3628 = vmatpush.bf16.xpose.msra.mxu3 %v3555_v36  ;;  %v3554_v42 = vpack.c.b16 %v3500_v49, %v3499_v63  ;;  %v3109_v53 = vpack.c.bf16 %v2977_v54, %v2977_v54  ;;  %v3686_v38 = vmul.f32 %v3670_v19, %v3378_v9  ;;  %v3690_v55 = vmul.f32 %v3670_v19, %v3380_v45  ;;  %v3748_v49 = vld [vmem:[#allocation2] sm:$0x1] }
 0x378   :  { %v3110_v20 = vpack.c.bf16 %v2978_v39, %v2978_v39  ;;  %v3676_v36 = vperm.slane %v3666_v52, 3  ;;  %vm3743_vm1 = vcmask 23552   ;;  %vm3750_vm9 = vcmask 130048  }
 0x379   :  { %3659 = vmatmul.bf16.vlgmr.msrb.gmra.mxu2 %v10901_v8  ;;  %v3497_v17 = vunpack.c.l.b16 %v3109_v53  ;;  %vm3800_vm5 = vcmask 1041409   ;;  %vm3803_vm12 = vcmask 25600  }
 0x37a   :  { %v3498_v43 = vunpack.c.l.b16 %v3110_v20  ;;  %v3704_v26 = vpop.xlane.xlu0 %3703 }
 0x37c   :  { %v3553_v7 = vpack.c.b16 %v3498_v43, %v3497_v17 }
 0x37d   :  { %3645 = vmatmul.bf16.vlgmr.msrb.gmra.mxu1 %v10901_v8 }
 0x37f   :  { %3629 = vmatpush.bf16.xpose.msra.mxu3 %v3554_v42 }
 0x387   :  { %3630 = vmatpush.bf16.xpose.msra.mxu3 %v3553_v7 }
 0x38e   :  { %3631 = vmatmul.bf16.vlgmr.msra.gmra.mxu3 %v10901_v8 }
 0x3b2   :  { %v3406_v51 = vpop.f32.mrf.mxu1 }
 0x3b3   :  { %v3688_v35 = vmul.f32 %v3672_v10, %v3406_v51 }
 0x3b5   :  { %3725 = vmax.xlane.f32.xlu1 %v3688_v35 }
 0x3ba   :  { %v3408_v27 = vpop.f32.mrf.mxu1 }
 0x3bb   :  { %v3692_v40 = vmul.f32 %v3672_v10, %v3408_v27 }
 0x3bd   :  { %v3618_v24 = vpop.f32.mrf.mxu2  ;;  %3709 = vmax.xlane.f32.xlu1 %v3686_v38  ;;  %3727 = vmax.xlane.f32.xlu2 %v3692_v40 }
 0x3be   :  { %v3693_v3 = vmul.f32 %v3673_v44, %v3618_v24 }
 0x3c5   :  { %v3620_v33 = vpop.f32.mrf.mxu2  ;;  %3711 = vmax.xlane.f32.xlu1 %v3690_v55 }
 0x3c6   :  { %v3697_v30 = vmul.f32 %v3673_v44, %v3620_v33 }
 0x3c8   :  { %3707 = vmax.xlane.f32.xlu2 %v3697_v30 }
 0x3d3   :  { %v3392_v60 = vpop.f32.mrf.mxu3 }
 0x3d4   :  { %v3687_v1 = vmul.f32 %v3671_v5, %v3392_v60 }
 0x3d6   :  { %3717 = vmax.xlane.f32.xlu0 %v3687_v1 }
 0x3db   :  { %v3394_v61 = vpop.f32.mrf.mxu3 }
 0x3dc   :  { %v3691_v28 = vmul.f32 %v3671_v5, %v3394_v61 }
 0x3de   :  { %3719 = vmax.xlane.f32.xlu2 %v3691_v28 }
 0x3e6   :  { %3705 = vmax.xlane.f32.xlu2 %v3693_v3 }
 0x3fa   :  { %v3646_v47 = vpop.f32.mrf.mxu1 }
 0x3fb   :  { %v3695_v15 = vmul.f32 %v3675_v14, %v3646_v47 }
 0x3fc   :  { %v3660_v21 = vpop.f32.mrf.mxu2 }
 0x3fd   :  { %3721 = vmax.xlane.f32.xlu2 %v3695_v15  ;;  %v3696_v37 = vmul.f32 %v3676_v36, %v3660_v21 }
 0x402   :  { %v3648_v13 = vpop.f32.mrf.mxu1 }
 0x403   :  { %v3699_v41 = vmul.f32 %v3675_v14, %v3648_v13 }
 0x404   :  { %v3662_v34 = vpop.f32.mrf.mxu2 }
 0x405   :  { %3723 = vmax.xlane.f32.xlu1 %v3699_v41  ;;  %v3700_v18 = vmul.f32 %v3676_v36, %v3662_v34 }
 0x40d   :  { %3731 = vmax.xlane.f32.xlu1 %v3700_v18 }
 0x411   :  { %v3632_v22 = vpop.f32.mrf.mxu3 }
 0x412   :  { %v3694_v56 = vmul.f32 %v3674_v25, %v3632_v22 }
 0x414   :  { %3713 = vmax.xlane.f32.xlu0 %v3694_v56 }
 0x419   :  { %v3634_v59 = vpop.f32.mrf.mxu3 }
 0x41a   :  { %v3698_v16 = vmul.f32 %v3674_v25, %v3634_v59 }
 0x41c   :  { %3715 = vmax.xlane.f32.xlu0 %v3698_v16 }
 0x424   :  { %3729 = vmax.xlane.f32.xlu0 %v3696_v37 }
 0x428   :  { %v3726_v6 = vpop.xlane.xlu1 %3725 }
 0x430   :  { %v3728_v62 = vpop.xlane.xlu2 %3727  ;;  %v3710_v58 = vpop.xlane.xlu1 %3709 }
 0x431   :  { %v3734_v11 = vsel %vm3733_vm6, %v3702_v46, %v3710_v58 }
 0x438   :  { %v3712_v4 = vpop.xlane.xlu1 %3711 }
 0x439   :  { %v3735_v2 = vsel %vm3733_vm6, %v3704_v26, %v3712_v4 }
 0x43b   :  { %v3708_v32 = vpop.xlane.xlu2 %3707 }
 0x449   :  { %v3718_v50 = vpop.xlane.xlu0 %3717 }
 0x44a   :  { %v3739_v12 = vsel %vm3738_vm11, %v3734_v11, %v3718_v50 }
 0x44b   :  { %v3744_v31 = vsel %vm3743_vm1, %v3739_v12, %v3726_v6 }
 0x451   :  { %v3720_v0 = vpop.xlane.xlu2 %3719 }
 0x452   :  { %v3740_v8 = vsel %vm3738_vm11, %v3735_v2, %v3720_v0 }
 0x453   :  { %v3745_v29 = vsel %vm3743_vm1, %v3740_v8, %v3728_v62 }
 0x454   :  { %3768 = vmatpush.msrb.mxu3 %v3745_v29 }
 0x456   :  { %3769 = vmatpush.msrb.mxu3 %v3744_v31 }
 0x457   :  { %4120 = vmatmul.msk.f32.vlgmr.msrb.gmra.mxu3 %vm3750_vm9, %v3748_v49 }
 0x459   :  { %v3706_v48 = vpop.xlane.xlu2 %3705 }
 0x470   :  { %v3722_v57 = vpop.xlane.xlu2 %3721 }
 0x478   :  { %v3724_v54 = vpop.xlane.xlu1 %3723 }
 0x480   :  { %v3732_v17 = vpop.xlane.xlu1 %3731 }
 0x487   :  { %v3714_v63 = vpop.xlane.xlu0 %3713 }
 0x488   :  { %v3736_v39 = vsel %vm3733_vm6, %v3706_v48, %v3714_v63 }
 0x489   :  { %v3741_v42 = vsel %vm3738_vm11, %v3736_v39, %v3722_v57 }
 0x48f   :  { %v3716_v53 = vpop.xlane.xlu0 %3715 }
 0x490   :  { %v3737_v20 = vsel %vm3733_vm6, %v3708_v32, %v3716_v53 }
 0x491   :  { %v3742_v43 = vsel %vm3738_vm11, %v3737_v20, %v3724_v54 }
 0x492   :  { %v3747_v7 = vsel %vm3743_vm1, %v3742_v43, %v3732_v17 }
 0x493   :  { %3791 = vmatpush.msra.mxu3 %v3747_v7 }
 0x497   :  { %v3730_v9 = vpop.xlane.xlu0 %3729 }
 0x498   :  { %v3746_v10 = vsel %vm3743_vm1, %v3741_v42, %v3730_v9 }
 0x499   :  { %3792 = vmatpush.msra.mxu3 %v3746_v10 }
 0x49a   :  { %4121 = vmatmul.msk.f32.vlgmr.msra.gmra.mxu3 %vm3750_vm9, %v3749_v23 }
 0x4da   :  { %v3771_v51 = vpop.f32.mrf.mxu3 }
 0x51d   :  { %v3794_v35 = vpop.f32.mrf.mxu3 }
 0x51e   :  { %v3799_v45 = vrot.slane %v3794_v35, 7 }
 0x520   :  { %v3801_v19 = vsel %vm3800_vm5, %v3799_v45, %v3771_v51 }
 0x521   :  { %3804 = vst.msk [vmem:[#allocation11] sm:$0x3] %vm3803_vm12, %v3801_v19 }
 0x522   :  { %3815 = dma.vmem_to_hbm [thread:$0]  %s3811_s27, 32, %s3813_s30, [#allocation4]  }
 0x523   :  { %4648 = dma.done.wait [#allocation4], 32  }
 0x524   :  { %4649 = vsyncadd [#allocation4], 4294967264 }
 0x525   :  { %3820 = vsyncpa [#allocation3], 1 }
 0x526   :  { %3821 = vsyncpa [#allocation6], 1 }
 0x527   :  { %3822 = vsyncpa [#allocation9], 1 }
 0x528   :  { %3823 = vsyncpa [#allocation4], 1 }

</bundles_post_ra>
